<compile_context>
chip_gen: v6e
topology: v6e:2x2x1
jax: 0.10.0
libtpu: 0.0.40
codegen_flags: <defaults>
</compile_context>

<pallas_src>
import jax
import jax.numpy as jnp
import numpy as np
from jax import lax
from jax.experimental import pallas as pl
from jax.experimental.pallas import tpu as pltpu


# ----------------------------------------------------------------------------
# helpers
# ----------------------------------------------------------------------------
def _full_spec(shape):
    nd = len(shape)
    return pl.BlockSpec(shape, lambda i, _nd=nd: (0,) * _nd)


def build_norm_adj(edge_index, num_nodes):
    """Dense row-normalized adjacency matching PyG mean-aggr with add_self_loops."""
    src, dst = edge_index[0], edge_index[1]
    a = jnp.zeros((num_nodes, num_nodes), jnp.float32)
    a = a.at[dst, src].add(1.0)                       # count multi-edges like scatter-mean
    a = a + jnp.eye(num_nodes, dtype=jnp.float32)     # add_self_loops
    deg = jnp.sum(a, axis=1, keepdims=True)
    return a / deg


# ----------------------------------------------------------------------------
# fused Pallas kernel (all GNN layers + classifier)
# ----------------------------------------------------------------------------
def _fourier_layer(x, a_rep, fdim, sel_c, maskf,
                   wf, bf, wexp, bo, w1a, w1b, b1, w2, b2):
    """One PerNodeFourierMP layer + layer ReLU (dropout p=0 is identity)."""
    f32 = jnp.float32

    # freq_generator for every fourier component in ONE matmul (bias folded in):
    #   z[i, f*D + d] = freqs(h_i)[f, d]
    z = jnp.dot(x, wf, preferred_element_type=f32) + bf                    # [N, F*D]

    # Block-diagonal expanded source features (no reshape / transpose needed):
    #   xbigT[f*N + j, f*D + d] = x[j, d]          (zero off the f-diagonal)
    # Built from a sublane-aligned axis-0 concat (F copies of x), one small
    # matmul that tiles the D columns into F*D, and a precomputed 0/1 mask.
    x_stack = jnp.concatenate([x] * fdim, axis=0)                          # [F*N, D]
    xbigT = jnp.dot(x_stack, sel_c, preferred_element_type=f32) * maskf    # [F*N, F*D]

    # proj[i, f*N + j] = <freqs(h_i)[f, :], h_src[j, :]>  — ONE lane-dense matmul
    proj = lax.dot_general(z, xbigT, (((1,), (1,)), ((), ())),
                           preferred_element_type=f32)                     # [N, F*N]

    # sin/cos once; k=2 and k=4 harmonics via double-angle identities.
    s1 = jnp.sin(proj)
    c1 = jnp.cos(proj)
    s2 = 2.0 * s1 * c1
    c2 = 1.0 - 2.0 * s1 * s1
    s4 = 2.0 * s2 * c2
    c4 = 1.0 - 2.0 * s2 * s2

    # Mean aggregation + out_proj as ONE matmul:
    #   a_rep[i, f*N + j] = a_norm[i, j];  wexp = repeat(Wo^T, N, axis=0)
    big = jnp.concatenate([s1 * a_rep, c1 * a_rep, s2 * a_rep,
                           c2 * a_rep, s4 * a_rep, c4 * a_rep], axis=-1)   # [N, 6*F*N]
    aggr = jnp.dot(big, wexp, preferred_element_type=f32) + bo             # [N, F]

    # update_mlp(cat([x, aggr])) — concat folded into a split-weight matmul.
    h = jnp.maximum(jnp.dot(x, w1a, preferred_element_type=f32)
                    + jnp.dot(aggr, w1b, preferred_element_type=f32) + b1, 0.0)
    upd = jnp.dot(h, w2, preferred_element_type=f32) + b2
    return jnp.maximum(upd, 0.0)                                           # layer act (relu)


def _make_fused_kernel(num_layers, num_consts, layer_const_idx, fdim):
    def kernel(*refs):
        o_ref = refs[-1]
        x = refs[0][...]
        a_rep = refs[1][...]
        idx = 2
        consts = []
        for _ in range(num_consts):                   # deduplicated layout constants
            consts.append((refs[idx][...], refs[idx + 1][...]))
            idx += 2
        for l in range(num_layers):
            (wf, bf, wexp, bo,
             w1a, w1b, b1, w2, b2) = [r[...] for r in refs[idx:idx + 9]]
            idx += 9
            sel_c, maskf = consts[layer_const_idx[l]]
            x_res = x
            x_new = _fourier_layer(x, a_rep, fdim, sel_c, maskf,
                                   wf, bf, wexp, bo, w1a, w1b, b1, w2, b2)
            if x_new.shape == x_res.shape:            # use_residual (trace-time check)
                x_new = x_new + x_res
            x = x_new
        wc1, bc1, wc2, bc2 = [r[...] for r in refs[idx:idx + 4]]
        h = jnp.maximum(jnp.dot(x, wc1, preferred_element_type=jnp.float32) + bc1, 0.0)
        o_ref[...] = jnp.dot(h, wc2, preferred_element_type=jnp.float32) + bc2
    return kernel


# ----------------------------------------------------------------------------
# wrapper: builds constants / weight layouts and launches ONE pallas_call
# ----------------------------------------------------------------------------
def model_forward(x, a_norm, layer_params, clf_params):
    n = x.shape[0]
    fdim = layer_params[0]['bo'].shape[1]
    nclass = clf_params['w2T'].shape[1]

    a_rep = jnp.tile(a_norm, (1, fdim))                                   # [N, F*N]

    # Deduplicate (sel_c, maskf) layout constants across layers with equal din.
    r = np.arange(fdim * n)
    const_for_din = {}
    const_list = []
    layer_const_idx = []
    for p in layer_params:
        din = p['din']
        if din not in const_for_din:
            c = np.arange(fdim * din)
            sel_c = jnp.asarray(np.arange(din)[:, None] == c[None, :] % din,
                                jnp.float32)                              # [D, F*D]
            maskf = jnp.asarray(r[:, None] // n == c[None, :] // din,
                                jnp.float32)                              # [F*N, F*D]
            const_for_din[din] = len(const_list)
            const_list.append((sel_c, maskf))
        layer_const_idx.append(const_for_din[din])

    args = [x, a_rep]
    for sel_c, maskf in const_list:
        args += [sel_c, maskf]

    flops = 0
    for p in layer_params:
        din = p['din']
        hidden = p['b1'].shape[1]
        wexp = jnp.repeat(p['Wo'].T, n, axis=0)                           # [6*F*N, F]
        args += [p['wf'], p['bf'], wexp, p['bo'],
                 p['w1aT'], p['w1bT'], p['b1'], p['w2T'], p['b2']]
        flops += 2 * n * din * (fdim * din)                # freq matmul
        flops += 2 * (fdim * n) * din * (fdim * din)       # expanded-x construction matmul
        flops += 2 * n * (fdim * din) * (fdim * n)         # proj matmul
        flops += 2 * n * (6 * fdim * n) * fdim             # aggregation matmul
        flops += 2 * n * din * hidden + 2 * n * fdim * hidden + 2 * n * hidden * fdim
    hc = clf_params['b1'].shape[1]
    flops += 2 * n * fdim * hc + 2 * n * hc * nclass
    args += [clf_params['w1T'], clf_params['b1'], clf_params['w2T'], clf_params['b2']]

    transcendentals = len(layer_params) * 2 * n * fdim * n
    bytes_accessed = sum(int(np.prod(a.shape)) * 4 for a in args) + n * nclass * 4

    kernel = _make_fused_kernel(len(layer_params), len(const_list),
                                tuple(layer_const_idx), fdim)
    return pl.pallas_call(
        kernel,
        out_shape=jax.ShapeDtypeStruct((n, nclass), jnp.float32),
        grid=(1,),
        in_specs=[_full_spec(a.shape) for a in args],
        out_specs=_full_spec((n, nclass)),
        compiler_params=pltpu.CompilerParams(
            dimension_semantics=("arbitrary",),
            vmem_limit_bytes=32 * 1024 * 1024),
        cost_estimate=pl.CostEstimate(flops=int(flops),
                                      transcendentals=int(transcendentals),
                                      bytes_accessed=int(bytes_accessed)),
    )(*args)


# ----------------------------------------------------------------------------
# deterministic parameter init (torch layouts kept for the reference check)
# ----------------------------------------------------------------------------
def init_layer(key, din, hidden, fdim, scale=0.2):
    ks = jax.random.split(key, 8)
    Wf = scale * jax.random.normal(ks[0], (fdim * din, din), jnp.float32)     # freq_generator
    bf = scale * jax.random.normal(ks[1], (fdim * din,), jnp.float32)
    Wo = scale * jax.random.normal(ks[2], (fdim, 6 * fdim), jnp.float32)      # out_proj
    bo = scale * jax.random.normal(ks[3], (fdim,), jnp.float32)
    W1 = scale * jax.random.normal(ks[4], (hidden, din + fdim), jnp.float32)  # update_mlp[0]
    b1 = scale * jax.random.normal(ks[5], (hidden,), jnp.float32)
    W2 = scale * jax.random.normal(ks[6], (fdim, hidden), jnp.float32)        # update_mlp[2]
    b2 = scale * jax.random.normal(ks[7], (fdim,), jnp.float32)
    p = dict(Wf=Wf, bf_t=bf, Wo=Wo, bo_t=bo, W1=W1, b1_t=b1, W2=W2, b2_t=b2, din=din)
    # kernel-friendly layouts
    p['wf'] = Wf.T                                   # [din, fdim*din]
    p['bf'] = bf.reshape(1, fdim * din)
    p['bo'] = bo.reshape(1, fdim)
    p['w1aT'] = W1[:, :din].T                        # [din, hidden]
    p['w1bT'] = W1[:, din:].T                        # [fdim, hidden]
    p['b1'] = b1.reshape(1, hidden)
    p['w2T'] = W2.T                                  # [hidden, fdim]
    p['b2'] = b2.reshape(1, fdim)
    return p


def init_classifier(key, fdim, hidden, nclass, scale=0.2):
    ks = jax.random.split(key, 4)
    Wc1 = scale * jax.random.normal(ks[0], (hidden, fdim), jnp.float32)
    bc1 = scale * jax.random.normal(ks[1], (hidden,), jnp.float32)
    Wc2 = scale * jax.random.normal(ks[2], (nclass, hidden), jnp.float32)
    bc2 = scale * jax.random.normal(ks[3], (nclass,), jnp.float32)
    return dict(Wc1=Wc1, bc1=bc1, Wc2=Wc2, bc2=bc2,
                w1T=Wc1.T, b1=bc1.reshape(1, hidden),
                w2T=Wc2.T, b2=bc2.reshape(1, nclass))


# ----------------------------------------------------------------------------
# pure-JAX reference (edge-list semantics, mirrors the PyTorch/PyG forward)
# ----------------------------------------------------------------------------
def reference_forward(x, edge_index, layer_params, clf, num_nodes):
    loops = jnp.arange(num_nodes, dtype=edge_index.dtype)
    src = jnp.concatenate([edge_index[0], loops])
    dst = jnp.concatenate([edge_index[1], loops])
    for p in layer_params:
        din = p['din']
        fdim = p['bo_t'].shape[0]
        x_res = x
        h_i, h_j = x[dst], x[src]
        freqs = (h_i @ p['Wf'].T + p['bf_t']).reshape(-1, fdim, din)
        proj = jnp.einsum('efd,ed->ef', freqs, h_j)
        emb = jnp.concatenate([jnp.sin(proj), jnp.cos(proj),
                               jnp.sin(2 * proj), jnp.cos(2 * proj),
                               jnp.sin(4 * proj), jnp.cos(4 * proj)], axis=-1)
        msg = emb @ p['Wo'].T + p['bo_t']
        tot = jax.ops.segment_sum(msg, dst, num_segments=num_nodes)
        cnt = jax.ops.segment_sum(jnp.ones_like(dst, jnp.float32), dst,
                                  num_segments=num_nodes)
        aggr = tot / cnt[:, None]
        h = jnp.maximum(jnp.concatenate([x, aggr], axis=-1) @ p['W1'].T + p['b1_t'], 0.0)
        out = jnp.maximum(h @ p['W2'].T + p['b2_t'], 0.0)
        if out.shape == x_res.shape:
            out = out + x_res
        x = out
    h = jnp.maximum(x @ clf['Wc1'].T + clf['bc1'], 0.0)
    return h @ clf['Wc2'].T + clf['bc2']


# ----------------------------------------------------------------------------
if __name__ == "__main__":
    N, IN_DIM, HIDDEN, OUT_DIM, NUM_CLASSES, NUM_LAYERS, E = 16, 12, 32, 8, 4, 3, 32

    root = jax.random.PRNGKey(0)
    kx, ke, kp = jax.random.split(root, 3)
    x = jax.random.normal(kx, (N, IN_DIM), jnp.float32)
    edge_index = jax.random.randint(ke, (2, E), 0, N)

    layer_keys = jax.random.split(kp, NUM_LAYERS + 1)
    layer_params = [init_layer(layer_keys[0], IN_DIM, HIDDEN, OUT_DIM)]
    for l in range(1, NUM_LAYERS):
        layer_params.append(init_layer(layer_keys[l], OUT_DIM, HIDDEN, OUT_DIM))
    clf_params = init_classifier(layer_keys[NUM_LAYERS], OUT_DIM, HIDDEN, NUM_CLASSES)

    a_norm = build_norm_adj(edge_index, N)

    out = model_forward(x, a_norm, layer_params, clf_params)
    out = jax.block_until_ready(out)

    ref = reference_forward(x, edge_index, layer_params, clf_params, N)
    np.testing.assert_allclose(np.asarray(out), np.asarray(ref), rtol=2e-3, atol=2e-3)

    print("KERNEL_OK")
</pallas_src>

<mosaic_0001>
module attributes {stable_mosaic.version = 11 : i64} {
  func.func @kernel(%arg0: i32, %arg1: memref<16x12xf32, #tpu.memory_space<vmem>>, %arg2: memref<16x128xf32, #tpu.memory_space<vmem>>, %arg3: memref<12x96xf32, #tpu.memory_space<vmem>>, %arg4: memref<128x96xf32, #tpu.memory_space<vmem>>, %arg5: memref<8x64xf32, #tpu.memory_space<vmem>>, %arg6: memref<128x64xf32, #tpu.memory_space<vmem>>, %arg7: memref<12x96xf32, #tpu.memory_space<vmem>>, %arg8: memref<1x96xf32, #tpu.memory_space<vmem>>, %arg9: memref<768x8xf32, #tpu.memory_space<vmem>>, %arg10: memref<1x8xf32, #tpu.memory_space<vmem>>, %arg11: memref<12x32xf32, #tpu.memory_space<vmem>>, %arg12: memref<8x32xf32, #tpu.memory_space<vmem>>, %arg13: memref<1x32xf32, #tpu.memory_space<vmem>>, %arg14: memref<32x8xf32, #tpu.memory_space<vmem>>, %arg15: memref<1x8xf32, #tpu.memory_space<vmem>>, %arg16: memref<8x64xf32, #tpu.memory_space<vmem>>, %arg17: memref<1x64xf32, #tpu.memory_space<vmem>>, %arg18: memref<768x8xf32, #tpu.memory_space<vmem>>, %arg19: memref<1x8xf32, #tpu.memory_space<vmem>>, %arg20: memref<8x32xf32, #tpu.memory_space<vmem>>, %arg21: memref<8x32xf32, #tpu.memory_space<vmem>>, %arg22: memref<1x32xf32, #tpu.memory_space<vmem>>, %arg23: memref<32x8xf32, #tpu.memory_space<vmem>>, %arg24: memref<1x8xf32, #tpu.memory_space<vmem>>, %arg25: memref<8x64xf32, #tpu.memory_space<vmem>>, %arg26: memref<1x64xf32, #tpu.memory_space<vmem>>, %arg27: memref<768x8xf32, #tpu.memory_space<vmem>>, %arg28: memref<1x8xf32, #tpu.memory_space<vmem>>, %arg29: memref<8x32xf32, #tpu.memory_space<vmem>>, %arg30: memref<8x32xf32, #tpu.memory_space<vmem>>, %arg31: memref<1x32xf32, #tpu.memory_space<vmem>>, %arg32: memref<32x8xf32, #tpu.memory_space<vmem>>, %arg33: memref<1x8xf32, #tpu.memory_space<vmem>>, %arg34: memref<8x32xf32, #tpu.memory_space<vmem>>, %arg35: memref<1x32xf32, #tpu.memory_space<vmem>>, %arg36: memref<32x4xf32, #tpu.memory_space<vmem>>, %arg37: memref<1x4xf32, #tpu.memory_space<vmem>>, %arg38: memref<16x4xf32, #tpu.memory_space<vmem>>) attributes {dimension_semantics = [#tpu.dimension_semantics<arbitrary>], iteration_bounds = array<i64: 1>, scalar_prefetch = 0 : i64, scratch_operands = 0 : i64, tpu.core_type = #tpu.core_type<tc>, window_params = [{pipeline_mode = #tpu.pipeline_mode<synchronous>, transform_indices = @transform_0, window_bounds = array<i64: 16, 12>}, {pipeline_mode = #tpu.pipeline_mode<synchronous>, transform_indices = @transform_1, window_bounds = array<i64: 16, 128>}, {pipeline_mode = #tpu.pipeline_mode<synchronous>, transform_indices = @transform_2, window_bounds = array<i64: 12, 96>}, {pipeline_mode = #tpu.pipeline_mode<synchronous>, transform_indices = @transform_3, window_bounds = array<i64: 128, 96>}, {pipeline_mode = #tpu.pipeline_mode<synchronous>, transform_indices = @transform_4, window_bounds = array<i64: 8, 64>}, {pipeline_mode = #tpu.pipeline_mode<synchronous>, transform_indices = @transform_5, window_bounds = array<i64: 128, 64>}, {pipeline_mode = #tpu.pipeline_mode<synchronous>, transform_indices = @transform_6, window_bounds = array<i64: 12, 96>}, {pipeline_mode = #tpu.pipeline_mode<synchronous>, transform_indices = @transform_7, window_bounds = array<i64: 1, 96>}, {pipeline_mode = #tpu.pipeline_mode<synchronous>, transform_indices = @transform_8, window_bounds = array<i64: 768, 8>}, {pipeline_mode = #tpu.pipeline_mode<synchronous>, transform_indices = @transform_9, window_bounds = array<i64: 1, 8>}, {pipeline_mode = #tpu.pipeline_mode<synchronous>, transform_indices = @transform_10, window_bounds = array<i64: 12, 32>}, {pipeline_mode = #tpu.pipeline_mode<synchronous>, transform_indices = @transform_11, window_bounds = array<i64: 8, 32>}, {pipeline_mode = #tpu.pipeline_mode<synchronous>, transform_indices = @transform_12, window_bounds = array<i64: 1, 32>}, {pipeline_mode = #tpu.pipeline_mode<synchronous>, transform_indices = @transform_13, window_bounds = array<i64: 32, 8>}, {pipeline_mode = #tpu.pipeline_mode<synchronous>, transform_indices = @transform_14, window_bounds = array<i64: 1, 8>}, {pipeline_mode = #tpu.pipeline_mode<synchronous>, transform_indices = @transform_15, window_bounds = array<i64: 8, 64>}, {pipeline_mode = #tpu.pipeline_mode<synchronous>, transform_indices = @transform_16, window_bounds = array<i64: 1, 64>}, {pipeline_mode = #tpu.pipeline_mode<synchronous>, transform_indices = @transform_17, window_bounds = array<i64: 768, 8>}, {pipeline_mode = #tpu.pipeline_mode<synchronous>, transform_indices = @transform_18, window_bounds = array<i64: 1, 8>}, {pipeline_mode = #tpu.pipeline_mode<synchronous>, transform_indices = @transform_19, window_bounds = array<i64: 8, 32>}, {pipeline_mode = #tpu.pipeline_mode<synchronous>, transform_indices = @transform_20, window_bounds = array<i64: 8, 32>}, {pipeline_mode = #tpu.pipeline_mode<synchronous>, transform_indices = @transform_21, window_bounds = array<i64: 1, 32>}, {pipeline_mode = #tpu.pipeline_mode<synchronous>, transform_indices = @transform_22, window_bounds = array<i64: 32, 8>}, {pipeline_mode = #tpu.pipeline_mode<synchronous>, transform_indices = @transform_23, window_bounds = array<i64: 1, 8>}, {pipeline_mode = #tpu.pipeline_mode<synchronous>, transform_indices = @transform_24, window_bounds = array<i64: 8, 64>}, {pipeline_mode = #tpu.pipeline_mode<synchronous>, transform_indices = @transform_25, window_bounds = array<i64: 1, 64>}, {pipeline_mode = #tpu.pipeline_mode<synchronous>, transform_indices = @transform_26, window_bounds = array<i64: 768, 8>}, {pipeline_mode = #tpu.pipeline_mode<synchronous>, transform_indices = @transform_27, window_bounds = array<i64: 1, 8>}, {pipeline_mode = #tpu.pipeline_mode<synchronous>, transform_indices = @transform_28, window_bounds = array<i64: 8, 32>}, {pipeline_mode = #tpu.pipeline_mode<synchronous>, transform_indices = @transform_29, window_bounds = array<i64: 8, 32>}, {pipeline_mode = #tpu.pipeline_mode<synchronous>, transform_indices = @transform_30, window_bounds = array<i64: 1, 32>}, {pipeline_mode = #tpu.pipeline_mode<synchronous>, transform_indices = @transform_31, window_bounds = array<i64: 32, 8>}, {pipeline_mode = #tpu.pipeline_mode<synchronous>, transform_indices = @transform_32, window_bounds = array<i64: 1, 8>}, {pipeline_mode = #tpu.pipeline_mode<synchronous>, transform_indices = @transform_33, window_bounds = array<i64: 8, 32>}, {pipeline_mode = #tpu.pipeline_mode<synchronous>, transform_indices = @transform_34, window_bounds = array<i64: 1, 32>}, {pipeline_mode = #tpu.pipeline_mode<synchronous>, transform_indices = @transform_35, window_bounds = array<i64: 32, 4>}, {pipeline_mode = #tpu.pipeline_mode<synchronous>, transform_indices = @transform_36, window_bounds = array<i64: 1, 4>}, {pipeline_mode = #tpu.pipeline_mode<synchronous>, transform_indices = @transform_37, window_bounds = array<i64: 16, 4>}]} {
    %c0 = arith.constant 0 : index
    %c0_0 = arith.constant 0 : index
    %0 = vector.load %arg1[%c0, %c0_0] : memref<16x12xf32, #tpu.memory_space<vmem>>, vector<16x12xf32>
    %c0_1 = arith.constant 0 : index
    %c0_2 = arith.constant 0 : index
    %1 = vector.load %arg2[%c0_1, %c0_2] : memref<16x128xf32, #tpu.memory_space<vmem>>, vector<16x128xf32>
    %c0_3 = arith.constant 0 : index
    %c0_4 = arith.constant 0 : index
    %2 = vector.load %arg3[%c0_3, %c0_4] : memref<12x96xf32, #tpu.memory_space<vmem>>, vector<12x96xf32>
    %c0_5 = arith.constant 0 : index
    %c0_6 = arith.constant 0 : index
    %3 = vector.load %arg4[%c0_5, %c0_6] : memref<128x96xf32, #tpu.memory_space<vmem>>, vector<128x96xf32>
    %c0_7 = arith.constant 0 : index
    %c0_8 = arith.constant 0 : index
    %4 = vector.load %arg5[%c0_7, %c0_8] : memref<8x64xf32, #tpu.memory_space<vmem>>, vector<8x64xf32>
    %c0_9 = arith.constant 0 : index
    %c0_10 = arith.constant 0 : index
    %5 = vector.load %arg6[%c0_9, %c0_10] : memref<128x64xf32, #tpu.memory_space<vmem>>, vector<128x64xf32>
    %c0_11 = arith.constant 0 : index
    %c0_12 = arith.constant 0 : index
    %6 = vector.load %arg7[%c0_11, %c0_12] : memref<12x96xf32, #tpu.memory_space<vmem>>, vector<12x96xf32>
    %c0_13 = arith.constant 0 : index
    %c0_14 = arith.constant 0 : index
    %7 = vector.load %arg8[%c0_13, %c0_14] : memref<1x96xf32, #tpu.memory_space<vmem>>, vector<1x96xf32>
    %c0_15 = arith.constant 0 : index
    %c0_16 = arith.constant 0 : index
    %8 = vector.load %arg9[%c0_15, %c0_16] : memref<768x8xf32, #tpu.memory_space<vmem>>, vector<768x8xf32>
    %c0_17 = arith.constant 0 : index
    %c0_18 = arith.constant 0 : index
    %9 = vector.load %arg10[%c0_17, %c0_18] : memref<1x8xf32, #tpu.memory_space<vmem>>, vector<1x8xf32>
    %c0_19 = arith.constant 0 : index
    %c0_20 = arith.constant 0 : index
    %10 = vector.load %arg11[%c0_19, %c0_20] : memref<12x32xf32, #tpu.memory_space<vmem>>, vector<12x32xf32>
    %c0_21 = arith.constant 0 : index
    %c0_22 = arith.constant 0 : index
    %11 = vector.load %arg12[%c0_21, %c0_22] : memref<8x32xf32, #tpu.memory_space<vmem>>, vector<8x32xf32>
    %c0_23 = arith.constant 0 : index
    %c0_24 = arith.constant 0 : index
    %12 = vector.load %arg13[%c0_23, %c0_24] : memref<1x32xf32, #tpu.memory_space<vmem>>, vector<1x32xf32>
    %c0_25 = arith.constant 0 : index
    %c0_26 = arith.constant 0 : index
    %13 = vector.load %arg14[%c0_25, %c0_26] : memref<32x8xf32, #tpu.memory_space<vmem>>, vector<32x8xf32>
    %c0_27 = arith.constant 0 : index
    %c0_28 = arith.constant 0 : index
    %14 = vector.load %arg15[%c0_27, %c0_28] : memref<1x8xf32, #tpu.memory_space<vmem>>, vector<1x8xf32>
    %cst = arith.constant dense<0.000000e+00> : vector<16x96xf32>
    %15 = tpu.matmul %0, %6, %cst {dimension_numbers = #tpu.dot_dimension_numbers<[1], [0], [0], [1], [0, 0, 1, 1], [], []>} : vector<16x12xf32>, vector<12x96xf32>, vector<16x96xf32> -> vector<16x96xf32>
    %16 = vector.broadcast %7 : vector<1x96xf32> to vector<16x96xf32>
    %17 = arith.addf %15, %16 : vector<16x96xf32>
    %18 = tpu.concatenate %0, %0, %0, %0, %0, %0, %0, %0 in 0 : vector<16x12xf32>, vector<16x12xf32>, vector<16x12xf32>, vector<16x12xf32>, vector<16x12xf32>, vector<16x12xf32>, vector<16x12xf32>, vector<16x12xf32> -> vector<128x12xf32>
    %cst_29 = arith.constant dense<0.000000e+00> : vector<128x96xf32>
    %19 = tpu.matmul %18, %2, %cst_29 {dimension_numbers = #tpu.dot_dimension_numbers<[1], [0], [0], [1], [0, 0, 1, 1], [], []>} : vector<128x12xf32>, vector<12x96xf32>, vector<128x96xf32> -> vector<128x96xf32>
    %20 = arith.mulf %19, %3 : vector<128x96xf32>
    %cst_30 = arith.constant dense<0.000000e+00> : vector<16x128xf32>
    %21 = tpu.matmul %17, %20, %cst_30 {dimension_numbers = #tpu.dot_dimension_numbers<[1], [1], [0], [0], [0, 0, 1, 0], [], []>} : vector<16x96xf32>, vector<128x96xf32>, vector<16x128xf32> -> vector<16x128xf32>
    %22 = math.sin %21 : vector<16x128xf32>
    %23 = math.cos %21 : vector<16x128xf32>
    %cst_31 = arith.constant 2.000000e+00 : f32
    %24 = vector.broadcast %cst_31 : f32 to vector<16x128xf32>
    %25 = arith.mulf %24, %22 : vector<16x128xf32>
    %26 = arith.mulf %25, %23 : vector<16x128xf32>
    %cst_32 = arith.constant 2.000000e+00 : f32
    %27 = vector.broadcast %cst_32 : f32 to vector<16x128xf32>
    %28 = arith.mulf %27, %22 : vector<16x128xf32>
    %29 = arith.mulf %28, %22 : vector<16x128xf32>
    %cst_33 = arith.constant 1.000000e+00 : f32
    %30 = vector.broadcast %cst_33 : f32 to vector<16x128xf32>
    %31 = arith.subf %30, %29 : vector<16x128xf32>
    %cst_34 = arith.constant 2.000000e+00 : f32
    %32 = vector.broadcast %cst_34 : f32 to vector<16x128xf32>
    %33 = arith.mulf %32, %26 : vector<16x128xf32>
    %34 = arith.mulf %33, %31 : vector<16x128xf32>
    %cst_35 = arith.constant 2.000000e+00 : f32
    %35 = vector.broadcast %cst_35 : f32 to vector<16x128xf32>
    %36 = arith.mulf %35, %26 : vector<16x128xf32>
    %37 = arith.mulf %36, %26 : vector<16x128xf32>
    %cst_36 = arith.constant 1.000000e+00 : f32
    %38 = vector.broadcast %cst_36 : f32 to vector<16x128xf32>
    %39 = arith.subf %38, %37 : vector<16x128xf32>
    %40 = arith.mulf %22, %1 : vector<16x128xf32>
    %41 = arith.mulf %23, %1 : vector<16x128xf32>
    %42 = arith.mulf %26, %1 : vector<16x128xf32>
    %43 = arith.mulf %31, %1 : vector<16x128xf32>
    %44 = arith.mulf %34, %1 : vector<16x128xf32>
    %45 = arith.mulf %39, %1 : vector<16x128xf32>
    %46 = tpu.concatenate %40, %41, %42, %43, %44, %45 in 1 : vector<16x128xf32>, vector<16x128xf32>, vector<16x128xf32>, vector<16x128xf32>, vector<16x128xf32>, vector<16x128xf32> -> vector<16x768xf32>
    %cst_37 = arith.constant dense<0.000000e+00> : vector<16x8xf32>
    %47 = tpu.matmul %46, %8, %cst_37 {dimension_numbers = #tpu.dot_dimension_numbers<[1], [0], [0], [1], [0, 0, 1, 1], [], []>} : vector<16x768xf32>, vector<768x8xf32>, vector<16x8xf32> -> vector<16x8xf32>
    %48 = vector.broadcast %9 : vector<1x8xf32> to vector<16x8xf32>
    %49 = arith.addf %47, %48 : vector<16x8xf32>
    %cst_38 = arith.constant dense<0.000000e+00> : vector<16x32xf32>
    %50 = tpu.matmul %0, %10, %cst_38 {dimension_numbers = #tpu.dot_dimension_numbers<[1], [0], [0], [1], [0, 0, 1, 1], [], []>} : vector<16x12xf32>, vector<12x32xf32>, vector<16x32xf32> -> vector<16x32xf32>
    %cst_39 = arith.constant dense<0.000000e+00> : vector<16x32xf32>
    %51 = tpu.matmul %49, %11, %cst_39 {dimension_numbers = #tpu.dot_dimension_numbers<[1], [0], [0], [1], [0, 0, 1, 1], [], []>} : vector<16x8xf32>, vector<8x32xf32>, vector<16x32xf32> -> vector<16x32xf32>
    %52 = arith.addf %50, %51 : vector<16x32xf32>
    %53 = vector.broadcast %12 : vector<1x32xf32> to vector<16x32xf32>
    %54 = arith.addf %52, %53 : vector<16x32xf32>
    %cst_40 = arith.constant 0.000000e+00 : f32
    %55 = vector.broadcast %cst_40 : f32 to vector<16x32xf32>
    %56 = arith.maximumf %54, %55 : vector<16x32xf32>
    %cst_41 = arith.constant dense<0.000000e+00> : vector<16x8xf32>
    %57 = tpu.matmul %56, %13, %cst_41 {dimension_numbers = #tpu.dot_dimension_numbers<[1], [0], [0], [1], [0, 0, 1, 1], [], []>} : vector<16x32xf32>, vector<32x8xf32>, vector<16x8xf32> -> vector<16x8xf32>
    %58 = vector.broadcast %14 : vector<1x8xf32> to vector<16x8xf32>
    %59 = arith.addf %57, %58 : vector<16x8xf32>
    %cst_42 = arith.constant 0.000000e+00 : f32
    %60 = vector.broadcast %cst_42 : f32 to vector<16x8xf32>
    %61 = arith.maximumf %59, %60 : vector<16x8xf32>
    %c0_43 = arith.constant 0 : index
    %c0_44 = arith.constant 0 : index
    %62 = vector.load %arg16[%c0_43, %c0_44] : memref<8x64xf32, #tpu.memory_space<vmem>>, vector<8x64xf32>
    %c0_45 = arith.constant 0 : index
    %c0_46 = arith.constant 0 : index
    %63 = vector.load %arg17[%c0_45, %c0_46] : memref<1x64xf32, #tpu.memory_space<vmem>>, vector<1x64xf32>
    %c0_47 = arith.constant 0 : index
    %c0_48 = arith.constant 0 : index
    %64 = vector.load %arg18[%c0_47, %c0_48] : memref<768x8xf32, #tpu.memory_space<vmem>>, vector<768x8xf32>
    %c0_49 = arith.constant 0 : index
    %c0_50 = arith.constant 0 : index
    %65 = vector.load %arg19[%c0_49, %c0_50] : memref<1x8xf32, #tpu.memory_space<vmem>>, vector<1x8xf32>
    %c0_51 = arith.constant 0 : index
    %c0_52 = arith.constant 0 : index
    %66 = vector.load %arg20[%c0_51, %c0_52] : memref<8x32xf32, #tpu.memory_space<vmem>>, vector<8x32xf32>
    %c0_53 = arith.constant 0 : index
    %c0_54 = arith.constant 0 : index
    %67 = vector.load %arg21[%c0_53, %c0_54] : memref<8x32xf32, #tpu.memory_space<vmem>>, vector<8x32xf32>
    %c0_55 = arith.constant 0 : index
    %c0_56 = arith.constant 0 : index
    %68 = vector.load %arg22[%c0_55, %c0_56] : memref<1x32xf32, #tpu.memory_space<vmem>>, vector<1x32xf32>
    %c0_57 = arith.constant 0 : index
    %c0_58 = arith.constant 0 : index
    %69 = vector.load %arg23[%c0_57, %c0_58] : memref<32x8xf32, #tpu.memory_space<vmem>>, vector<32x8xf32>
    %c0_59 = arith.constant 0 : index
    %c0_60 = arith.constant 0 : index
    %70 = vector.load %arg24[%c0_59, %c0_60] : memref<1x8xf32, #tpu.memory_space<vmem>>, vector<1x8xf32>
    %cst_61 = arith.constant dense<0.000000e+00> : vector<16x64xf32>
    %71 = tpu.matmul %61, %62, %cst_61 {dimension_numbers = #tpu.dot_dimension_numbers<[1], [0], [0], [1], [0, 0, 1, 1], [], []>} : vector<16x8xf32>, vector<8x64xf32>, vector<16x64xf32> -> vector<16x64xf32>
    %72 = vector.broadcast %63 : vector<1x64xf32> to vector<16x64xf32>
    %73 = arith.addf %71, %72 : vector<16x64xf32>
    %74 = tpu.concatenate %61, %61, %61, %61, %61, %61, %61, %61 in 0 : vector<16x8xf32>, vector<16x8xf32>, vector<16x8xf32>, vector<16x8xf32>, vector<16x8xf32>, vector<16x8xf32>, vector<16x8xf32>, vector<16x8xf32> -> vector<128x8xf32>
    %cst_62 = arith.constant dense<0.000000e+00> : vector<128x64xf32>
    %75 = tpu.matmul %74, %4, %cst_62 {dimension_numbers = #tpu.dot_dimension_numbers<[1], [0], [0], [1], [0, 0, 1, 1], [], []>} : vector<128x8xf32>, vector<8x64xf32>, vector<128x64xf32> -> vector<128x64xf32>
    %76 = arith.mulf %75, %5 : vector<128x64xf32>
    %cst_63 = arith.constant dense<0.000000e+00> : vector<16x128xf32>
    %77 = tpu.matmul %73, %76, %cst_63 {dimension_numbers = #tpu.dot_dimension_numbers<[1], [1], [0], [0], [0, 0, 1, 0], [], []>} : vector<16x64xf32>, vector<128x64xf32>, vector<16x128xf32> -> vector<16x128xf32>
    %78 = math.sin %77 : vector<16x128xf32>
    %79 = math.cos %77 : vector<16x128xf32>
    %cst_64 = arith.constant 2.000000e+00 : f32
    %80 = vector.broadcast %cst_64 : f32 to vector<16x128xf32>
    %81 = arith.mulf %80, %78 : vector<16x128xf32>
    %82 = arith.mulf %81, %79 : vector<16x128xf32>
    %cst_65 = arith.constant 2.000000e+00 : f32
    %83 = vector.broadcast %cst_65 : f32 to vector<16x128xf32>
    %84 = arith.mulf %83, %78 : vector<16x128xf32>
    %85 = arith.mulf %84, %78 : vector<16x128xf32>
    %cst_66 = arith.constant 1.000000e+00 : f32
    %86 = vector.broadcast %cst_66 : f32 to vector<16x128xf32>
    %87 = arith.subf %86, %85 : vector<16x128xf32>
    %cst_67 = arith.constant 2.000000e+00 : f32
    %88 = vector.broadcast %cst_67 : f32 to vector<16x128xf32>
    %89 = arith.mulf %88, %82 : vector<16x128xf32>
    %90 = arith.mulf %89, %87 : vector<16x128xf32>
    %cst_68 = arith.constant 2.000000e+00 : f32
    %91 = vector.broadcast %cst_68 : f32 to vector<16x128xf32>
    %92 = arith.mulf %91, %82 : vector<16x128xf32>
    %93 = arith.mulf %92, %82 : vector<16x128xf32>
    %cst_69 = arith.constant 1.000000e+00 : f32
    %94 = vector.broadcast %cst_69 : f32 to vector<16x128xf32>
    %95 = arith.subf %94, %93 : vector<16x128xf32>
    %96 = arith.mulf %78, %1 : vector<16x128xf32>
    %97 = arith.mulf %79, %1 : vector<16x128xf32>
    %98 = arith.mulf %82, %1 : vector<16x128xf32>
    %99 = arith.mulf %87, %1 : vector<16x128xf32>
    %100 = arith.mulf %90, %1 : vector<16x128xf32>
    %101 = arith.mulf %95, %1 : vector<16x128xf32>
    %102 = tpu.concatenate %96, %97, %98, %99, %100, %101 in 1 : vector<16x128xf32>, vector<16x128xf32>, vector<16x128xf32>, vector<16x128xf32>, vector<16x128xf32>, vector<16x128xf32> -> vector<16x768xf32>
    %cst_70 = arith.constant dense<0.000000e+00> : vector<16x8xf32>
    %103 = tpu.matmul %102, %64, %cst_70 {dimension_numbers = #tpu.dot_dimension_numbers<[1], [0], [0], [1], [0, 0, 1, 1], [], []>} : vector<16x768xf32>, vector<768x8xf32>, vector<16x8xf32> -> vector<16x8xf32>
    %104 = vector.broadcast %65 : vector<1x8xf32> to vector<16x8xf32>
    %105 = arith.addf %103, %104 : vector<16x8xf32>
    %cst_71 = arith.constant dense<0.000000e+00> : vector<16x32xf32>
    %106 = tpu.matmul %61, %66, %cst_71 {dimension_numbers = #tpu.dot_dimension_numbers<[1], [0], [0], [1], [0, 0, 1, 1], [], []>} : vector<16x8xf32>, vector<8x32xf32>, vector<16x32xf32> -> vector<16x32xf32>
    %cst_72 = arith.constant dense<0.000000e+00> : vector<16x32xf32>
    %107 = tpu.matmul %105, %67, %cst_72 {dimension_numbers = #tpu.dot_dimension_numbers<[1], [0], [0], [1], [0, 0, 1, 1], [], []>} : vector<16x8xf32>, vector<8x32xf32>, vector<16x32xf32> -> vector<16x32xf32>
    %108 = arith.addf %106, %107 : vector<16x32xf32>
    %109 = vector.broadcast %68 : vector<1x32xf32> to vector<16x32xf32>
    %110 = arith.addf %108, %109 : vector<16x32xf32>
    %cst_73 = arith.constant 0.000000e+00 : f32
    %111 = vector.broadcast %cst_73 : f32 to vector<16x32xf32>
    %112 = arith.maximumf %110, %111 : vector<16x32xf32>
    %cst_74 = arith.constant dense<0.000000e+00> : vector<16x8xf32>
    %113 = tpu.matmul %112, %69, %cst_74 {dimension_numbers = #tpu.dot_dimension_numbers<[1], [0], [0], [1], [0, 0, 1, 1], [], []>} : vector<16x32xf32>, vector<32x8xf32>, vector<16x8xf32> -> vector<16x8xf32>
    %114 = vector.broadcast %70 : vector<1x8xf32> to vector<16x8xf32>
    %115 = arith.addf %113, %114 : vector<16x8xf32>
    %cst_75 = arith.constant 0.000000e+00 : f32
    %116 = vector.broadcast %cst_75 : f32 to vector<16x8xf32>
    %117 = arith.maximumf %115, %116 : vector<16x8xf32>
    %118 = arith.addf %117, %61 : vector<16x8xf32>
    %c0_76 = arith.constant 0 : index
    %c0_77 = arith.constant 0 : index
    %119 = vector.load %arg25[%c0_76, %c0_77] : memref<8x64xf32, #tpu.memory_space<vmem>>, vector<8x64xf32>
    %c0_78 = arith.constant 0 : index
    %c0_79 = arith.constant 0 : index
    %120 = vector.load %arg26[%c0_78, %c0_79] : memref<1x64xf32, #tpu.memory_space<vmem>>, vector<1x64xf32>
    %c0_80 = arith.constant 0 : index
    %c0_81 = arith.constant 0 : index
    %121 = vector.load %arg27[%c0_80, %c0_81] : memref<768x8xf32, #tpu.memory_space<vmem>>, vector<768x8xf32>
    %c0_82 = arith.constant 0 : index
    %c0_83 = arith.constant 0 : index
    %122 = vector.load %arg28[%c0_82, %c0_83] : memref<1x8xf32, #tpu.memory_space<vmem>>, vector<1x8xf32>
    %c0_84 = arith.constant 0 : index
    %c0_85 = arith.constant 0 : index
    %123 = vector.load %arg29[%c0_84, %c0_85] : memref<8x32xf32, #tpu.memory_space<vmem>>, vector<8x32xf32>
    %c0_86 = arith.constant 0 : index
    %c0_87 = arith.constant 0 : index
    %124 = vector.load %arg30[%c0_86, %c0_87] : memref<8x32xf32, #tpu.memory_space<vmem>>, vector<8x32xf32>
    %c0_88 = arith.constant 0 : index
    %c0_89 = arith.constant 0 : index
    %125 = vector.load %arg31[%c0_88, %c0_89] : memref<1x32xf32, #tpu.memory_space<vmem>>, vector<1x32xf32>
    %c0_90 = arith.constant 0 : index
    %c0_91 = arith.constant 0 : index
    %126 = vector.load %arg32[%c0_90, %c0_91] : memref<32x8xf32, #tpu.memory_space<vmem>>, vector<32x8xf32>
    %c0_92 = arith.constant 0 : index
    %c0_93 = arith.constant 0 : index
    %127 = vector.load %arg33[%c0_92, %c0_93] : memref<1x8xf32, #tpu.memory_space<vmem>>, vector<1x8xf32>
    %cst_94 = arith.constant dense<0.000000e+00> : vector<16x64xf32>
    %128 = tpu.matmul %118, %119, %cst_94 {dimension_numbers = #tpu.dot_dimension_numbers<[1], [0], [0], [1], [0, 0, 1, 1], [], []>} : vector<16x8xf32>, vector<8x64xf32>, vector<16x64xf32> -> vector<16x64xf32>
    %129 = vector.broadcast %120 : vector<1x64xf32> to vector<16x64xf32>
    %130 = arith.addf %128, %129 : vector<16x64xf32>
    %131 = tpu.concatenate %118, %118, %118, %118, %118, %118, %118, %118 in 0 : vector<16x8xf32>, vector<16x8xf32>, vector<16x8xf32>, vector<16x8xf32>, vector<16x8xf32>, vector<16x8xf32>, vector<16x8xf32>, vector<16x8xf32> -> vector<128x8xf32>
    %cst_95 = arith.constant dense<0.000000e+00> : vector<128x64xf32>
    %132 = tpu.matmul %131, %4, %cst_95 {dimension_numbers = #tpu.dot_dimension_numbers<[1], [0], [0], [1], [0, 0, 1, 1], [], []>} : vector<128x8xf32>, vector<8x64xf32>, vector<128x64xf32> -> vector<128x64xf32>
    %133 = arith.mulf %132, %5 : vector<128x64xf32>
    %cst_96 = arith.constant dense<0.000000e+00> : vector<16x128xf32>
    %134 = tpu.matmul %130, %133, %cst_96 {dimension_numbers = #tpu.dot_dimension_numbers<[1], [1], [0], [0], [0, 0, 1, 0], [], []>} : vector<16x64xf32>, vector<128x64xf32>, vector<16x128xf32> -> vector<16x128xf32>
    %135 = math.sin %134 : vector<16x128xf32>
    %136 = math.cos %134 : vector<16x128xf32>
    %cst_97 = arith.constant 2.000000e+00 : f32
    %137 = vector.broadcast %cst_97 : f32 to vector<16x128xf32>
    %138 = arith.mulf %137, %135 : vector<16x128xf32>
    %139 = arith.mulf %138, %136 : vector<16x128xf32>
    %cst_98 = arith.constant 2.000000e+00 : f32
    %140 = vector.broadcast %cst_98 : f32 to vector<16x128xf32>
    %141 = arith.mulf %140, %135 : vector<16x128xf32>
    %142 = arith.mulf %141, %135 : vector<16x128xf32>
    %cst_99 = arith.constant 1.000000e+00 : f32
    %143 = vector.broadcast %cst_99 : f32 to vector<16x128xf32>
    %144 = arith.subf %143, %142 : vector<16x128xf32>
    %cst_100 = arith.constant 2.000000e+00 : f32
    %145 = vector.broadcast %cst_100 : f32 to vector<16x128xf32>
    %146 = arith.mulf %145, %139 : vector<16x128xf32>
    %147 = arith.mulf %146, %144 : vector<16x128xf32>
    %cst_101 = arith.constant 2.000000e+00 : f32
    %148 = vector.broadcast %cst_101 : f32 to vector<16x128xf32>
    %149 = arith.mulf %148, %139 : vector<16x128xf32>
    %150 = arith.mulf %149, %139 : vector<16x128xf32>
    %cst_102 = arith.constant 1.000000e+00 : f32
    %151 = vector.broadcast %cst_102 : f32 to vector<16x128xf32>
    %152 = arith.subf %151, %150 : vector<16x128xf32>
    %153 = arith.mulf %135, %1 : vector<16x128xf32>
    %154 = arith.mulf %136, %1 : vector<16x128xf32>
    %155 = arith.mulf %139, %1 : vector<16x128xf32>
    %156 = arith.mulf %144, %1 : vector<16x128xf32>
    %157 = arith.mulf %147, %1 : vector<16x128xf32>
    %158 = arith.mulf %152, %1 : vector<16x128xf32>
    %159 = tpu.concatenate %153, %154, %155, %156, %157, %158 in 1 : vector<16x128xf32>, vector<16x128xf32>, vector<16x128xf32>, vector<16x128xf32>, vector<16x128xf32>, vector<16x128xf32> -> vector<16x768xf32>
    %cst_103 = arith.constant dense<0.000000e+00> : vector<16x8xf32>
    %160 = tpu.matmul %159, %121, %cst_103 {dimension_numbers = #tpu.dot_dimension_numbers<[1], [0], [0], [1], [0, 0, 1, 1], [], []>} : vector<16x768xf32>, vector<768x8xf32>, vector<16x8xf32> -> vector<16x8xf32>
    %161 = vector.broadcast %122 : vector<1x8xf32> to vector<16x8xf32>
    %162 = arith.addf %160, %161 : vector<16x8xf32>
    %cst_104 = arith.constant dense<0.000000e+00> : vector<16x32xf32>
    %163 = tpu.matmul %118, %123, %cst_104 {dimension_numbers = #tpu.dot_dimension_numbers<[1], [0], [0], [1], [0, 0, 1, 1], [], []>} : vector<16x8xf32>, vector<8x32xf32>, vector<16x32xf32> -> vector<16x32xf32>
    %cst_105 = arith.constant dense<0.000000e+00> : vector<16x32xf32>
    %164 = tpu.matmul %162, %124, %cst_105 {dimension_numbers = #tpu.dot_dimension_numbers<[1], [0], [0], [1], [0, 0, 1, 1], [], []>} : vector<16x8xf32>, vector<8x32xf32>, vector<16x32xf32> -> vector<16x32xf32>
    %165 = arith.addf %163, %164 : vector<16x32xf32>
    %166 = vector.broadcast %125 : vector<1x32xf32> to vector<16x32xf32>
    %167 = arith.addf %165, %166 : vector<16x32xf32>
    %cst_106 = arith.constant 0.000000e+00 : f32
    %168 = vector.broadcast %cst_106 : f32 to vector<16x32xf32>
    %169 = arith.maximumf %167, %168 : vector<16x32xf32>
    %cst_107 = arith.constant dense<0.000000e+00> : vector<16x8xf32>
    %170 = tpu.matmul %169, %126, %cst_107 {dimension_numbers = #tpu.dot_dimension_numbers<[1], [0], [0], [1], [0, 0, 1, 1], [], []>} : vector<16x32xf32>, vector<32x8xf32>, vector<16x8xf32> -> vector<16x8xf32>
    %171 = vector.broadcast %127 : vector<1x8xf32> to vector<16x8xf32>
    %172 = arith.addf %170, %171 : vector<16x8xf32>
    %cst_108 = arith.constant 0.000000e+00 : f32
    %173 = vector.broadcast %cst_108 : f32 to vector<16x8xf32>
    %174 = arith.maximumf %172, %173 : vector<16x8xf32>
    %175 = arith.addf %174, %118 : vector<16x8xf32>
    %c0_109 = arith.constant 0 : index
    %c0_110 = arith.constant 0 : index
    %176 = vector.load %arg34[%c0_109, %c0_110] : memref<8x32xf32, #tpu.memory_space<vmem>>, vector<8x32xf32>
    %c0_111 = arith.constant 0 : index
    %c0_112 = arith.constant 0 : index
    %177 = vector.load %arg35[%c0_111, %c0_112] : memref<1x32xf32, #tpu.memory_space<vmem>>, vector<1x32xf32>
    %c0_113 = arith.constant 0 : index
    %c0_114 = arith.constant 0 : index
    %178 = vector.load %arg36[%c0_113, %c0_114] : memref<32x4xf32, #tpu.memory_space<vmem>>, vector<32x4xf32>
    %c0_115 = arith.constant 0 : index
    %c0_116 = arith.constant 0 : index
    %179 = vector.load %arg37[%c0_115, %c0_116] : memref<1x4xf32, #tpu.memory_space<vmem>>, vector<1x4xf32>
    %cst_117 = arith.constant dense<0.000000e+00> : vector<16x32xf32>
    %180 = tpu.matmul %175, %176, %cst_117 {dimension_numbers = #tpu.dot_dimension_numbers<[1], [0], [0], [1], [0, 0, 1, 1], [], []>} : vector<16x8xf32>, vector<8x32xf32>, vector<16x32xf32> -> vector<16x32xf32>
    %181 = vector.broadcast %177 : vector<1x32xf32> to vector<16x32xf32>
    %182 = arith.addf %180, %181 : vector<16x32xf32>
    %cst_118 = arith.constant 0.000000e+00 : f32
    %183 = vector.broadcast %cst_118 : f32 to vector<16x32xf32>
    %184 = arith.maximumf %182, %183 : vector<16x32xf32>
    %cst_119 = arith.constant dense<0.000000e+00> : vector<16x4xf32>
    %185 = tpu.matmul %184, %178, %cst_119 {dimension_numbers = #tpu.dot_dimension_numbers<[1], [0], [0], [1], [0, 0, 1, 1], [], []>} : vector<16x32xf32>, vector<32x4xf32>, vector<16x4xf32> -> vector<16x4xf32>
    %186 = vector.broadcast %179 : vector<1x4xf32> to vector<16x4xf32>
    %187 = arith.addf %185, %186 : vector<16x4xf32>
    %c0_120 = arith.constant 0 : index
    %c0_121 = arith.constant 0 : index
    %188 = vector.load %arg38[%c0_120, %c0_121] : memref<16x4xf32, #tpu.memory_space<vmem>>, vector<16x4xf32>
    tpu.vector_store %arg38[%c0_120, %c0_121], %187 {strides = array<i32>} : memref<16x4xf32, #tpu.memory_space<vmem>>, vector<16x4xf32>,
    return
  }
  func.func @transform_0(%arg0: i32) -> (i32, i32) {
    %c0_i32 = arith.constant 0 : i32
    %c0_i32_0 = arith.constant 0 : i32
    %c0_i32_1 = arith.constant 0 : i32
    return %c0_i32, %c0_i32_0 : i32, i32
  }
  func.func @transform_1(%arg0: i32) -> (i32, i32) {
    %c0_i32 = arith.constant 0 : i32
    %c0_i32_0 = arith.constant 0 : i32
    %c0_i32_1 = arith.constant 0 : i32
    return %c0_i32, %c0_i32_0 : i32, i32
  }
  func.func @transform_2(%arg0: i32) -> (i32, i32) {
    %c0_i32 = arith.constant 0 : i32
    %c0_i32_0 = arith.constant 0 : i32
    %c0_i32_1 = arith.constant 0 : i32
    return %c0_i32, %c0_i32_0 : i32, i32
  }
  func.func @transform_3(%arg0: i32) -> (i32, i32) {
    %c0_i32 = arith.constant 0 : i32
    %c0_i32_0 = arith.constant 0 : i32
    %c0_i32_1 = arith.constant 0 : i32
    return %c0_i32, %c0_i32_0 : i32, i32
  }
  func.func @transform_4(%arg0: i32) -> (i32, i32) {
    %c0_i32 = arith.constant 0 : i32
    %c0_i32_0 = arith.constant 0 : i32
    %c0_i32_1 = arith.constant 0 : i32
    return %c0_i32, %c0_i32_0 : i32, i32
  }
  func.func @transform_5(%arg0: i32) -> (i32, i32) {
    %c0_i32 = arith.constant 0 : i32
    %c0_i32_0 = arith.constant 0 : i32
    %c0_i32_1 = arith.constant 0 : i32
    return %c0_i32, %c0_i32_0 : i32, i32
  }
  func.func @transform_6(%arg0: i32) -> (i32, i32) {
    %c0_i32 = arith.constant 0 : i32
    %c0_i32_0 = arith.constant 0 : i32
    %c0_i32_1 = arith.constant 0 : i32
    return %c0_i32, %c0_i32_0 : i32, i32
  }
  func.func @transform_7(%arg0: i32) -> (i32, i32) {
    %c0_i32 = arith.constant 0 : i32
    %c0_i32_0 = arith.constant 0 : i32
    %c0_i32_1 = arith.constant 0 : i32
    return %c0_i32, %c0_i32_0 : i32, i32
  }
  func.func @transform_8(%arg0: i32) -> (i32, i32) {
    %c0_i32 = arith.constant 0 : i32
    %c0_i32_0 = arith.constant 0 : i32
    %c0_i32_1 = arith.constant 0 : i32
    return %c0_i32, %c0_i32_0 : i32, i32
  }
  func.func @transform_9(%arg0: i32) -> (i32, i32) {
    %c0_i32 = arith.constant 0 : i32
    %c0_i32_0 = arith.constant 0 : i32
    %c0_i32_1 = arith.constant 0 : i32
    return %c0_i32, %c0_i32_0 : i32, i32
  }
  func.func @transform_10(%arg0: i32) -> (i32, i32) {
    %c0_i32 = arith.constant 0 : i32
    %c0_i32_0 = arith.constant 0 : i32
    %c0_i32_1 = arith.constant 0 : i32
    return %c0_i32, %c0_i32_0 : i32, i32
  }
  func.func @transform_11(%arg0: i32) -> (i32, i32) {
    %c0_i32 = arith.constant 0 : i32
    %c0_i32_0 = arith.constant 0 : i32
    %c0_i32_1 = arith.constant 0 : i32
    return %c0_i32, %c0_i32_0 : i32, i32
  }
  func.func @transform_12(%arg0: i32) -> (i32, i32) {
    %c0_i32 = arith.constant 0 : i32
    %c0_i32_0 = arith.constant 0 : i32
    %c0_i32_1 = arith.constant 0 : i32
    return %c0_i32, %c0_i32_0 : i32, i32
  }
  func.func @transform_13(%arg0: i32) -> (i32, i32) {
    %c0_i32 = arith.constant 0 : i32
    %c0_i32_0 = arith.constant 0 : i32
    %c0_i32_1 = arith.constant 0 : i32
    return %c0_i32, %c0_i32_0 : i32, i32
  }
  func.func @transform_14(%arg0: i32) -> (i32, i32) {
    %c0_i32 = arith.constant 0 : i32
    %c0_i32_0 = arith.constant 0 : i32
    %c0_i32_1 = arith.constant 0 : i32
    return %c0_i32, %c0_i32_0 : i32, i32
  }
  func.func @transform_15(%arg0: i32) -> (i32, i32) {
    %c0_i32 = arith.constant 0 : i32
    %c0_i32_0 = arith.constant 0 : i32
    %c0_i32_1 = arith.constant 0 : i32
    return %c0_i32, %c0_i32_0 : i32, i32
  }
  func.func @transform_16(%arg0: i32) -> (i32, i32) {
    %c0_i32 = arith.constant 0 : i32
    %c0_i32_0 = arith.constant 0 : i32
    %c0_i32_1 = arith.constant 0 : i32
    return %c0_i32, %c0_i32_0 : i32, i32
  }
  func.func @transform_17(%arg0: i32) -> (i32, i32) {
    %c0_i32 = arith.constant 0 : i32
    %c0_i32_0 = arith.constant 0 : i32
    %c0_i32_1 = arith.constant 0 : i32
    return %c0_i32, %c0_i32_0 : i32, i32
  }
  func.func @transform_18(%arg0: i32) -> (i32, i32) {
    %c0_i32 = arith.constant 0 : i32
    %c0_i32_0 = arith.constant 0 : i32
    %c0_i32_1 = arith.constant 0 : i32
    return %c0_i32, %c0_i32_0 : i32, i32
  }
  func.func @transform_19(%arg0: i32) -> (i32, i32) {
    %c0_i32 = arith.constant 0 : i32
    %c0_i32_0 = arith.constant 0 : i32
    %c0_i32_1 = arith.constant 0 : i32
    return %c0_i32, %c0_i32_0 : i32, i32
  }
  func.func @transform_20(%arg0: i32) -> (i32, i32) {
    %c0_i32 = arith.constant 0 : i32
    %c0_i32_0 = arith.constant 0 : i32
    %c0_i32_1 = arith.constant 0 : i32
    return %c0_i32, %c0_i32_0 : i32, i32
  }
  func.func @transform_21(%arg0: i32) -> (i32, i32) {
    %c0_i32 = arith.constant 0 : i32
    %c0_i32_0 = arith.constant 0 : i32
    %c0_i32_1 = arith.constant 0 : i32
    return %c0_i32, %c0_i32_0 : i32, i32
  }
  func.func @transform_22(%arg0: i32) -> (i32, i32) {
    %c0_i32 = arith.constant 0 : i32
    %c0_i32_0 = arith.constant 0 : i32
    %c0_i32_1 = arith.constant 0 : i32
    return %c0_i32, %c0_i32_0 : i32, i32
  }
  func.func @transform_23(%arg0: i32) -> (i32, i32) {
    %c0_i32 = arith.constant 0 : i32
    %c0_i32_0 = arith.constant 0 : i32
    %c0_i32_1 = arith.constant 0 : i32
    return %c0_i32, %c0_i32_0 : i32, i32
  }
  func.func @transform_24(%arg0: i32) -> (i32, i32) {
    %c0_i32 = arith.constant 0 : i32
    %c0_i32_0 = arith.constant 0 : i32
    %c0_i32_1 = arith.constant 0 : i32
    return %c0_i32, %c0_i32_0 : i32, i32
  }
  func.func @transform_25(%arg0: i32) -> (i32, i32) {
    %c0_i32 = arith.constant 0 : i32
    %c0_i32_0 = arith.constant 0 : i32
    %c0_i32_1 = arith.constant 0 : i32
    return %c0_i32, %c0_i32_0 : i32, i32
  }
  func.func @transform_26(%arg0: i32) -> (i32, i32) {
    %c0_i32 = arith.constant 0 : i32
    %c0_i32_0 = arith.constant 0 : i32
    %c0_i32_1 = arith.constant 0 : i32
    return %c0_i32, %c0_i32_0 : i32, i32
  }
  func.func @transform_27(%arg0: i32) -> (i32, i32) {
    %c0_i32 = arith.constant 0 : i32
    %c0_i32_0 = arith.constant 0 : i32
    %c0_i32_1 = arith.constant 0 : i32
    return %c0_i32, %c0_i32_0 : i32, i32
  }
  func.func @transform_28(%arg0: i32) -> (i32, i32) {
    %c0_i32 = arith.constant 0 : i32
    %c0_i32_0 = arith.constant 0 : i32
    %c0_i32_1 = arith.constant 0 : i32
    return %c0_i32, %c0_i32_0 : i32, i32
  }
  func.func @transform_29(%arg0: i32) -> (i32, i32) {
    %c0_i32 = arith.constant 0 : i32
    %c0_i32_0 = arith.constant 0 : i32
    %c0_i32_1 = arith.constant 0 : i32
    return %c0_i32, %c0_i32_0 : i32, i32
  }
  func.func @transform_30(%arg0: i32) -> (i32, i32) {
    %c0_i32 = arith.constant 0 : i32
    %c0_i32_0 = arith.constant 0 : i32
    %c0_i32_1 = arith.constant 0 : i32
    return %c0_i32, %c0_i32_0 : i32, i32
  }
  func.func @transform_31(%arg0: i32) -> (i32, i32) {
    %c0_i32 = arith.constant 0 : i32
    %c0_i32_0 = arith.constant 0 : i32
    %c0_i32_1 = arith.constant 0 : i32
    return %c0_i32, %c0_i32_0 : i32, i32
  }
  func.func @transform_32(%arg0: i32) -> (i32, i32) {
    %c0_i32 = arith.constant 0 : i32
    %c0_i32_0 = arith.constant 0 : i32
    %c0_i32_1 = arith.constant 0 : i32
    return %c0_i32, %c0_i32_0 : i32, i32
  }
  func.func @transform_33(%arg0: i32) -> (i32, i32) {
    %c0_i32 = arith.constant 0 : i32
    %c0_i32_0 = arith.constant 0 : i32
    %c0_i32_1 = arith.constant 0 : i32
    return %c0_i32, %c0_i32_0 : i32, i32
  }
  func.func @transform_34(%arg0: i32) -> (i32, i32) {
    %c0_i32 = arith.constant 0 : i32
    %c0_i32_0 = arith.constant 0 : i32
    %c0_i32_1 = arith.constant 0 : i32
    return %c0_i32, %c0_i32_0 : i32, i32
  }
  func.func @transform_35(%arg0: i32) -> (i32, i32) {
    %c0_i32 = arith.constant 0 : i32
    %c0_i32_0 = arith.constant 0 : i32
    %c0_i32_1 = arith.constant 0 : i32
    return %c0_i32, %c0_i32_0 : i32, i32
  }
  func.func @transform_36(%arg0: i32) -> (i32, i32) {
    %c0_i32 = arith.constant 0 : i32
    %c0_i32_0 = arith.constant 0 : i32
    %c0_i32_1 = arith.constant 0 : i32
    return %c0_i32, %c0_i32_0 : i32, i32
  }
  func.func @transform_37(%arg0: i32) -> (i32, i32) {
    %c0_i32 = arith.constant 0 : i32
    %c0_i32_0 = arith.constant 0 : i32
    %c0_i32_1 = arith.constant 0 : i32
    return %c0_i32, %c0_i32_0 : i32, i32
  }
}

</mosaic_0001>

<bundles_post_ra>
// kernel: tpu_custom_call.1
= control target key start
LH: loop header
LB: loop body
LE: loop exit
PB: predicated region body
PF: predicated region fallthrough
CT: control target
= control target key end

     0   :  { %s5773_s3 = smov 2   ;;  %s5774_s10 = smov 6   ;;  %vm315_vm0 = vcmask 1043456   ;;  %vm308_vm1 = vcmask 97280   ;;  %vm558_vm2 = vcmask 785408   ;;  %s6929_s0 = inlined_call_operand.smem [shape: u32[38], index: -1, kind: input, shape index: {}] }
   0x1   :  { %s4641_s6 = sld [smem:[%s6929_s0 + %s5773_s3]]   ;;  %s5775_s14 = smov 7  }
   0x2   :  { %s5827_s9 = sld [smem:[%s6929_s0]]   ;;  %s5776_s18 = smov 3  }
   0x3   :  { %s4645_s13 = sld [smem:[%s6929_s0 + %s5774_s10]]   ;;  %s5777_s22 = smov 8  }
   0x4   :  { %s4646_s17 = sld [smem:[%s6929_s0 + %s5775_s14]]   ;;  %s5784_s26 = smov 1  }
   0x5   :  { %s5873_s21 = sld [smem:[%s6929_s0 + %s5776_s18]]   ;;  %s5785_s30 = smov 11  }
   0x6   :  { %s5932_s25 = sld [smem:[%s6929_s0 + %s5777_s22]]   ;;  %s5786_s4 = smov 10  }
   0x7   :  { %v159_v0 = vld [vmem:[%s4641_s6 + $0x8] sm:$0xf]  ;;  %v158_v1 = vld [vmem:[%s4641_s6] sm:$0xff]  ;;  %s6082_s29 = sld [smem:[%s6929_s0 + %s5784_s26]]   ;;  %s5787_s8 = smov 9  }
   0x8   :  { %5383 = vmatprep.subr.msk.mxu1 %vm315_vm0, %v159_v0  ;;  %v154_v2 = vld [vmem:[%s5827_s9] sm:$0xff]  ;;  %v155_v3 = vld [vmem:[%s5827_s9 + $0x8] sm:$0xff]  ;;  %s4650_s3 = sld [smem:[%s6929_s0 + %s5785_s30]]   ;;  %s5790_s20 = smov 15  }
   0x9   :  { %5384 = vmatpush3.msk.msra.mxu1 %vm315_vm0, %v159_v0  ;;  %5387 = vmatprep.mubr.msk.f32.mxu1 %vm308_vm1, %v154_v2  ;;  %v194_v4 = vld [vmem:[%s4645_s13 + $0x8] sm:$0xf]  ;;  %v193_v5 = vld [vmem:[%s4645_s13] sm:$0xff]  ;;  %s6159_s7 = sld [smem:[%s6929_s0 + %s5786_s4]]   ;;  %s5788_s13 = smov 13  }
   0xa   :  { %5385 = vmatprep.subr.mxu1 %v158_v1  ;;  %5376 = vmatprep.subr.msk.mxu0 %vm315_vm0, %v194_v4  ;;  %v4677_v7 = vld [vmem:[%s4646_s17] ss:$0 sm:$0xff]  ;;  %s4648_s12 = sld [smem:[%s6929_s0 + %s5787_s8]]   ;;  %s5791_s24 = smov 4  }
   0xb   :  { %5386 = vmatpush3.msra.mxu1 %v158_v1  ;;  %5377 = vmatpush3.msk.msra.mxu0 %vm315_vm0, %v194_v4  ;;  %v175_v25 = vld [vmem:[%s5873_s21 + $0x78] sm:$0xff]  ;;  %v174_v27 = vld [vmem:[%s5873_s21 + $0x70] sm:$0xff]  ;;  %v173_v31 = vld [vmem:[%s5873_s21 + $0x68] sm:$0xff]  ;;  %s4652_s16 = sld [smem:[%s6929_s0 + %s5788_s13]]   ;;  %s5792_s28 = smov 14  }
   0xc   :  { %5388 = vmatmul.mubr.msk.f32.vlgmr.msra.gmra.mxu1 %vm308_vm1, %v155_v3  ;;  %5378 = vmatprep.subr.mxu0 %v193_v5  ;;  %v172_v33 = vld [vmem:[%s5873_s21 + $0x60] sm:$0xff]  ;;  %v171_v35 = vld [vmem:[%s5873_s21 + $0x58] sm:$0xff]  ;;  %v170_v37 = vld [vmem:[%s5873_s21 + $0x50] sm:$0xff]  ;;  %s4654_s23 = sld [smem:[%s6929_s0 + %s5790_s20]]   ;;  %s5802_s13 = smov 23  }
   0xd   :  { %5390 = vmatprep.mubr.msk.f32.mxu1 %vm308_vm1, %v154_v2  ;;  %5379 = vmatpush3.msra.mxu0 %v193_v5  ;;  %v169_v39 = vld [vmem:[%s5873_s21 + $0x48] sm:$0xff]  ;;  %v168_v41 = vld [vmem:[%s5873_s21 + $0x40] sm:$0xff]  ;;  %v167_v43 = vld [vmem:[%s5873_s21 + $0x38] sm:$0xff]  ;;  %s6188_s27 = sld [smem:[%s6929_s0 + %s5791_s24]]   ;;  %s5807_s1 = smov 27  }
   0xe   :  { %5380 = vmatprep.mubr.msk.f32.mxu0 %vm308_vm1, %v154_v2  ;;  %v166_v45 = vld [vmem:[%s5873_s21 + $0x30] sm:$0xff]  ;;  %v165_v47 = vld [vmem:[%s5873_s21 + $0x28] sm:$0xff]  ;;  %v164_v49 = vld [vmem:[%s5873_s21 + $0x20] sm:$0xff]  ;;  %s4653_s2 = sld [smem:[%s6929_s0 + %s5792_s28]]   ;;  %s5799_s28 = smov 22  }
   0xf   :  { %5381 = vmatmul.mubr.msk.f32.vlgmr.msra.gmra.mxu0 %vm308_vm1, %v155_v3  ;;  %v163_v51 = vld [vmem:[%s5873_s21 + $0x18] sm:$0xff]  ;;  %v162_v53 = vld [vmem:[%s5873_s21 + $0x10] sm:$0xff]  ;;  %v161_v55 = vld [vmem:[%s5873_s21 + $0x8] sm:$0xff]  ;;  %s4666_s4 = sld [smem:[%s6929_s0 + %s5807_s1]]   ;;  %s5808_s5 = smov 31  }
  0x10   :  { %5391 = vmatmul.mubr.msk.f32.gmra.mxu1 %vm308_vm1, %v155_v3  ;;  %v160_v57 = vld [vmem:[%s5873_s21] sm:$0xff]  ;;  %v227_v59 = vld [vmem:[%s5932_s25 + $0xf8] sm:$0xff]  ;;  %v226_v61 = vld [vmem:[%s5932_s25 + $0xf0] sm:$0xff]  ;;  %s4670_s8 = sld [smem:[%s6929_s0 + %s5808_s5]]   ;;  %s5809_s10 = smov 30  }
  0x11   :  { %5393 = vmatprep.mubr.msk.f32.mxu1 %vm308_vm1, %v154_v2  ;;  %4912 = vmatprep.subr.mxu1 %v227_v59  ;;  %v211_v60 = vld [vmem:[%s5932_s25 + $0x78] sm:$0xff]  ;;  %v210_v62 = vld [vmem:[%s5932_s25 + $0x70] sm:$0xff]  ;;  %v225_v63 = vld [vmem:[%s5932_s25 + $0xe8] sm:$0xff]  ;;  %s4669_s14 = sld [smem:[%s6929_s0 + %s5809_s10]]   ;;  %s5811_s17 = smov 32  }
  0x12   :  { %4913 = vmatpush3.msra.mxu1 %v211_v60  ;;  %v209_v0 = vld [vmem:[%s5932_s25 + $0x68] sm:$0xff]  ;;  %v224_v1 = vld [vmem:[%s5932_s25 + $0xe0] sm:$0xff]  ;;  %v207_v4 = vld [vmem:[%s5932_s25 + $0x58] sm:$0xff]  ;;  %s4671_s20 = sld [smem:[%s6929_s0 + %s5811_s17]]   ;;  %s5812_s21 = smov 35  }
  0x13   :  { %4914 = vmatprep.subr.mxu1 %v226_v61  ;;  %v222_v5 = vld [vmem:[%s5932_s25 + $0xd0] sm:$0xff]  ;;  %v260_v59 = vld [vmem:[%s5932_s25 + $0x200] sm:$0xff] }
  0x14   :  { %5394 = vmatmul.mubr.msk.f32.gmra.mxu1 %vm308_vm1, %v155_v3 }
  0x15   :  { %5396 = vmatprep.mubr.msk.f32.mxu1 %vm308_vm1, %v154_v2  ;;  %4915 = vmatpush3.msra.mxu1 %v210_v62 }
  0x16   :  { %4916 = vmatprep.subr.mxu1 %v225_v63 }
  0x17   :  { %4917 = vmatpush3.msra.mxu1 %v209_v0 }
  0x18   :  { %5397 = vmatmul.mubr.msk.f32.gmra.mxu1 %vm308_vm1, %v155_v3  ;;  %4918 = vmatprep.subr.mxu1 %v224_v1 }
  0x19   :  { %5399 = vmatprep.mubr.msk.f32.mxu1 %vm308_vm1, %v154_v2 }
  0x1c   :  { %5400 = vmatmul.mubr.msk.f32.gmra.mxu1 %vm308_vm1, %v155_v3 }
  0x1d   :  { %5402 = vmatprep.mubr.msk.f32.mxu1 %vm308_vm1, %v154_v2 }
  0x20   :  { %5403 = vmatmul.mubr.msk.f32.gmra.mxu1 %vm308_vm1, %v155_v3 }
  0x21   :  { %5405 = vmatprep.mubr.msk.f32.mxu1 %vm308_vm1, %v154_v2 }
  0x24   :  { %5406 = vmatmul.mubr.msk.f32.gmra.mxu1 %vm308_vm1, %v155_v3 }
  0x25   :  { %5408 = vmatprep.mubr.msk.f32.mxu1 %vm308_vm1, %v154_v2  ;;  %v208_v2 = vld [vmem:[%s5932_s25 + $0x60] sm:$0xff] }
  0x26   :  { %4919 = vmatpush3.msra.mxu1 %v208_v2 }
  0x28   :  { %5409 = vmatmul.mubr.msk.f32.gmra.mxu1 %vm308_vm1, %v155_v3  ;;  %v223_v3 = vld [vmem:[%s5932_s25 + $0xd8] sm:$0xff] }
  0x29   :  { %4920 = vmatprep.subr.mxu1 %v223_v3 }
  0x2a   :  { %4921 = vmatpush3.msra.mxu1 %v207_v4 }
  0x2b   :  { %4922 = vmatprep.subr.mxu1 %v222_v5 }
  0xcc   :  { %v5859_v6 = vpop.f32.mrf.mxu1 }
  0xcd   :  { %v543_v56 = vmul.f32 %v5859_v6, %v161_v55  ;;  %v206_v6 = vld [vmem:[%s5932_s25 + $0x50] sm:$0xff] }
  0xce   :  { %v5861_v8 = vpop.f32.mrf.mxu1  ;;  %4923 = vmatpush3.msra.mxu1 %v206_v6  ;;  %v262_v55 = vld [vmem:[%s5932_s25 + $0x210] sm:$0xff] }
  0xcf   :  { %v5382_v9 = vpop.f32.mrf.mxu0  ;;  %v542_v58 = vmul.f32 %v5861_v8, %v160_v57  ;;  %v221_v8 = vld [vmem:[%s5932_s25 + $0xc8] sm:$0xff] }
  0xd0   :  { %v5863_v10 = vpop.f32.mrf.mxu1  ;;  %v5865_v11 = vadd.f32 %v5382_v9, %v4677_v7  ;;  %v275_v9 = vld [vmem:[%s5932_s25 + $0x278] sm:$0xff]  ;;  %4924 = vmatprep.subr.mxu1 %v221_v8  ;;  %v261_v57 = vld [vmem:[%s5932_s25 + $0x208] sm:$0xff] }
  0xd1   :  { %v385_v12 = vpop.f32.mrf.mxu0  ;;  %v545_v52 = vmul.f32 %v5863_v10, %v163_v51  ;;  %v290_v10 = vld [vmem:[%s5932_s25 + $0x2f0] sm:$0xff]  ;;  %v264_v51 = vld [vmem:[%s5932_s25 + $0x220] sm:$0xff] }
  0xd2   :  { %v5867_v13 = vpop.f32.mrf.mxu1  ;;  %v386_v14 = vadd.f32 %v4677_v7, %v385_v12  ;;  %v291_v7 = vld [vmem:[%s5932_s25 + $0x2f8] sm:$0xff]  ;;  %v274_v12 = vld [vmem:[%s5932_s25 + $0x270] sm:$0xff] }
  0xd3   :  { %v544_v54 = vmul.f32 %v5867_v13, %v162_v53  ;;  %v220_v13 = vld [vmem:[%s5932_s25 + $0xc0] sm:$0xff]  ;;  %v263_v53 = vld [vmem:[%s5932_s25 + $0x218] sm:$0xff] }
  0xd4   :  { %v5395_v15 = vpop.f32.mrf.mxu1  ;;  %5443 = vmatprep.mubr.msk.f32.mxu0 %vm558_vm2, %v386_v14  ;;  %v289_v14 = vld [vmem:[%s5932_s25 + $0x2e8] sm:$0xff] }
  0xd5   :  { %v547_v48 = vmul.f32 %v5395_v15, %v165_v47  ;;  %v273_v15 = vld [vmem:[%s5932_s25 + $0x268] sm:$0xff]  ;;  %v196_v47 = vld [vmem:[%s5932_s25] sm:$0xff] }
  0xd6   :  { %v483_v16 = vpop.f32.mrf.mxu1 }
  0xd7   :  { %v546_v50 = vmul.f32 %v483_v16, %v164_v49  ;;  %v204_v16 = vld [vmem:[%s5932_s25 + $0x40] sm:$0xff]  ;;  %v265_v49 = vld [vmem:[%s5932_s25 + $0x228] sm:$0xff] }
  0xd8   :  { %v5398_v17 = vpop.f32.mrf.mxu1 }
  0xd9   :  { %v549_v44 = vmul.f32 %v5398_v17, %v167_v43  ;;  %v288_v17 = vld [vmem:[%s5932_s25 + $0x2e0] sm:$0xff]  ;;  %v266_v43 = vld [vmem:[%s5932_s25 + $0x230] sm:$0xff] }
  0xda   :  { %v493_v18 = vpop.f32.mrf.mxu1 }
  0xdb   :  { %v548_v46 = vmul.f32 %v493_v18, %v166_v45  ;;  %v219_v18 = vld [vmem:[%s5932_s25 + $0xb8] sm:$0xff]  ;;  %v281_v45 = vld [vmem:[%s5932_s25 + $0x2a8] sm:$0xff] }
  0xdc   :  { %v5401_v19 = vpop.f32.mrf.mxu1 }
  0xdd   :  { %v551_v40 = vmul.f32 %v5401_v19, %v169_v39  ;;  %v272_v19 = vld [vmem:[%s5932_s25 + $0x260] sm:$0xff]  ;;  %v267_v39 = vld [vmem:[%s5932_s25 + $0x238] sm:$0xff] }
  0xde   :  { %v503_v20 = vpop.f32.mrf.mxu1 }
  0xdf   :  { %v550_v42 = vmul.f32 %v503_v20, %v168_v41  ;;  %v203_v20 = vld [vmem:[%s5932_s25 + $0x38] sm:$0xff]  ;;  %v282_v41 = vld [vmem:[%s5932_s25 + $0x2b0] sm:$0xff] }
  0xe0   :  { %v5404_v21 = vpop.f32.mrf.mxu1 }
  0xe1   :  { %v553_v36 = vmul.f32 %v5404_v21, %v171_v35  ;;  %v287_v21 = vld [vmem:[%s5932_s25 + $0x2d8] sm:$0xff]  ;;  %v268_v35 = vld [vmem:[%s5932_s25 + $0x240] sm:$0xff] }
  0xe2   :  { %v513_v22 = vpop.f32.mrf.mxu1 }
  0xe3   :  { %v552_v38 = vmul.f32 %v513_v22, %v170_v37  ;;  %v218_v22 = vld [vmem:[%s5932_s25 + $0xb0] sm:$0xff]  ;;  %v283_v37 = vld [vmem:[%s5932_s25 + $0x2b8] sm:$0xff] }
  0xe4   :  { %v5407_v23 = vpop.f32.mrf.mxu1 }
  0xe5   :  { %v555_v32 = vmul.f32 %v5407_v23, %v173_v31  ;;  %v271_v23 = vld [vmem:[%s5932_s25 + $0x258] sm:$0xff]  ;;  %v269_v31 = vld [vmem:[%s5932_s25 + $0x248] sm:$0xff] }
  0xe6   :  { %v523_v24 = vpop.f32.mrf.mxu1 }
  0xe7   :  { %v554_v34 = vmul.f32 %v523_v24, %v172_v33  ;;  %v202_v24 = vld [vmem:[%s5932_s25 + $0x30] sm:$0xff]  ;;  %v284_v33 = vld [vmem:[%s5932_s25 + $0x2c0] sm:$0xff] }
  0xe8   :  { %v5410_v26 = vpop.f32.mrf.mxu1 }
  0xe9   :  { %v557_v28 = vmul.f32 %v5410_v26, %v175_v25  ;;  %v286_v25 = vld [vmem:[%s5932_s25 + $0x2d0] sm:$0xff]  ;;  %v217_v26 = vld [vmem:[%s5932_s25 + $0xa8] sm:$0xff] }
  0xea   :  { %v533_v29 = vpop.f32.mrf.mxu1 }
  0xeb   :  { %v556_v30 = vmul.f32 %v533_v29, %v174_v27  ;;  %5411 = vmatprep.subr.msk.mxu0 %vm558_vm2, %v557_v28  ;;  %v270_v27 = vld [vmem:[%s5932_s25 + $0x250] sm:$0xff]  ;;  %v285_v29 = vld [vmem:[%s5932_s25 + $0x2c8] sm:$0xff] }
  0xec   :  { %5412 = vmatpush3.xpose.msk.msra.mxu0 %vm558_vm2, %v557_v28  ;;  %v201_v28 = vld [vmem:[%s5932_s25 + $0x28] sm:$0xff] }
  0xed   :  { %5413 = vmatprep.subr.msk.mxu0 %vm558_vm2, %v556_v30 }
  0xf0   :  { %5414 = vmatpush3.xpose.msk.msra.mxu0 %vm558_vm2, %v556_v30  ;;  %v216_v30 = vld [vmem:[%s5932_s25 + $0xa0] sm:$0xff] }
  0xf1   :  { %5415 = vmatprep.subr.msk.mxu0 %vm558_vm2, %v555_v32 }
  0xf4   :  { %5416 = vmatpush3.xpose.msk.msra.mxu0 %vm558_vm2, %v555_v32  ;;  %v200_v32 = vld [vmem:[%s5932_s25 + $0x20] sm:$0xff] }
  0xf5   :  { %5417 = vmatprep.subr.msk.mxu0 %vm558_vm2, %v554_v34 }
  0xf8   :  { %5418 = vmatpush3.xpose.msk.msra.mxu0 %vm558_vm2, %v554_v34  ;;  %v215_v34 = vld [vmem:[%s5932_s25 + $0x98] sm:$0xff] }
  0xf9   :  { %5419 = vmatprep.subr.msk.mxu0 %vm558_vm2, %v553_v36 }
  0xfc   :  { %5420 = vmatpush3.xpose.msk.msra.mxu0 %vm558_vm2, %v553_v36  ;;  %v199_v36 = vld [vmem:[%s5932_s25 + $0x18] sm:$0xff] }
  0xfd   :  { %5421 = vmatprep.subr.msk.mxu0 %vm558_vm2, %v552_v38 }
 0x100   :  { %5422 = vmatpush3.xpose.msk.msra.mxu0 %vm558_vm2, %v552_v38  ;;  %v214_v38 = vld [vmem:[%s5932_s25 + $0x90] sm:$0xff] }
 0x101   :  { %5423 = vmatprep.subr.msk.mxu0 %vm558_vm2, %v551_v40 }
 0x104   :  { %5424 = vmatpush3.xpose.msk.msra.mxu0 %vm558_vm2, %v551_v40  ;;  %v198_v40 = vld [vmem:[%s5932_s25 + $0x10] sm:$0xff] }
 0x105   :  { %5425 = vmatprep.subr.msk.mxu0 %vm558_vm2, %v550_v42 }
 0x108   :  { %5426 = vmatpush3.xpose.msk.msra.mxu0 %vm558_vm2, %v550_v42  ;;  %v213_v42 = vld [vmem:[%s5932_s25 + $0x88] sm:$0xff] }
 0x109   :  { %5427 = vmatprep.subr.msk.mxu0 %vm558_vm2, %v549_v44 }
 0x10c   :  { %5428 = vmatpush3.xpose.msk.msra.mxu0 %vm558_vm2, %v549_v44  ;;  %v197_v44 = vld [vmem:[%s5932_s25 + $0x8] sm:$0xff] }
 0x10d   :  { %5429 = vmatprep.subr.msk.mxu0 %vm558_vm2, %v548_v46 }
 0x110   :  { %5430 = vmatpush3.xpose.msk.msra.mxu0 %vm558_vm2, %v548_v46  ;;  %v212_v46 = vld [vmem:[%s5932_s25 + $0x80] sm:$0xff] }
 0x111   :  { %5431 = vmatprep.subr.msk.mxu0 %vm558_vm2, %v547_v48 }
 0x114   :  { %5432 = vmatpush3.xpose.msk.msra.mxu0 %vm558_vm2, %v547_v48  ;;  %v259_v48 = vld [vmem:[%s5932_s25 + $0x1f8] sm:$0xff] }
 0x115   :  { %5433 = vmatprep.subr.msk.mxu0 %vm558_vm2, %v546_v50 }
 0x118   :  { %5434 = vmatpush3.xpose.msk.msra.mxu0 %vm558_vm2, %v546_v50  ;;  %v280_v50 = vld [vmem:[%s5932_s25 + $0x2a0] sm:$0xff] }
 0x119   :  { %5435 = vmatprep.subr.msk.mxu0 %vm558_vm2, %v545_v52 }
 0x11c   :  { %5436 = vmatpush3.xpose.msk.msra.mxu0 %vm558_vm2, %v545_v52  ;;  %v279_v52 = vld [vmem:[%s5932_s25 + $0x298] sm:$0xff] }
 0x11d   :  { %5437 = vmatprep.subr.msk.mxu0 %vm558_vm2, %v544_v54 }
 0x120   :  { %5438 = vmatpush3.xpose.msk.msra.mxu0 %vm558_vm2, %v544_v54  ;;  %v278_v54 = vld [vmem:[%s5932_s25 + $0x290] sm:$0xff] }
 0x121   :  { %5439 = vmatprep.subr.msk.mxu0 %vm558_vm2, %v543_v56 }
 0x124   :  { %5440 = vmatpush3.xpose.msk.msra.mxu0 %vm558_vm2, %v543_v56  ;;  %v277_v56 = vld [vmem:[%s5932_s25 + $0x288] sm:$0xff] }
 0x125   :  { %5441 = vmatprep.subr.msk.mxu0 %vm558_vm2, %v542_v58 }
 0x128   :  { %5442 = vmatpush3.xpose.msk.msra.mxu0 %vm558_vm2, %v542_v58  ;;  %v276_v58 = vld [vmem:[%s5932_s25 + $0x280] sm:$0xff] }
 0x129   :  { %4988 = vmatprep.subr.mxu0 %v291_v7 }
 0x12b   :  { %5444 = vmatmul.mubr.msk.f32.vlgmr.msra.gmra.mxu0 %vm558_vm2, %v5865_v11  ;;  %v205_v11 = vld [vmem:[%s5932_s25 + $0x48] sm:$0xff] }
 0x12c   :  { %4989 = vmatpush3.msra.mxu0 %v275_v9  ;;  %4925 = vmatpush3.msra.mxu1 %v205_v11 }
 0x12d   :  { %4990 = vmatprep.subr.mxu0 %v290_v10  ;;  %4926 = vmatprep.subr.mxu1 %v220_v13 }
 0x12e   :  { %4991 = vmatpush3.msra.mxu0 %v274_v12  ;;  %4927 = vmatpush3.msra.mxu1 %v204_v16  ;;  %v5778_v16 = vmov 683565275  }
 0x12f   :  { %4992 = vmatprep.subr.mxu0 %v289_v14  ;;  %4928 = vmatprep.subr.mxu1 %v219_v18 }
 0x130   :  { %4993 = vmatpush3.msra.mxu0 %v273_v15  ;;  %4929 = vmatpush3.msra.mxu1 %v203_v20 }
 0x131   :  { %4994 = vmatprep.subr.mxu0 %v288_v17  ;;  %4930 = vmatprep.subr.mxu1 %v218_v22 }
 0x132   :  { %4995 = vmatpush3.msra.mxu0 %v272_v19  ;;  %4931 = vmatpush3.msra.mxu1 %v202_v24  ;;  %v5779_v19 = vmov 2475754826  }
 0x133   :  { %4996 = vmatprep.subr.mxu0 %v287_v21  ;;  %4932 = vmatprep.subr.mxu1 %v217_v26  ;;  %v5780_v21 = vmov 2131351028  }
 0x134   :  { %4997 = vmatpush3.msra.mxu0 %v271_v23  ;;  %4933 = vmatpush3.msra.mxu1 %v201_v28  ;;  %v5781_v23 = vmov 2102212464  }
 0x135   :  { %4998 = vmatprep.subr.mxu0 %v286_v25  ;;  %4934 = vmatprep.subr.mxu1 %v216_v30  ;;  %v5782_v25 = vmov 920167782  }
 0x136   :  { %4999 = vmatpush3.msra.mxu0 %v270_v27  ;;  %4935 = vmatpush3.msra.mxu1 %v200_v32  ;;  %v5783_v32 = vmov 1326507024  }
 0x137   :  { %5000 = vmatprep.subr.mxu0 %v285_v29  ;;  %4936 = vmatprep.subr.mxu1 %v215_v34 }
 0x138   :  { %5001 = vmatpush3.msra.mxu0 %v269_v31  ;;  %4937 = vmatpush3.msra.mxu1 %v199_v36 }
 0x139   :  { %5002 = vmatprep.subr.mxu0 %v284_v33  ;;  %4938 = vmatprep.subr.mxu1 %v214_v38 }
 0x13a   :  { %5003 = vmatpush3.msra.mxu0 %v268_v35  ;;  %4939 = vmatpush3.msra.mxu1 %v198_v40 }
 0x13b   :  { %5004 = vmatprep.subr.mxu0 %v283_v37  ;;  %4940 = vmatprep.subr.mxu1 %v213_v42 }
 0x13c   :  { %5005 = vmatpush3.msra.mxu0 %v267_v39  ;;  %4941 = vmatpush3.msra.mxu1 %v197_v44 }
 0x13d   :  { %5006 = vmatprep.subr.mxu0 %v282_v41  ;;  %4942 = vmatprep.subr.mxu1 %v212_v46 }
 0x13e   :  { %5007 = vmatpush3.msra.mxu0 %v266_v43  ;;  %4943 = vmatpush3.msra.mxu1 %v196_v47 }
 0x13f   :  { %5008 = vmatprep.subr.mxu0 %v281_v45  ;;  %4950 = vmatprep.subr.mxu1 %v259_v48 }
 0x140   :  { %5009 = vmatpush3.msra.mxu0 %v265_v49 }
 0x141   :  { %5010 = vmatprep.subr.mxu0 %v280_v50 }
 0x142   :  { %5011 = vmatpush3.msra.mxu0 %v264_v51 }
 0x143   :  { %5012 = vmatprep.subr.mxu0 %v279_v52 }
 0x144   :  { %5013 = vmatpush3.msra.mxu0 %v263_v53 }
 0x145   :  { %5014 = vmatprep.subr.mxu0 %v278_v54 }
 0x146   :  { %5015 = vmatpush3.msra.mxu0 %v262_v55 }
 0x147   :  { %5016 = vmatprep.subr.mxu0 %v277_v56 }
 0x148   :  { %5017 = vmatpush3.msra.mxu0 %v261_v57 }
 0x149   :  { %5018 = vmatprep.subr.mxu0 %v276_v58 }
 0x14a   :  { %5019 = vmatpush3.msra.mxu0 %v260_v59 }
 0x1eb   :  { %v5999_v60 = vpop.f32.mrf.mxu0 }
 0x1ec   :  { %v792_v61 = vand.u32 2147483647, %v5999_v60  ;;  %v795_v62 = vand.u32 2139095040, %v5999_v60 }
 0x1ed   :  { %v6003_v63 = vpop.f32.mrf.mxu0 }
 0x1ee   :  { %v796_v0 = vshrl.u32 %v795_v62, 23  ;;  %v799_v1 = vand.u32 8388607, %v792_v61  ;;  %v691_v2 = vand.u32 2139095040, %v6003_v63  ;;  %v688_v4 = vand.u32 2147483647, %v6003_v63 }
 0x1f0   :  { %v4720_v3 = vadd.s32 4294967169, %v796_v0  ;;  %v692_v5 = vshrl.u32 %v691_v2, 23  ;;  %v800_v7 = vor.u32 8388608, %v799_v1  ;;  %v695_v9 = vand.u32 8388607, %v688_v4 }
 0x1f2   :  { %v802_v6 = vadd.s32 1, %v4720_v3  ;;  %v4716_v8 = vadd.s32 4294967169, %v692_v5  ;;  %v6011_v14 = vshll.u32 %v800_v7, 8  ;;  %v696_v18 = vor.u32 8388608, %v695_v9 }
 0x1f4   :  { %vm803_vm3 = vcmp.gt.s32.totalorder %v802_v6, 0  ;;  %v698_v11 = vadd.s32 1, %v4716_v8  ;;  %v736_v51 = vshll.u32 %v696_v18, 8 }
 0x1f5   :  { %v804_v10 = vsel %vm803_vm3, %v802_v6, 0  ;;  %vm794_vm3 = vcmp.lt.s32.totalorder %v5999_v60, 0 }
 0x1f6   :  { %v805_v12 = vshrl.u32 %v804_v10, 5  ;;  %v806_v13 = vand.u32 31, %v804_v10  ;;  %vm699_vm4 = vcmp.gt.s32.totalorder %v698_v11, 0 }
 0x1f7   :  { %v700_v37 = vsel %vm699_vm4, %v698_v11, 0  ;;  %vm793_vm4 = vcmp.le.f32.partialorder %v792_v61, 0.7853982 }
 0x1f8   :  { %v807_v15 = vsub.s32 32, %v806_v13  ;;  %v809_v17 = vshll.u32 %v5778_v16, %v806_v13  ;;  %v812_v20 = vshll.u32 %v5779_v19, %v806_v13  ;;  %v815_v22 = vshll.u32 %v5780_v21, %v806_v13 }
 0x1f9   :  { %v818_v24 = vshll.u32 %v5781_v23, %v806_v13  ;;  %v821_v26 = vshll.u32 %v5782_v25, %v806_v13  ;;  %vm824_vm5 = vcmp.lt.s32.totalorder %v805_v12, 1  ;;  %vm826_vm6 = vcmp.lt.s32.totalorder %v805_v12, 3 }
 0x1fa   :  { %v810_v27 = vshrl.u32 %v5779_v19, %v807_v15  ;;  %v813_v28 = vshrl.u32 %v5780_v21, %v807_v15  ;;  %v816_v29 = vshrl.u32 %v5781_v23, %v807_v15  ;;  %v808_v30 = vshrl.u32 %v5778_v16, %v807_v15 }
 0x1fb   :  { %v819_v31 = vshrl.u32 %v5782_v25, %v807_v15  ;;  %v822_v33 = vshrl.u32 %v5783_v32, %v807_v15  ;;  %vm827_vm7 = vcmp.lt.s32.totalorder %v805_v12, 4  ;;  %v702_v40 = vand.u32 31, %v700_v37 }
 0x1fc   :  { %v811_v34 = vor.u32 %v810_v27, %v809_v17  ;;  %v814_v35 = vor.u32 %v813_v28, %v812_v20  ;;  %v817_v36 = vor.u32 %v816_v29, %v815_v22  ;;  %vm825_vm8 = vcmp.lt.s32.totalorder %v805_v12, 2 }
 0x1fd   :  { %v820_v38 = vor.u32 %v819_v31, %v818_v24  ;;  %v823_v39 = vor.u32 %v822_v33, %v821_v26  ;;  %v703_v48 = vsub.s32 32, %v702_v40  ;;  %v701_v55 = vshrl.u32 %v700_v37, 5 }
 0x1fe   :  { %v828_v41 = vsel %vm824_vm5, %v808_v30, %v811_v34  ;;  %v829_v42 = vsel %vm827_vm7, %v817_v36, 2102212464  ;;  %v832_v43 = vsel %vm824_vm5, %v811_v34, %v814_v35  ;;  %v836_v44 = vsel %vm824_vm5, %v814_v35, %v817_v36 }
 0x1ff   :  { %v830_v45 = vsel %vm826_vm6, %v814_v35, %v829_v42  ;;  %v833_v46 = vsel %vm827_vm7, %v820_v38, 920167782  ;;  %v837_v47 = vsel %vm827_vm7, %v823_v39, 1326507024  ;;  %v705_v62 = vshll.u32 %v5778_v16, %v702_v40 }
 0x200   :  { %v834_v49 = vsel %vm826_vm6, %v817_v36, %v833_v46  ;;  %v838_v50 = vsel %vm826_vm6, %v820_v38, %v837_v47  ;;  %v831_v52 = vsel %vm825_vm8, %v828_v41, %v830_v45  ;;  %v706_v0 = vshrl.u32 %v5779_v19, %v703_v48 }
 0x201   :  { %v835_v53 = vsel %vm825_vm8, %v832_v43, %v834_v49  ;;  %v839_v54 = vsel %vm825_vm8, %v836_v44, %v838_v50  ;;  %v708_v1 = vshll.u32 %v5779_v19, %v702_v40  ;;  %v709_v2 = vshrl.u32 %v5780_v21, %v703_v48 }
 0x202   :  { %v6032_v56 = vmul.u32.u64.low %v6011_v14, %v839_v54  ;;  %v6033_v57 = vmul.u32.u64.high %v6011_v14, %v839_v54, %v6032_v56  ;;  %v6036_v58 = vmul.u32.u64.low %v6011_v14, %v835_v53  ;;  %v6037_v59 = vmul.u32.u64.high %v6011_v14, %v835_v53, %v6036_v58 }
 0x203   :  { %v711_v3 = vshll.u32 %v5780_v21, %v702_v40  ;;  %v712_v5 = vshrl.u32 %v5781_v23, %v703_v48  ;;  %v714_v6 = vshll.u32 %v5781_v23, %v702_v40  ;;  %v715_v7 = vshrl.u32 %v5782_v25, %v703_v48 }
 0x204   :  { %v707_v8 = vor.u32 %v706_v0, %v705_v62  ;;  %v710_v9 = vor.u32 %v709_v2, %v708_v1  ;;  %v717_v10 = vshll.u32 %v5782_v25, %v702_v40  ;;  %v718_v11 = vshrl.u32 %v5783_v32, %v703_v48 }
 0x205   :  { %v847_v12 = vmul.u32 %v6011_v14, %v831_v52  ;;  %vm849_vm9 = vc.u32 %v6033_v57, %v6036_v58  ;;  %v850_v13 = vadd.s32 1, %v6037_v59  ;;  %v713_v15 = vor.u32 %v712_v5, %v711_v3 }
 0x206   :  { %v704_v17 = vshrl.u32 %v5778_v16, %v703_v48  ;;  %v716_v18 = vor.u32 %v715_v7, %v714_v6  ;;  %v719_v20 = vor.u32 %v718_v11, %v717_v10  ;;  %vm720_vm10 = vcmp.lt.s32.totalorder %v701_v55, 1 }
 0x207   :  { %v851_v22 = vsel %vm849_vm9, %v850_v13, %v6037_v59  ;;  %vm722_vm11 = vcmp.lt.s32.totalorder %v701_v55, 3  ;;  %vm723_vm12 = vcmp.lt.s32.totalorder %v701_v55, 4  ;;  %v728_v24 = vsel %vm720_vm10, %v707_v8, %v710_v9 }
 0x208   :  { %v852_v26 = vadd.s32 %v851_v22, %v847_v12  ;;  %v725_v27 = vsel %vm723_vm12, %v713_v15, 2102212464  ;;  %v729_v28 = vsel %vm723_vm12, %v716_v18, 920167782  ;;  %v732_v14 = vsel %vm720_vm10, %v710_v9, %v713_v15 }
 0x209   :  { %vm721_vm13 = vcmp.lt.s32.totalorder %v701_v55, 2  ;;  %v724_v29 = vsel %vm720_vm10, %v704_v17, %v707_v8  ;;  %v730_v30 = vsel %vm722_vm11, %v713_v15, %v729_v28  ;;  %v733_v31 = vsel %vm723_vm12, %v719_v20, 1326507024 }
 0x20a   :  { %v853_v33 = vadd.s32 536870912, %v852_v26  ;;  %v726_v34 = vsel %vm722_vm11, %v710_v9, %v725_v27  ;;  %v731_v35 = vsel %vm721_vm13, %v728_v24, %v730_v30  ;;  %v734_v36 = vsel %vm722_vm11, %v716_v18, %v733_v31 }
 0x20b   :  { %v735_v37 = vsel %vm721_vm13, %v732_v14, %v734_v36  ;;  %v6056_v38 = vmul.u32.u64.low %v736_v51, %v731_v35  ;;  %v6057_v39 = vmul.u32.u64.high %v736_v51, %v731_v35, %v6056_v38  ;;  %v727_v43 = vsel %vm721_vm13, %v724_v29, %v726_v34 }
 0x20c   :  { %v854_v40 = vshrl.u32 %v853_v33, 30  ;;  %v6059_v41 = vmul.u32.u64.low %v736_v51, %v735_v37  ;;  %v6060_v42 = vmul.u32.u64.high %v736_v51, %v735_v37, %v6059_v41  ;;  %v743_v47 = vmul.u32 %v736_v51, %v727_v43 }
 0x20d   :  { %v746_v45 = vadd.s32 1, %v6057_v39  ;;  %v848_v1 = vadd.s32 %v6036_v58, %v6033_v57  ;;  %vm690_vm5 = vcmp.lt.s32.totalorder %v6003_v63, 0  ;;  %vm689_vm6 = vcmp.le.f32.partialorder %v688_v4, 0.7853982 }
 0x20e   :  { %v855_v44 = vshll.u32 %v854_v40, 30  ;;  %vm745_vm14 = vc.u32 %v6060_v42, %v6056_v38  ;;  %v744_v22 = vadd.s32 %v6056_v38, %v6060_v42  ;;  %v878_v14 = vsub.s32 4, %v854_v40 }
 0x20f   :  { %v747_v48 = vsel %vm745_vm14, %v746_v45, %v6057_v39  ;;  %vm884_vm10 = vweird.f32 %v5999_v60 }
 0x210   :  { %v856_v46 = vsub.s32 %v852_v26, %v855_v44  ;;  %v748_v50 = vadd.s32 %v747_v48, %v743_v47  ;;  %v879_v35 = vsel %vm794_vm3, %v878_v14, %v854_v40  ;;  %v258_v14 = vld [vmem:[%s5932_s25 + $0x1f0] sm:$0xff] }
 0x211   :  { %v881_v38 = vsel %vm793_vm4, 0, %v879_v35 }
 0x212   :  { %v858_v49 = vsub.s32 0, %v856_v46  ;;  %v749_v53 = vadd.s32 536870912, %v748_v50  ;;  %v885_v42 = vadd.s32 3, %v881_v38  ;;  %v1092_v48 = vand.u32 3, %v881_v38  ;;  %v241_v38 = vld [vmem:[%s5932_s25 + $0x168] sm:$0xff] }
 0x214   :  { %v4721_v52 = vmin.u32 %v858_v49, %v856_v46  ;;  %v750_v55 = vshrl.u32 %v749_v53, 30  ;;  %v886_v45 = vand.u32 3, %v885_v42  ;;  %vm1094_vm11 = vcmp.eq.s32.totalorder %v1092_v48, 0 }
 0x215   :  { %vm1097_vm12 = vcmp.eq.s32.totalorder %v1092_v48, 2  ;;  %vm1093_vm13 = vcmp.lt.s32.totalorder %v1092_v48, 2  ;;  %v254_v48 = vld [vmem:[%s5932_s25 + $0x1d0] sm:$0xff] }
 0x216   :  { %v860_v54 = vclz %v4721_v52  ;;  %v751_v59 = vshll.u32 %v750_v55, 30  ;;  %v774_v43 = vsub.s32 4, %v750_v55  ;;  %vm891_vm7 = vcmp.eq.s32.totalorder %v886_v45, 2 }
 0x217   :  { %vm888_vm8 = vcmp.eq.s32.totalorder %v886_v45, 0  ;;  %vm887_vm9 = vcmp.lt.s32.totalorder %v886_v45, 2  ;;  %v255_v45 = vld [vmem:[%s5932_s25 + $0x1d8] sm:$0xff] }
 0x218   :  { %v4722_v56 = vadd.s32 4294967294, %v860_v54  ;;  %v752_v62 = vsub.s32 %v748_v50, %v751_v59 }
 0x21a   :  { %vm4723_vm15 = vcmp.lt.s32.totalorder %v4722_v56, 0  ;;  %v754_v3 = vsub.s32 0, %v752_v62 }
 0x21b   :  { %v863_v0 = vsel %vm4723_vm15, 0, %v4722_v56 }
 0x21c   :  { %v864_v2 = vsub.s32 32, %v863_v0  ;;  %v868_v51 = vsub.s32 4294967266, %v863_v0  ;;  %v865_v5 = vshll.u32 %v856_v46, %v863_v0  ;;  %v4717_v8 = vmin.u32 %v754_v3, %v752_v62 }
 0x21d   :  { %v775_v46 = vsel %vm690_vm5, %v774_v43, %v750_v55 }
 0x21e   :  { %v866_v6 = vshrl.u32 %v848_v1, %v864_v2  ;;  %v869_v7 = vadd.s32 127, %v868_v51  ;;  %v756_v11 = vclz %v4717_v8  ;;  %v777_v49 = vsel %vm689_vm6, 0, %v775_v46 }
 0x21f   :  { %v781_v54 = vadd.s32 3, %v777_v49  ;;  %v989_v0 = vand.u32 3, %v777_v49 }
 0x220   :  { %v867_v9 = vor.u32 %v866_v6, %v865_v5  ;;  %v870_v10 = vshll.u32 %v869_v7, 23  ;;  %v4718_v13 = vadd.s32 4294967294, %v756_v11 }
 0x221   :  { %v782_v1 = vand.u32 3, %v781_v54  ;;  %vm991_vm14 = vcmp.eq.s32.totalorder %v989_v0, 0  ;;  %v253_v54 = vld [vmem:[%s5932_s25 + $0x1c8] sm:$0xff] }
 0x222   :  { %v871_v12 = vor.u32 4788187, %v870_v10  ;;  %v874_v17 = vcvt.s32.f32 %v867_v9  ;;  %vm4719_vm2 = vcmp.lt.s32.totalorder %v4718_v13, 0 }
 0x223   :  { %v759_v18 = vsel %vm4719_vm2, 0, %v4718_v13  ;;  %vm787_vm15 = vcmp.eq.s32.totalorder %v782_v1, 2  ;;  %vm994_vm2 = vcmp.eq.s32.totalorder %v989_v0, 2 }
 0x224   :  { %v872_v15 = vand.u32 2147483647, %v871_v12  ;;  %v760_v57 = vsub.s32 32, %v759_v18  ;;  %v764_v58 = vsub.s32 4294967266, %v759_v18  ;;  %v761_v26 = vshll.u32 %v752_v62, %v759_v18  ;;  %v6089_v12 = vld [vmem:[%s6082_s29] sm:$0xff] }
 0x226   :  { %v875_v20 = vmul.f32 %v874_v17, %v872_v15  ;;  %v762_v27 = vshrl.u32 %v744_v22, %v760_v57  ;;  %v765_v28 = vadd.s32 127, %v764_v58  ;;  %v6093_v22 = vld [vmem:[%s6082_s29 + $0x8] sm:$0xff] }
 0x228   :  { %v876_v24 = vxor.u32 2147483648, %v875_v20  ;;  %v763_v30 = vor.u32 %v762_v27, %v761_v26  ;;  %v766_v31 = vshll.u32 %v765_v28, 23  ;;  %v243_v27 = vld [vmem:[%s5932_s25 + $0x178] sm:$0xff] }
 0x22a   :  { %v877_v29 = vsel %vm794_vm3, %v876_v24, %v875_v20  ;;  %v767_v34 = vor.u32 4788187, %v766_v31  ;;  %v770_v37 = vcvt.s32.f32 %v763_v30  ;;  %vm784_vm3 = vcmp.eq.s32.totalorder %v782_v1, 0  ;;  %v242_v30 = vld [vmem:[%s5932_s25 + $0x170] sm:$0xff] }
 0x22b   :  { %v880_v33 = vsel %vm793_vm4, %v5999_v60, %v877_v29  ;;  %vm783_vm4 = vcmp.lt.s32.totalorder %v782_v1, 2  ;;  %v235_v1 = vld [vmem:[%s5932_s25 + $0x138] sm:$0xff] }
 0x22c   :  { %5726 = vcosq.f32 %v880_v33  ;;  %v768_v36 = vand.u32 2147483647, %v767_v34 }
 0x22d   :  { %5728 = vsinq.f32 %v880_v33  ;;  %v257_v33 = vld [vmem:[%s5932_s25 + $0x1e8] sm:$0xff] }
 0x22e   :  { %v771_v39 = vmul.f32 %v770_v37, %v768_v36 }
 0x230   :  { %v772_v41 = vxor.u32 2147483648, %v771_v39 }
 0x232   :  { %v773_v61 = vsel %vm690_vm5, %v772_v41, %v771_v39  ;;  %vm990_vm5 = vcmp.lt.s32.totalorder %v989_v0, 2  ;;  %v256_v39 = vld [vmem:[%s5932_s25 + $0x1e0] sm:$0xff]  ;;  %v251_v0 = vld [vmem:[%s5932_s25 + $0x1b8] sm:$0xff] }
 0x233   :  { %v776_v44 = vsel %vm689_vm6, %v6003_v63, %v773_v61  ;;  %vm780_vm6 = vweird.f32 %v6003_v63  ;;  %v240_v61 = vld [vmem:[%s5932_s25 + $0x160] sm:$0xff] }
 0x234   :  { %5730 = vcosq.f32 %v776_v44 }
 0x235   :  { %5732 = vsinq.f32 %v776_v44 }
 0x239   :  { %v5727_v40 = vpop.eup %5726 }
 0x23a   :  { %v5729_v47 = vpop.eup %5728  ;;  %v892_v50 = vxor.u32 2147483648, %v5727_v40 }
 0x23b   :  { %v889_v52 = vxor.u32 2147483648, %v5729_v47 }
 0x23c   :  { %v893_v53 = vsel %vm891_vm7, %v892_v50, %v5729_v47  ;;  %v1099_v62 = vsel %vm1097_vm12, %v892_v50, %v5729_v47  ;;  %v239_v47 = vld [vmem:[%s5932_s25 + $0x158] sm:$0xff]  ;;  %v238_v50 = vld [vmem:[%s5932_s25 + $0x150] sm:$0xff]  ;;  %vm1361_vm7 = vcmask 64512  }
 0x23d   :  { %v890_v56 = vsel %vm888_vm8, %v5727_v40, %v889_v52  ;;  %v1096_v59 = vsel %vm1094_vm11, %v5727_v40, %v889_v52 }
 0x23e   :  { %v894_v4 = vsel %vm887_vm9, %v890_v56, %v893_v53  ;;  %v1100_v2 = vsel %vm1093_vm13, %v1096_v59, %v1099_v62  ;;  %v236_v59 = vld [vmem:[%s5932_s25 + $0x140] sm:$0xff] }
 0x23f   :  { %v895_v55 = vsel %vm884_vm10, nan, %v894_v4  ;;  %v1101_v8 = vsel %vm884_vm10, nan, %v1100_v2  ;;  %v237_v4 = vld [vmem:[%s5932_s25 + $0x148] sm:$0xff]  ;;  %v250_v2 = vld [vmem:[%s5932_s25 + $0x1b0] sm:$0xff] }
 0x240   :  { %v1103_v51 = vmul.f32 2.0, %v895_v55  ;;  %v1121_v63 = vmul.f32 %v1101_v8, %v6093_v22  ;;  %v1119_v37 = vmul.f32 %v895_v55, %v6093_v22 }
 0x241   :  { %v5731_v3 = vpop.eup %5730 }
 0x242   :  { %v5733_v5 = vpop.eup %5732  ;;  %v788_v6 = vxor.u32 2147483648, %v5731_v3  ;;  %v6086_v11 = vmul.f32 %v1103_v51, %v1101_v8  ;;  %v6104_v31 = vmul.f32 %v1103_v51, %v895_v55  ;;  %v252_v55 = vld [vmem:[%s5932_s25 + $0x1c0] sm:$0xff]  ;;  %v234_v51 = vld [vmem:[%s5932_s25 + $0x130] sm:$0xff]  ;;  %v247_v8 = vld [vmem:[%s5932_s25 + $0x198] sm:$0xff] }
 0x243   :  { %v785_v7 = vxor.u32 2147483648, %v5733_v5 }
 0x244   :  { %v789_v9 = vsel %vm787_vm15, %v788_v6, %v5733_v5  ;;  %v996_v10 = vsel %vm994_vm2, %v788_v6, %v5733_v5  ;;  %v1111_v26 = vmul.f32 2.0, %v6086_v11  ;;  %v1109_v44 = vsub.f32 1.0, %v6104_v31  ;;  %v233_v5 = vld [vmem:[%s5932_s25 + $0x128] sm:$0xff]  ;;  %v248_v6 = vld [vmem:[%s5932_s25 + $0x1a0] sm:$0xff] }
 0x245   :  { %v786_v13 = vsel %vm784_vm3, %v5731_v3, %v785_v7  ;;  %v993_v15 = vsel %vm991_vm14, %v5731_v3, %v785_v7  ;;  %v249_v3 = vld [vmem:[%s5932_s25 + $0x1a8] sm:$0xff]  ;;  %v232_v7 = vld [vmem:[%s5932_s25 + $0x120] sm:$0xff] }
 0x246   :  { %v790_v17 = vsel %vm783_vm4, %v786_v13, %v789_v9  ;;  %v997_v60 = vsel %vm990_vm5, %v993_v15, %v996_v10  ;;  %v1115_v36 = vmul.f32 %v1111_v26, %v6086_v11  ;;  %v1113_v53 = vmul.f32 %v1111_v26, %v1109_v44  ;;  %v231_v9 = vld [vmem:[%s5932_s25 + $0x118] sm:$0xff]  ;;  %v246_v10 = vld [vmem:[%s5932_s25 + $0x190] sm:$0xff]  ;;  %v245_v15 = vld [vmem:[%s5932_s25 + $0x188] sm:$0xff] }
 0x247   :  { %v791_v18 = vsel %vm780_vm6, nan, %v790_v17  ;;  %v998_v20 = vsel %vm780_vm6, nan, %v997_v60  ;;  %v230_v13 = vld [vmem:[%s5932_s25 + $0x110] sm:$0xff]  ;;  %v229_v17 = vld [vmem:[%s5932_s25 + $0x108] sm:$0xff]  ;;  %v244_v60 = vld [vmem:[%s5932_s25 + $0x180] sm:$0xff] }
 0x248   :  { %v1102_v57 = vmul.f32 2.0, %v791_v18  ;;  %v1118_v58 = vmul.f32 %v791_v18, %v6089_v12  ;;  %v1120_v24 = vmul.f32 %v998_v20, %v6089_v12  ;;  %v1117_v40 = vsub.f32 1.0, %v1115_v36 }
 0x249   :  { %v1127_v62 = vmul.f32 %v1113_v53, %v6093_v22  ;;  %v298_v53 = vld [vmem:[%s4652_s16 + $0x8] sm:$0xff] }
 0x24a   :  { %v6099_v28 = vmul.f32 %v1102_v57, %v998_v20  ;;  %1200 = vmatprep.mubr.f32.mxu1 %v1120_v24  ;;  %v1106_v29 = vmul.f32 %v1102_v57, %v791_v18  ;;  %v1129_v56 = vmul.f32 %v1117_v40, %v6093_v22  ;;  %v228_v18 = vld [vmem:[%s5932_s25 + $0x100] sm:$0xff]  ;;  %v1125_v57 = vmul.f32 %v1109_v44, %v6093_v22  ;;  %v294_v24 = vld [vmem:[%s6159_s7 + $0x8] sm:$0xf]  ;;  %s5806_s25 = smov 28  }
 0x24b   :  { %1201 = vmatmul.mubr.f32.vlgmr.msra.gmra.mxu1 %v1118_v58  ;;  %v1123_v58 = vmul.f32 %v6086_v11, %v6093_v22  ;;  %s4667_s30 = sld [smem:[%s6929_s0 + %s5806_s25]]  }
 0x24c   :  { %4951 = vmatpush3.msra.mxu1 %v243_v27  ;;  %1205 = vmatprep.mubr.f32.mxu1 %v1121_v63  ;;  %v1108_v34 = vsub.f32 1.0, %v1106_v29  ;;  %v1110_v35 = vmul.f32 2.0, %v6099_v28  ;;  %v1122_v20 = vmul.f32 %v6099_v28, %v6089_v12  ;;  %v4732_v29 = vld [vmem:[%s4648_s12] ss:$0 sm:$0xff]  ;;  %s5795_s12 = smov 17  }
 0x24d   :  { %4952 = vmatprep.subr.mxu1 %v258_v14  ;;  %s6310_s15 = sld [smem:[%s6929_s0 + %s5795_s12]]  }
 0x24e   :  { %4953 = vmatpush3.msra.mxu1 %v242_v30  ;;  %v1124_v41 = vmul.f32 %v1108_v34, %v6089_v12  ;;  %v1114_v42 = vmul.f32 %v1110_v35, %v6099_v28  ;;  %v1112_v43 = vmul.f32 %v1110_v35, %v1108_v34 }
 0x24f   :  { %4954 = vmatprep.subr.mxu1 %v257_v33  ;;  %1206 = vmatmul.mubr.f32.gmra.mxu1 %v1119_v37 }
 0x250   :  { %4955 = vmatpush3.msra.mxu1 %v241_v38  ;;  %1275 = vmatprep.mubr.f32.mxu1 %v1124_v41  ;;  %v1116_v46 = vsub.f32 1.0, %v1114_v42  ;;  %v1126_v52 = vmul.f32 %v1112_v43, %v6089_v12 }
 0x251   :  { %4956 = vmatprep.subr.mxu1 %v256_v39 }
 0x252   :  { %4957 = vmatpush3.msra.mxu1 %v240_v61  ;;  %v1128_v49 = vmul.f32 %v1116_v46, %v6089_v12  ;;  %v295_v12 = vld [vmem:[%s4650_s3] sm:$0xff]  ;;  %s5793_s3 = smov 16  }
 0x253   :  { %4958 = vmatprep.subr.mxu1 %v255_v45  ;;  %s4655_s6 = sld [smem:[%s6929_s0 + %s5793_s3]]   ;;  %s5800_s3 = smov 21  }
 0x254   :  { %4959 = vmatpush3.msra.mxu1 %v239_v47  ;;  %1350 = vmatprep.mubr.f32.mxu0 %v1128_v49  ;;  %v293_v47 = vld [vmem:[%s6159_s7] sm:$0xff]  ;;  %v5751_v49 = vld [vmem:[%s5827_s9 + $0x8] sm:$0xff]  ;;  %s5794_s7 = smov 5  }
 0x255   :  { %4960 = vmatprep.subr.mxu1 %v254_v48  ;;  %1351 = vmatmul.mubr.f32.vlgmr.msra.gmra.mxu0 %v1126_v52  ;;  %v5750_v48 = vld [vmem:[%s5827_s9] sm:$0xff]  ;;  %v299_v52 = vld [vmem:[%s4652_s16 + $0x10] sm:$0xff]  ;;  %s5789_s9 = smov 12   ;;  %s6251_s11 = sld [smem:[%s6929_s0 + %s5794_s7]]  }
 0x256   :  { %4961 = vmatpush3.msra.mxu1 %v238_v50  ;;  %1355 = vmatprep.mubr.f32.mxu0 %v1129_v56  ;;  %v300_v50 = vld [vmem:[%s4652_s16 + $0x18] sm:$0xff]  ;;  %s4651_s19 = sld [smem:[%s6929_s0 + %s5789_s9]]   ;;  %s5801_s7 = smov 24  }
 0x257   :  { %4962 = vmatprep.subr.mxu1 %v253_v54  ;;  %v297_v54 = vld [vmem:[%s4652_s16] sm:$0xff]  ;;  %s5796_s16 = smov 20   ;;  %s4663_s12 = sld [smem:[%s6929_s0 + %s5801_s7]]  }
 0x258   :  { %4963 = vmatpush3.msra.mxu1 %v237_v4  ;;  %s4659_s18 = sld [smem:[%s6929_s0 + %s5796_s16]]  }
 0x259   :  { %4964 = vmatprep.subr.mxu1 %v252_v55  ;;  %1356 = vmatmul.mubr.f32.gmra.mxu0 %v1127_v62  ;;  %s4662_s16 = sld [smem:[%s6929_s0 + %s5802_s13]]  }
 0x25a   :  { %4965 = vmatpush3.msra.mxu1 %v236_v59 }
 0x25b   :  { %4966 = vmatprep.subr.mxu1 %v251_v0 }
 0x25c   :  { %4967 = vmatpush3.msra.mxu1 %v235_v1  ;;  %v4738_v59 = vld [vmem:[%s4651_s19] ss:$0 sm:$0xff]  ;;  %s5797_s19 = smov 19  }
 0x25d   :  { %4968 = vmatprep.subr.mxu1 %v250_v2  ;;  %s4658_s22 = sld [smem:[%s6929_s0 + %s5797_s19]]   ;;  %s5804_s19 = smov 26  }
 0x25e   :  { %4969 = vmatpush3.msra.mxu1 %v234_v51 }
 0x25f   :  { %4970 = vmatprep.subr.mxu1 %v249_v3 }
 0x260   :  { %4971 = vmatpush3.msra.mxu1 %v233_v5 }
 0x261   :  { %4972 = vmatprep.subr.mxu1 %v248_v6  ;;  %v1621_v6 = vld [vmem:[%s4654_s23] sm:$0xff]  ;;  %s5798_s23 = smov 18  }
 0x262   :  { %4973 = vmatpush3.msra.mxu1 %v232_v7  ;;  %v176_v7 = vld [vmem:[%s6188_s27] sm:$0xff]  ;;  %s4657_s26 = sld [smem:[%s6929_s0 + %s5798_s23]]   ;;  %s5813_s23 = smov 34  }
 0x263   :  { %4974 = vmatprep.subr.mxu1 %v247_v8  ;;  %v4739_v8 = vld [vmem:[%s4653_s2] ss:$0 sm:$0xff]  ;;  %s4661_s2 = sld [smem:[%s6929_s0 + %s5799_s28]]   ;;  %s5814_s28 = smov 36  }
 0x264   :  { %4975 = vmatpush3.msra.mxu1 %v231_v9 }
 0x265   :  { %4976 = vmatprep.subr.mxu1 %v246_v10 }
 0x266   :  { %4977 = vmatpush3.msra.mxu1 %v230_v13 }
 0x267   :  { %4978 = vmatprep.subr.mxu1 %v245_v15 }
 0x268   :  { %4979 = vmatpush3.msra.mxu1 %v229_v17 }
 0x269   :  { %4980 = vmatprep.subr.mxu1 %v244_v60 }
 0x26a   :  { %4981 = vmatpush3.msra.mxu1 %v228_v18  ;;  %v4742_v18 = vld [vmem:[%s4655_s6] ss:$0 sm:$0xff]  ;;  %s4660_s6 = sld [smem:[%s6929_s0 + %s5800_s3]]   ;;  %s5815_s3 = smov 37  }
 0x26b   :  { %1276 = vmatmul.mubr.f32.vlgmr.msra.gmra.mxu1 %v1122_v20  ;;  %5446 = vmatprep.subr.mxu1 %v295_v12 }
 0x26c   :  { %1280 = vmatprep.mubr.f32.mxu1 %v1125_v57  ;;  %5447 = vmatpush3.msra.mxu1 %v295_v12 }
 0x26d   :  { %5451 = vmatprep.subr.msk.mxu1 %vm315_vm0, %v294_v24 }
 0x26f   :  { %1281 = vmatmul.mubr.f32.gmra.mxu1 %v1123_v58 }
 0x30b   :  { %v4944_v11 = vpop.f32.mrf.mxu1 }
 0x30d   :  { %v4945_v22 = vpop.f32.mrf.mxu1 }
 0x30e   :  { %v4946_v14 = vadd.f32 %v4945_v22, %v4944_v11 }
 0x30f   :  { %v4947_v26 = vpop.f32.mrf.mxu1 }
 0x310   :  { %v1203_v34 = vadd.f32 %v4946_v14, %v4732_v29 }
 0x311   :  { %v4948_v28 = vpop.f32.mrf.mxu1 }
 0x312   :  { %v4949_v35 = vadd.f32 %v4948_v28, %v4947_v26 }
 0x314   :  { %v1208_v43 = vadd.f32 %v4949_v35, %v4732_v29 }
 0x315   :  { %v5020_v27 = vpop.f32.mrf.mxu0 }
 0x317   :  { %v5021_v63 = vpop.f32.mrf.mxu0 }
 0x318   :  { %v5022_v38 = vadd.f32 %v5021_v63, %v5020_v27 }
 0x319   :  { %v5023_v31 = vpop.f32.mrf.mxu0 }
 0x31b   :  { %v5024_v41 = vpop.f32.mrf.mxu0 }
 0x31c   :  { %v5025_v45 = vadd.f32 %v5024_v41, %v5023_v31 }
 0x32b   :  { %v4982_v30 = vpop.f32.mrf.mxu1 }
 0x32d   :  { %v4983_v33 = vpop.f32.mrf.mxu1 }
 0x32e   :  { %v4984_v36 = vadd.f32 %v4983_v33, %v4982_v30 }
 0x32f   :  { %v4985_v37 = vpop.f32.mrf.mxu1 }
 0x330   :  { %v1278_v39 = vadd.f32 %v4984_v36, %v1203_v34  ;;  %v192_v36 = vld [vmem:[%s6251_s11 + $0x78] sm:$0xff] }
 0x331   :  { %v4986_v42 = vpop.f32.mrf.mxu1 }
 0x332   :  { %v1353_v61 = vadd.f32 %v5022_v38, %v1278_v39  ;;  %v4987_v44 = vadd.f32 %v4986_v42, %v4985_v37  ;;  %v191_v38 = vld [vmem:[%s6251_s11 + $0x70] sm:$0xff] }
 0x334   :  { %v1283_v46 = vadd.f32 %v4987_v44, %v1208_v43  ;;  %5448 = vmatprep.mubr.msk.f32.mxu1 %vm1361_vm7, %v1353_v61  ;;  %v190_v43 = vld [vmem:[%s6251_s11 + $0x68] sm:$0xff]  ;;  %v189_v44 = vld [vmem:[%s6251_s11 + $0x60] sm:$0xff] }
 0x336   :  { %v1358_v40 = vadd.f32 %v5025_v45, %v1283_v46  ;;  %v188_v46 = vld [vmem:[%s6251_s11 + $0x58] sm:$0xff] }
 0x338   :  { %5449 = vmatmul.mubr.msk.f32.vlgmr.msra.gmra.mxu1 %vm1361_vm7, %v1358_v40 }
 0x339   :  { %5452 = vmatpush3.msk.msra.mxu1 %vm315_vm0, %v294_v24  ;;  %5455 = vmatprep.mubr.msk.f32.mxu1 %vm308_vm1, %v5750_v48  ;;  %vm1537_vm0 = vcmask 261120  }
 0x33a   :  { %5453 = vmatprep.subr.mxu1 %v293_v47 }
 0x33b   :  { %5454 = vmatpush3.msra.mxu1 %v293_v47  ;;  %v187_v47 = vld [vmem:[%s6251_s11 + $0x50] sm:$0xff] }
 0x33c   :  { %5456 = vmatmul.mubr.msk.f32.vlgmr.msra.gmra.mxu1 %vm308_vm1, %v5751_v49  ;;  %5458 = vmatprep.subr.mxu1 %v300_v50  ;;  %vm1976_vm1 = vcmask 523264   ;;  %v186_v49 = vld [vmem:[%s6251_s11 + $0x48] sm:$0xff] }
 0x33d   :  { %5459 = vmatpush3.msra.mxu1 %v300_v50 }
 0x33e   :  { %5460 = vmatprep.subr.mxu1 %v299_v52 }
 0x33f   :  { %5461 = vmatpush3.msra.mxu1 %v299_v52  ;;  %v185_v52 = vld [vmem:[%s6251_s11 + $0x40] sm:$0xff] }
 0x340   :  { %5462 = vmatprep.subr.mxu1 %v298_v53 }
 0x341   :  { %5463 = vmatpush3.msra.mxu1 %v298_v53 }
 0x342   :  { %5464 = vmatprep.subr.mxu1 %v297_v54 }
 0x343   :  { %5465 = vmatpush3.msra.mxu1 %v297_v54  ;;  %v184_v54 = vld [vmem:[%s6251_s11 + $0x38] sm:$0xff] }
 0x344   :  { %5469 = vmatprep.subr.mxu1 %v1621_v6 }
 0x3f8   :  { %v5450_v56 = vpop.f32.mrf.mxu1 }
 0x3fa   :  { %v1434_v4 = vpop.f32.mrf.mxu1 }
 0x3fc   :  { %v5457_v55 = vpop.f32.mrf.mxu1 }
 0x3fd   :  { %v1518_v62 = vadd.f32 %v5457_v55, %v5450_v56 }
 0x3fe   :  { %v1512_v0 = vpop.f32.mrf.mxu1 }
 0x3ff   :  { %v1513_v1 = vadd.f32 %v1512_v0, %v1434_v4  ;;  %v1528_v2 = vadd.f32 %v4738_v59, %v1518_v62  ;;  %v183_v4 = vld [vmem:[%s6251_s11 + $0x30] sm:$0xff]  ;;  %v181_v0 = vld [vmem:[%s6251_s11 + $0x20] sm:$0xff] }
 0x401   :  { %v1527_v51 = vadd.f32 %v4738_v59, %v1513_v1  ;;  %v1530_v5 = vmax.f32 %v1528_v2, 0.0  ;;  %v182_v59 = vld [vmem:[%s6251_s11 + $0x28] sm:$0xff]  ;;  %v180_v2 = vld [vmem:[%s6251_s11 + $0x18] sm:$0xff] }
 0x403   :  { %v1529_v3 = vmax.f32 %v1527_v51, 0.0 }
 0x405   :  { %5466 = vmatprep.mubr.msk.f32.mxu1 %vm1537_vm0, %v1529_v3  ;;  %v179_v3 = vld [vmem:[%s6251_s11 + $0x10] sm:$0xff] }
 0x406   :  { %5467 = vmatmul.mubr.msk.f32.vlgmr.msra.gmra.mxu1 %vm1537_vm0, %v1530_v5 }
 0x407   :  { %5470 = vmatpush3.msra.mxu1 %v1621_v6  ;;  %v178_v6 = vld [vmem:[%s6251_s11 + $0x8] sm:$0xff] }
 0x408   :  { %5474 = vmatprep.subr.mxu1 %v176_v7 }
 0x4c6   :  { %v5468_v9 = vpop.f32.mrf.mxu1 }
 0x4c7   :  { %v1616_v10 = vadd.f32 %v5468_v9, %v4739_v8 }
 0x4c8   :  { %v1610_v13 = vpop.f32.mrf.mxu1 }
 0x4c9   :  { %v1611_v15 = vadd.f32 %v4739_v8, %v1610_v13  ;;  %v6196_v60 = vmax.f32 %v1616_v10, 0.0  ;;  %v177_v8 = vld [vmem:[%s6251_s11] sm:$0xff]  ;;  %v1654_v10 = vld [vmem:[%s6310_s15 + $0xf8] sm:$0xff] }
 0x4ca   :  { %5077 = vmatprep.subr.mxu0 %v1654_v10  ;;  %v1638_v13 = vld [vmem:[%s6310_s15 + $0x78] sm:$0xff]  ;;  %v1691_v10 = vld [vmem:[%s6310_s15 + $0x220] sm:$0xff] }
 0x4cb   :  { %v6194_v17 = vmax.f32 %v1611_v15, 0.0  ;;  %5078 = vmatpush3.msra.mxu0 %v1638_v13  ;;  %v1653_v15 = vld [vmem:[%s6310_s15 + $0xf0] sm:$0xff]  ;;  %v1706_v13 = vld [vmem:[%s6310_s15 + $0x298] sm:$0xff] }
 0x4cc   :  { %5079 = vmatprep.subr.mxu0 %v1653_v15  ;;  %v1690_v15 = vld [vmem:[%s6310_s15 + $0x218] sm:$0xff] }
 0x4cd   :  { %5471 = vmatprep.mubr.msk.f32.mxu1 %vm1361_vm7, %v6194_v17 }
 0x4ce   :  { %5472 = vmatmul.mubr.msk.f32.vlgmr.msra.gmra.mxu1 %vm1361_vm7, %v6196_v60 }
 0x4cf   :  { %5475 = vmatpush3.msra.mxu1 %v176_v7  ;;  %5476 = vmatprep.mubr.msk.f32.mxu1 %vm1361_vm7, %v6194_v17 }
 0x4d2   :  { %5477 = vmatmul.mubr.msk.f32.vlgmr.msra.gmra.mxu1 %vm1361_vm7, %v6196_v60 }
 0x4d3   :  { %5479 = vmatprep.mubr.msk.f32.mxu1 %vm1361_vm7, %v6194_v17 }
 0x4d6   :  { %5480 = vmatmul.mubr.msk.f32.gmra.mxu1 %vm1361_vm7, %v6196_v60 }
 0x4d7   :  { %5482 = vmatprep.mubr.msk.f32.mxu1 %vm1361_vm7, %v6194_v17 }
 0x4da   :  { %5483 = vmatmul.mubr.msk.f32.gmra.mxu1 %vm1361_vm7, %v6196_v60 }
 0x4db   :  { %5485 = vmatprep.mubr.msk.f32.mxu1 %vm1361_vm7, %v6194_v17 }
 0x4de   :  { %5486 = vmatmul.mubr.msk.f32.gmra.mxu1 %vm1361_vm7, %v6196_v60 }
 0x4df   :  { %5488 = vmatprep.mubr.msk.f32.mxu1 %vm1361_vm7, %v6194_v17 }
 0x4e2   :  { %5489 = vmatmul.mubr.msk.f32.gmra.mxu1 %vm1361_vm7, %v6196_v60 }
 0x4e3   :  { %5491 = vmatprep.mubr.msk.f32.mxu1 %vm1361_vm7, %v6194_v17 }
 0x4e6   :  { %5492 = vmatmul.mubr.msk.f32.gmra.mxu1 %vm1361_vm7, %v6196_v60 }
 0x4e7   :  { %5494 = vmatprep.mubr.msk.f32.mxu1 %vm1361_vm7, %v6194_v17 }
 0x4ea   :  { %5495 = vmatmul.mubr.msk.f32.gmra.mxu1 %vm1361_vm7, %v6196_v60 }
 0x4eb   :  { %5497 = vmatprep.mubr.msk.f32.mxu1 %vm1361_vm7, %v6194_v17 }
 0x4ee   :  { %5498 = vmatmul.mubr.msk.f32.gmra.mxu1 %vm1361_vm7, %v6196_v60 }
 0x58e   :  { %v5473_v20 = vpop.f32.mrf.mxu1 }
 0x58f   :  { %v6237_v57 = vadd.f32 %v5473_v20, %v4742_v18  ;;  %v1652_v20 = vld [vmem:[%s6310_s15 + $0xe8] sm:$0xff] }
 0x590   :  { %v1806_v58 = vpop.f32.mrf.mxu1 }
 0x591   :  { %v1807_v12 = vadd.f32 %v4742_v18, %v1806_v58  ;;  %v1637_v18 = vld [vmem:[%s6310_s15 + $0x70] sm:$0xff]  ;;  %v1651_v58 = vld [vmem:[%s6310_s15 + $0xe0] sm:$0xff] }
 0x592   :  { %v6239_v24 = vpop.f32.mrf.mxu1  ;;  %5080 = vmatpush3.msra.mxu0 %v1637_v18  ;;  %v1705_v18 = vld [vmem:[%s6310_s15 + $0x290] sm:$0xff] }
 0x593   :  { %5532 = vmatprep.mubr.msk.f32.mxu1 %vm1976_vm1, %v1807_v12  ;;  %v1961_v7 = vmul.f32 %v6239_v24, %v178_v6  ;;  %5081 = vmatprep.subr.mxu0 %v1652_v20  ;;  %v1635_v12 = vld [vmem:[%s6310_s15 + $0x60] sm:$0xff]  ;;  %v1650_v24 = vld [vmem:[%s6310_s15 + $0xd8] sm:$0xff]  ;;  %v1689_v20 = vld [vmem:[%s6310_s15 + $0x210] sm:$0xff] }
 0x594   :  { %v6242_v11 = vpop.f32.mrf.mxu1  ;;  %v1623_v6 = vld [vmem:[%s6310_s15] sm:$0xff] }
 0x595   :  { %v1960_v9 = vmul.f32 %v6242_v11, %v177_v8  ;;  %v1634_v11 = vld [vmem:[%s6310_s15 + $0x58] sm:$0xff]  ;;  %v1692_v8 = vld [vmem:[%s6310_s15 + $0x228] sm:$0xff] }
 0x596   :  { %v6244_v22 = vpop.f32.mrf.mxu1 }
 0x597   :  { %v1963_v51 = vmul.f32 %v6244_v22, %v180_v2  ;;  %v1649_v22 = vld [vmem:[%s6310_s15 + $0xd0] sm:$0xff] }
 0x598   :  { %v6246_v26 = vpop.f32.mrf.mxu1  ;;  %v1693_v2 = vld [vmem:[%s6310_s15 + $0x230] sm:$0xff] }
 0x599   :  { %v1962_v5 = vmul.f32 %v6246_v26, %v179_v3  ;;  %v1633_v26 = vld [vmem:[%s6310_s15 + $0x50] sm:$0xff]  ;;  %v1708_v3 = vld [vmem:[%s6310_s15 + $0x2a8] sm:$0xff] }
 0x59a   :  { %v5484_v27 = vpop.f32.mrf.mxu1 }
 0x59b   :  { %v1965_v62 = vmul.f32 %v5484_v27, %v182_v59  ;;  %v1718_v27 = vld [vmem:[%s6310_s15 + $0x2f8] sm:$0xff] }
 0x59c   :  { %v1901_v28 = vpop.f32.mrf.mxu1  ;;  %v1694_v59 = vld [vmem:[%s6310_s15 + $0x238] sm:$0xff] }
 0x59d   :  { %v1964_v1 = vmul.f32 %v1901_v28, %v181_v0  ;;  %v1648_v28 = vld [vmem:[%s6310_s15 + $0xc8] sm:$0xff]  ;;  %v1709_v0 = vld [vmem:[%s6310_s15 + $0x2b0] sm:$0xff] }
 0x59e   :  { %v5487_v63 = vpop.f32.mrf.mxu1 }
 0x59f   :  { %v1967_v56 = vmul.f32 %v5487_v63, %v184_v54  ;;  %v1702_v63 = vld [vmem:[%s6310_s15 + $0x278] sm:$0xff]  ;;  %v1695_v54 = vld [vmem:[%s6310_s15 + $0x240] sm:$0xff] }
 0x5a0   :  { %v1911_v14 = vpop.f32.mrf.mxu1 }
 0x5a1   :  { %v1966_v55 = vmul.f32 %v1911_v14, %v183_v4  ;;  %v1717_v14 = vld [vmem:[%s6310_s15 + $0x2f0] sm:$0xff]  ;;  %v1710_v4 = vld [vmem:[%s6310_s15 + $0x2b8] sm:$0xff] }
 0x5a2   :  { %v5490_v29 = vpop.f32.mrf.mxu1 }
 0x5a3   :  { %v1969_v50 = vmul.f32 %v5490_v29, %v186_v49  ;;  %v1632_v29 = vld [vmem:[%s6310_s15 + $0x48] sm:$0xff] }
 0x5a4   :  { %v1921_v30 = vpop.f32.mrf.mxu1  ;;  %v1696_v49 = vld [vmem:[%s6310_s15 + $0x248] sm:$0xff] }
 0x5a5   :  { %v1968_v53 = vmul.f32 %v1921_v30, %v185_v52  ;;  %v1701_v30 = vld [vmem:[%s6310_s15 + $0x270] sm:$0xff]  ;;  %v1711_v52 = vld [vmem:[%s6310_s15 + $0x2c0] sm:$0xff] }
 0x5a6   :  { %v5493_v31 = vpop.f32.mrf.mxu1 }
 0x5a7   :  { %v1971_v40 = vmul.f32 %v5493_v31, %v188_v46  ;;  %v1647_v31 = vld [vmem:[%s6310_s15 + $0xc0] sm:$0xff]  ;;  %v1697_v46 = vld [vmem:[%s6310_s15 + $0x250] sm:$0xff] }
 0x5a8   :  { %v1931_v33 = vpop.f32.mrf.mxu1 }
 0x5a9   :  { %v1970_v48 = vmul.f32 %v1931_v33, %v187_v47  ;;  %v1716_v33 = vld [vmem:[%s6310_s15 + $0x2e8] sm:$0xff] }
 0x5aa   :  { %v5496_v34 = vpop.f32.mrf.mxu1  ;;  %v1712_v47 = vld [vmem:[%s6310_s15 + $0x2c8] sm:$0xff] }
 0x5ab   :  { %v1973_v61 = vmul.f32 %v5496_v34, %v190_v43  ;;  %v1700_v34 = vld [vmem:[%s6310_s15 + $0x268] sm:$0xff]  ;;  %v1698_v43 = vld [vmem:[%s6310_s15 + $0x258] sm:$0xff] }
 0x5ac   :  { %v1941_v35 = vpop.f32.mrf.mxu1 }
 0x5ad   :  { %v1972_v45 = vmul.f32 %v1941_v35, %v189_v44  ;;  %v1631_v35 = vld [vmem:[%s6310_s15 + $0x40] sm:$0xff]  ;;  %v1713_v44 = vld [vmem:[%s6310_s15 + $0x2d0] sm:$0xff] }
 0x5ae   :  { %v5499_v37 = vpop.f32.mrf.mxu1 }
 0x5af   :  { %v1975_v39 = vmul.f32 %v5499_v37, %v192_v36  ;;  %v1715_v36 = vld [vmem:[%s6310_s15 + $0x2e0] sm:$0xff]  ;;  %v1646_v37 = vld [vmem:[%s6310_s15 + $0xb8] sm:$0xff] }
 0x5b0   :  { %v1951_v41 = vpop.f32.mrf.mxu1 }
 0x5b1   :  { %v1974_v42 = vmul.f32 %v1951_v41, %v191_v38  ;;  %5500 = vmatprep.subr.msk.mxu1 %vm1976_vm1, %v1975_v39  ;;  %v1699_v38 = vld [vmem:[%s6310_s15 + $0x260] sm:$0xff]  ;;  %v1714_v41 = vld [vmem:[%s6310_s15 + $0x2d8] sm:$0xff] }
 0x5b2   :  { %5501 = vmatpush3.xpose.msk.msra.mxu1 %vm1976_vm1, %v1975_v39  ;;  %v1630_v39 = vld [vmem:[%s6310_s15 + $0x38] sm:$0xff] }
 0x5b3   :  { %5502 = vmatprep.subr.msk.mxu1 %vm1976_vm1, %v1974_v42 }
 0x5b6   :  { %5503 = vmatpush3.xpose.msk.msra.mxu1 %vm1976_vm1, %v1974_v42  ;;  %v1645_v42 = vld [vmem:[%s6310_s15 + $0xb0] sm:$0xff] }
 0x5b7   :  { %5504 = vmatprep.subr.msk.mxu1 %vm1976_vm1, %v1973_v61 }
 0x5ba   :  { %5505 = vmatpush3.xpose.msk.msra.mxu1 %vm1976_vm1, %v1973_v61  ;;  %v1629_v61 = vld [vmem:[%s6310_s15 + $0x30] sm:$0xff] }
 0x5bb   :  { %5506 = vmatprep.subr.msk.mxu1 %vm1976_vm1, %v1972_v45 }
 0x5be   :  { %5507 = vmatpush3.xpose.msk.msra.mxu1 %vm1976_vm1, %v1972_v45  ;;  %v1644_v45 = vld [vmem:[%s6310_s15 + $0xa8] sm:$0xff] }
 0x5bf   :  { %5508 = vmatprep.subr.msk.mxu1 %vm1976_vm1, %v1971_v40 }
 0x5c2   :  { %5509 = vmatpush3.xpose.msk.msra.mxu1 %vm1976_vm1, %v1971_v40  ;;  %v1628_v40 = vld [vmem:[%s6310_s15 + $0x28] sm:$0xff] }
 0x5c3   :  { %5510 = vmatprep.subr.msk.mxu1 %vm1976_vm1, %v1970_v48 }
 0x5c6   :  { %5511 = vmatpush3.xpose.msk.msra.mxu1 %vm1976_vm1, %v1970_v48  ;;  %v1643_v48 = vld [vmem:[%s6310_s15 + $0xa0] sm:$0xff] }
 0x5c7   :  { %5512 = vmatprep.subr.msk.mxu1 %vm1976_vm1, %v1969_v50 }
 0x5ca   :  { %5513 = vmatpush3.xpose.msk.msra.mxu1 %vm1976_vm1, %v1969_v50  ;;  %v1627_v50 = vld [vmem:[%s6310_s15 + $0x20] sm:$0xff] }
 0x5cb   :  { %5514 = vmatprep.subr.msk.mxu1 %vm1976_vm1, %v1968_v53 }
 0x5ce   :  { %5515 = vmatpush3.xpose.msk.msra.mxu1 %vm1976_vm1, %v1968_v53  ;;  %v1642_v53 = vld [vmem:[%s6310_s15 + $0x98] sm:$0xff] }
 0x5cf   :  { %5516 = vmatprep.subr.msk.mxu1 %vm1976_vm1, %v1967_v56 }
 0x5d2   :  { %5517 = vmatpush3.xpose.msk.msra.mxu1 %vm1976_vm1, %v1967_v56  ;;  %v1626_v56 = vld [vmem:[%s6310_s15 + $0x18] sm:$0xff] }
 0x5d3   :  { %5518 = vmatprep.subr.msk.mxu1 %vm1976_vm1, %v1966_v55 }
 0x5d6   :  { %5519 = vmatpush3.xpose.msk.msra.mxu1 %vm1976_vm1, %v1966_v55  ;;  %v1641_v55 = vld [vmem:[%s6310_s15 + $0x90] sm:$0xff] }
 0x5d7   :  { %5520 = vmatprep.subr.msk.mxu1 %vm1976_vm1, %v1965_v62 }
 0x5da   :  { %5521 = vmatpush3.xpose.msk.msra.mxu1 %vm1976_vm1, %v1965_v62  ;;  %v1625_v62 = vld [vmem:[%s6310_s15 + $0x10] sm:$0xff] }
 0x5db   :  { %5522 = vmatprep.subr.msk.mxu1 %vm1976_vm1, %v1964_v1 }
 0x5de   :  { %5523 = vmatpush3.xpose.msk.msra.mxu1 %vm1976_vm1, %v1964_v1  ;;  %v1640_v1 = vld [vmem:[%s6310_s15 + $0x88] sm:$0xff] }
 0x5df   :  { %5524 = vmatprep.subr.msk.mxu1 %vm1976_vm1, %v1963_v51 }
 0x5e2   :  { %5525 = vmatpush3.xpose.msk.msra.mxu1 %vm1976_vm1, %v1963_v51  ;;  %v1624_v51 = vld [vmem:[%s6310_s15 + $0x8] sm:$0xff] }
 0x5e3   :  { %5526 = vmatprep.subr.msk.mxu1 %vm1976_vm1, %v1962_v5 }
 0x5e6   :  { %5527 = vmatpush3.xpose.msk.msra.mxu1 %vm1976_vm1, %v1962_v5  ;;  %v1639_v5 = vld [vmem:[%s6310_s15 + $0x80] sm:$0xff] }
 0x5e7   :  { %5528 = vmatprep.subr.msk.mxu1 %vm1976_vm1, %v1961_v7 }
 0x5ea   :  { %5529 = vmatpush3.xpose.msk.msra.mxu1 %vm1976_vm1, %v1961_v7  ;;  %v1686_v7 = vld [vmem:[%s6310_s15 + $0x1f8] sm:$0xff] }
 0x5eb   :  { %5530 = vmatprep.subr.msk.mxu1 %vm1976_vm1, %v1960_v9 }
 0x5ee   :  { %5531 = vmatpush3.xpose.msk.msra.mxu1 %vm1976_vm1, %v1960_v9  ;;  %v1707_v9 = vld [vmem:[%s6310_s15 + $0x2a0] sm:$0xff] }
 0x5ef   :  { %5153 = vmatprep.subr.mxu1 %v1718_v27 }
 0x5f1   :  { %5533 = vmatmul.mubr.msk.f32.vlgmr.msra.gmra.mxu1 %vm1976_vm1, %v6237_v57  ;;  %v1636_v57 = vld [vmem:[%s6310_s15 + $0x68] sm:$0xff] }
 0x5f2   :  { %5082 = vmatpush3.msra.mxu0 %v1636_v57  ;;  %5154 = vmatpush3.msra.mxu1 %v1702_v63  ;;  %v1704_v57 = vld [vmem:[%s6310_s15 + $0x288] sm:$0xff] }
 0x5f3   :  { %5083 = vmatprep.subr.mxu0 %v1651_v58  ;;  %5155 = vmatprep.subr.mxu1 %v1717_v14  ;;  %v1688_v58 = vld [vmem:[%s6310_s15 + $0x208] sm:$0xff] }
 0x5f4   :  { %5084 = vmatpush3.msra.mxu0 %v1635_v12  ;;  %5156 = vmatpush3.msra.mxu1 %v1701_v30  ;;  %v1703_v12 = vld [vmem:[%s6310_s15 + $0x280] sm:$0xff] }
 0x5f5   :  { %5085 = vmatprep.subr.mxu0 %v1650_v24  ;;  %5157 = vmatprep.subr.mxu1 %v1716_v33  ;;  %v1687_v24 = vld [vmem:[%s6310_s15 + $0x200] sm:$0xff] }
 0x5f6   :  { %5086 = vmatpush3.msra.mxu0 %v1634_v11  ;;  %5158 = vmatpush3.msra.mxu1 %v1700_v34 }
 0x5f7   :  { %5087 = vmatprep.subr.mxu0 %v1649_v22  ;;  %5159 = vmatprep.subr.mxu1 %v1715_v36 }
 0x5f8   :  { %5088 = vmatpush3.msra.mxu0 %v1633_v26  ;;  %5160 = vmatpush3.msra.mxu1 %v1699_v38 }
 0x5f9   :  { %5089 = vmatprep.subr.mxu0 %v1648_v28  ;;  %5161 = vmatprep.subr.mxu1 %v1714_v41 }
 0x5fa   :  { %5090 = vmatpush3.msra.mxu0 %v1632_v29  ;;  %5162 = vmatpush3.msra.mxu1 %v1698_v43 }
 0x5fb   :  { %5091 = vmatprep.subr.mxu0 %v1647_v31  ;;  %5163 = vmatprep.subr.mxu1 %v1713_v44 }
 0x5fc   :  { %5092 = vmatpush3.msra.mxu0 %v1631_v35  ;;  %5164 = vmatpush3.msra.mxu1 %v1697_v46 }
 0x5fd   :  { %5093 = vmatprep.subr.mxu0 %v1646_v37  ;;  %5165 = vmatprep.subr.mxu1 %v1712_v47 }
 0x5fe   :  { %5094 = vmatpush3.msra.mxu0 %v1630_v39  ;;  %5166 = vmatpush3.msra.mxu1 %v1696_v49 }
 0x5ff   :  { %5095 = vmatprep.subr.mxu0 %v1645_v42  ;;  %5167 = vmatprep.subr.mxu1 %v1711_v52 }
 0x600   :  { %5096 = vmatpush3.msra.mxu0 %v1629_v61  ;;  %5168 = vmatpush3.msra.mxu1 %v1695_v54 }
 0x601   :  { %5097 = vmatprep.subr.mxu0 %v1644_v45  ;;  %5169 = vmatprep.subr.mxu1 %v1710_v4 }
 0x602   :  { %5098 = vmatpush3.msra.mxu0 %v1628_v40  ;;  %5170 = vmatpush3.msra.mxu1 %v1694_v59 }
 0x603   :  { %5099 = vmatprep.subr.mxu0 %v1643_v48  ;;  %5171 = vmatprep.subr.mxu1 %v1709_v0 }
 0x604   :  { %5100 = vmatpush3.msra.mxu0 %v1627_v50  ;;  %5172 = vmatpush3.msra.mxu1 %v1693_v2 }
 0x605   :  { %5101 = vmatprep.subr.mxu0 %v1642_v53  ;;  %5173 = vmatprep.subr.mxu1 %v1708_v3 }
 0x606   :  { %5102 = vmatpush3.msra.mxu0 %v1626_v56  ;;  %5174 = vmatpush3.msra.mxu1 %v1692_v8 }
 0x607   :  { %5103 = vmatprep.subr.mxu0 %v1641_v55  ;;  %5175 = vmatprep.subr.mxu1 %v1707_v9 }
 0x608   :  { %5104 = vmatpush3.msra.mxu0 %v1625_v62  ;;  %5176 = vmatpush3.msra.mxu1 %v1691_v10 }
 0x609   :  { %5105 = vmatprep.subr.mxu0 %v1640_v1  ;;  %5177 = vmatprep.subr.mxu1 %v1706_v13 }
 0x60a   :  { %5106 = vmatpush3.msra.mxu0 %v1624_v51  ;;  %5178 = vmatpush3.msra.mxu1 %v1690_v15 }
 0x60b   :  { %5107 = vmatprep.subr.mxu0 %v1639_v5  ;;  %5179 = vmatprep.subr.mxu1 %v1705_v18 }
 0x60c   :  { %5108 = vmatpush3.msra.mxu0 %v1623_v6  ;;  %5180 = vmatpush3.msra.mxu1 %v1689_v20 }
 0x60d   :  { %5115 = vmatprep.subr.mxu0 %v1686_v7  ;;  %5181 = vmatprep.subr.mxu1 %v1704_v57 }
 0x60e   :  { %5182 = vmatpush3.msra.mxu1 %v1688_v58 }
 0x60f   :  { %5183 = vmatprep.subr.mxu1 %v1703_v12 }
 0x610   :  { %5184 = vmatpush3.msra.mxu1 %v1687_v24 }
 0x6b1   :  { %v6377_v11 = vpop.f32.mrf.mxu1 }
 0x6b2   :  { %v2210_v22 = vand.u32 2147483647, %v6377_v11  ;;  %v2213_v26 = vand.u32 2139095040, %v6377_v11 }
 0x6b3   :  { %v6381_v27 = vpop.f32.mrf.mxu1 }
 0x6b4   :  { %v2214_v28 = vshrl.u32 %v2213_v26, 23  ;;  %v2217_v63 = vand.u32 8388607, %v2210_v22  ;;  %v2109_v14 = vand.u32 2139095040, %v6381_v27  ;;  %v2106_v30 = vand.u32 2147483647, %v6381_v27 }
 0x6b6   :  { %v4783_v29 = vadd.s32 4294967169, %v2214_v28  ;;  %v2110_v31 = vshrl.u32 %v2109_v14, 23  ;;  %v2218_v34 = vor.u32 8388608, %v2217_v63  ;;  %v2113_v36 = vand.u32 8388607, %v2106_v30 }
 0x6b8   :  { %v2220_v33 = vadd.s32 1, %v4783_v29  ;;  %v4779_v35 = vadd.s32 4294967169, %v2110_v31  ;;  %v6389_v42 = vshll.u32 %v2218_v34, 8  ;;  %v2114_v44 = vor.u32 8388608, %v2113_v36 }
 0x6ba   :  { %vm2221_vm8 = vcmp.gt.s32.totalorder %v2220_v33, 0  ;;  %v2116_v38 = vadd.s32 1, %v4779_v35  ;;  %v2154_v15 = vshll.u32 %v2114_v44, 8 }
 0x6bb   :  { %v2222_v37 = vsel %vm2221_vm8, %v2220_v33, 0 }
 0x6bc   :  { %v2223_v39 = vshrl.u32 %v2222_v37, 5  ;;  %v2224_v41 = vand.u32 31, %v2222_v37  ;;  %vm2117_vm9 = vcmp.gt.s32.totalorder %v2116_v38, 0 }
 0x6bd   :  { %v2118_v59 = vsel %vm2117_vm9, %v2116_v38, 0  ;;  %vm2212_vm9 = vcmp.lt.s32.totalorder %v6377_v11, 0 }
 0x6be   :  { %v2225_v43 = vsub.s32 32, %v2224_v41  ;;  %v2227_v61 = vshll.u32 %v5778_v16, %v2224_v41  ;;  %v2230_v45 = vshll.u32 %v5779_v19, %v2224_v41  ;;  %v2233_v46 = vshll.u32 %v5780_v21, %v2224_v41 }
 0x6bf   :  { %v2236_v40 = vshll.u32 %v5781_v23, %v2224_v41  ;;  %v2239_v47 = vshll.u32 %v5782_v25, %v2224_v41  ;;  %vm2242_vm10 = vcmp.lt.s32.totalorder %v2223_v39, 1  ;;  %vm2244_vm11 = vcmp.lt.s32.totalorder %v2223_v39, 3 }
 0x6c0   :  { %v2228_v48 = vshrl.u32 %v5779_v19, %v2225_v43  ;;  %v2231_v49 = vshrl.u32 %v5780_v21, %v2225_v43  ;;  %v2234_v50 = vshrl.u32 %v5781_v23, %v2225_v43  ;;  %v2226_v52 = vshrl.u32 %v5778_v16, %v2225_v43 }
 0x6c1   :  { %v2237_v53 = vshrl.u32 %v5782_v25, %v2225_v43  ;;  %v2240_v54 = vshrl.u32 %v5783_v32, %v2225_v43  ;;  %vm2245_vm12 = vcmp.lt.s32.totalorder %v2223_v39, 4  ;;  %v2120_v1 = vand.u32 31, %v2118_v59 }
 0x6c2   :  { %v2229_v56 = vor.u32 %v2228_v48, %v2227_v61  ;;  %v2232_v4 = vor.u32 %v2231_v49, %v2230_v45  ;;  %v2235_v55 = vor.u32 %v2234_v50, %v2233_v46  ;;  %vm2243_vm13 = vcmp.lt.s32.totalorder %v2223_v39, 2 }
 0x6c3   :  { %v2238_v62 = vor.u32 %v2237_v53, %v2236_v40  ;;  %v2241_v0 = vor.u32 %v2240_v54, %v2239_v47  ;;  %v2121_v9 = vsub.s32 32, %v2120_v1  ;;  %v2119_v58 = vshrl.u32 %v2118_v59, 5 }
 0x6c4   :  { %v2246_v2 = vsel %vm2242_vm10, %v2226_v52, %v2229_v56  ;;  %v2247_v51 = vsel %vm2245_vm12, %v2235_v55, 2102212464  ;;  %v2250_v3 = vsel %vm2242_vm10, %v2229_v56, %v2232_v4  ;;  %v2254_v5 = vsel %vm2242_vm10, %v2232_v4, %v2235_v55 }
 0x6c5   :  { %v2248_v6 = vsel %vm2244_vm11, %v2232_v4, %v2247_v51  ;;  %v2251_v7 = vsel %vm2245_vm12, %v2238_v62, 920167782  ;;  %v2255_v8 = vsel %vm2245_vm12, %v2241_v0, 1326507024  ;;  %v2123_v63 = vshll.u32 %v5778_v16, %v2120_v1 }
 0x6c6   :  { %v2252_v10 = vsel %vm2244_vm11, %v2235_v55, %v2251_v7  ;;  %v2256_v13 = vsel %vm2244_vm11, %v2238_v62, %v2255_v8  ;;  %v2249_v18 = vsel %vm2243_vm13, %v2246_v2, %v2248_v6  ;;  %v2124_v14 = vshrl.u32 %v5779_v19, %v2121_v9 }
 0x6c7   :  { %v2253_v20 = vsel %vm2243_vm13, %v2250_v3, %v2252_v10  ;;  %v2257_v57 = vsel %vm2243_vm13, %v2254_v5, %v2256_v13  ;;  %v2126_v29 = vshll.u32 %v5779_v19, %v2120_v1  ;;  %v2127_v31 = vshrl.u32 %v5780_v21, %v2121_v9 }
 0x6c8   :  { %v6410_v12 = vmul.u32.u64.low %v6389_v42, %v2257_v57  ;;  %v6411_v24 = vmul.u32.u64.high %v6389_v42, %v2257_v57, %v6410_v12  ;;  %v6414_v26 = vmul.u32.u64.low %v6389_v42, %v2253_v20  ;;  %v6415_v28 = vmul.u32.u64.high %v6389_v42, %v2253_v20, %v6414_v26 }
 0x6c9   :  { %v2129_v33 = vshll.u32 %v5780_v21, %v2120_v1  ;;  %v2130_v34 = vshrl.u32 %v5781_v23, %v2121_v9  ;;  %v2132_v35 = vshll.u32 %v5781_v23, %v2120_v1  ;;  %v2133_v36 = vshrl.u32 %v5782_v25, %v2121_v9 }
 0x6ca   :  { %v2125_v37 = vor.u32 %v2124_v14, %v2123_v63  ;;  %v2128_v38 = vor.u32 %v2127_v31, %v2126_v29  ;;  %v2135_v39 = vshll.u32 %v5782_v25, %v2120_v1  ;;  %v2136_v41 = vshrl.u32 %v5783_v32, %v2121_v9 }
 0x6cb   :  { %v2265_v43 = vmul.u32 %v6389_v42, %v2249_v18  ;;  %vm2267_vm14 = vc.u32 %v6411_v24, %v6414_v26  ;;  %v2268_v61 = vadd.s32 1, %v6415_v28  ;;  %v2131_v44 = vor.u32 %v2130_v34, %v2129_v33 }
 0x6cc   :  { %v2122_v45 = vshrl.u32 %v5778_v16, %v2121_v9  ;;  %v2134_v46 = vor.u32 %v2133_v36, %v2132_v35  ;;  %v2137_v40 = vor.u32 %v2136_v41, %v2135_v39  ;;  %vm2138_vm15 = vcmp.lt.s32.totalorder %v2119_v58, 1 }
 0x6cd   :  { %v2269_v47 = vsel %vm2267_vm14, %v2268_v61, %v6415_v28  ;;  %vm2140_vm2 = vcmp.lt.s32.totalorder %v2119_v58, 3  ;;  %vm2141_vm3 = vcmp.lt.s32.totalorder %v2119_v58, 4  ;;  %v2146_v48 = vsel %vm2138_vm15, %v2125_v37, %v2128_v38 }
 0x6ce   :  { %v2270_v49 = vadd.s32 %v2269_v47, %v2265_v43  ;;  %v2143_v50 = vsel %vm2141_vm3, %v2131_v44, 2102212464  ;;  %v2147_v52 = vsel %vm2141_vm3, %v2134_v46, 920167782  ;;  %v2150_v42 = vsel %vm2138_vm15, %v2128_v38, %v2131_v44 }
 0x6cf   :  { %vm2139_vm4 = vcmp.lt.s32.totalorder %v2119_v58, 2  ;;  %v2142_v53 = vsel %vm2138_vm15, %v2122_v45, %v2125_v37  ;;  %v2148_v54 = vsel %vm2140_vm2, %v2131_v44, %v2147_v52  ;;  %v2151_v56 = vsel %vm2141_vm3, %v2137_v40, 1326507024 }
 0x6d0   :  { %v2271_v4 = vadd.s32 536870912, %v2270_v49  ;;  %v2144_v55 = vsel %vm2140_vm2, %v2128_v38, %v2143_v50  ;;  %v2149_v59 = vsel %vm2139_vm4, %v2146_v48, %v2148_v54  ;;  %v2152_v62 = vsel %vm2140_vm2, %v2134_v46, %v2151_v56 }
 0x6d1   :  { %v2153_v0 = vsel %vm2139_vm4, %v2150_v42, %v2152_v62  ;;  %v6434_v1 = vmul.u32.u64.low %v2154_v15, %v2149_v59  ;;  %v6435_v2 = vmul.u32.u64.high %v2154_v15, %v2149_v59, %v6434_v1  ;;  %v2145_v6 = vsel %vm2139_vm4, %v2142_v53, %v2144_v55 }
 0x6d2   :  { %v2272_v51 = vshrl.u32 %v2271_v4, 30  ;;  %v6437_v3 = vmul.u32.u64.low %v2154_v15, %v2153_v0  ;;  %v6438_v5 = vmul.u32.u64.high %v2154_v15, %v2153_v0, %v6437_v3  ;;  %v2161_v10 = vmul.u32 %v2154_v15, %v2145_v6 }
 0x6d3   :  { %v2164_v8 = vadd.s32 1, %v6435_v2  ;;  %v2266_v33 = vadd.s32 %v6414_v26, %v6411_v24  ;;  %vm2211_vm10 = vcmp.le.f32.partialorder %v2210_v22, 0.7853982  ;;  %vm2108_vm11 = vcmp.lt.s32.totalorder %v6381_v27, 0 }
 0x6d4   :  { %v2273_v7 = vshll.u32 %v2272_v51, 30  ;;  %vm2163_vm5 = vc.u32 %v6438_v5, %v6434_v1  ;;  %v2296_v54 = vsub.s32 4, %v2272_v51  ;;  %vm2107_vm12 = vcmp.le.f32.partialorder %v2106_v30, 0.7853982 }
 0x6d5   :  { %v2165_v13 = vsel %vm2163_vm5, %v2164_v8, %v6435_v2  ;;  %vm2302_vm2 = vweird.f32 %v6377_v11 }
 0x6d6   :  { %v2274_v9 = vsub.s32 %v2270_v49, %v2273_v7  ;;  %v2166_v20 = vadd.s32 %v2165_v13, %v2161_v10  ;;  %v2162_v49 = vadd.s32 %v6434_v1, %v6438_v5  ;;  %v2297_v0 = vsel %vm2212_vm9, %v2296_v54, %v2272_v51 }
 0x6d7   :  { %v2299_v3 = vsel %vm2211_vm10, 0, %v2297_v0  ;;  %v1684_v0 = vld [vmem:[%s6310_s15 + $0x1e8] sm:$0xff] }
 0x6d8   :  { %v2276_v18 = vsub.s32 0, %v2274_v9  ;;  %v2167_v58 = vadd.s32 536870912, %v2166_v20  ;;  %v2303_v7 = vadd.s32 3, %v2299_v3 }
 0x6da   :  { %v4784_v57 = vmin.u32 %v2276_v18, %v2274_v9  ;;  %v2168_v28 = vshrl.u32 %v2167_v58, 30  ;;  %v2304_v10 = vand.u32 3, %v2303_v7  ;;  %v1683_v7 = vld [vmem:[%s6310_s15 + $0x1e0] sm:$0xff] }
 0x6dc   :  { %v2278_v12 = vclz %v4784_v57  ;;  %v2169_v14 = vshll.u32 %v2168_v28, 30  ;;  %v2192_v8 = vsub.s32 4, %v2168_v28  ;;  %vm2309_vm13 = vcmp.eq.s32.totalorder %v2304_v10, 2 }
 0x6dd   :  { %vm2306_vm14 = vcmp.eq.s32.totalorder %v2304_v10, 0  ;;  %vm2305_vm15 = vcmp.lt.s32.totalorder %v2304_v10, 2  ;;  %v1667_v10 = vld [vmem:[%s6310_s15 + $0x160] sm:$0xff] }
 0x6de   :  { %v4785_v63 = vadd.s32 4294967294, %v2278_v12  ;;  %v2170_v29 = vsub.s32 %v2166_v20, %v2169_v14  ;;  %v2193_v13 = vsel %vm2108_vm11, %v2192_v8, %v2168_v28  ;;  %v2510_v20 = vand.u32 3, %v2299_v3 }
 0x6df   :  { %v2195_v57 = vsel %vm2107_vm12, 0, %v2193_v13 }
 0x6e0   :  { %vm4786_vm6 = vcmp.lt.s32.totalorder %v4785_v63, 0  ;;  %v2172_v35 = vsub.s32 0, %v2170_v29  ;;  %v2199_v14 = vadd.s32 3, %v2195_v57  ;;  %vm2512_vm3 = vcmp.eq.s32.totalorder %v2510_v20, 0 }
 0x6e1   :  { %v2281_v31 = vsel %vm4786_vm6, 0, %v4785_v63  ;;  %vm2515_vm4 = vcmp.eq.s32.totalorder %v2510_v20, 2  ;;  %vm2511_vm5 = vcmp.lt.s32.totalorder %v2510_v20, 2 }
 0x6e2   :  { %v2282_v34 = vsub.s32 32, %v2281_v31  ;;  %v2286_v15 = vsub.s32 4294967266, %v2281_v31  ;;  %v2283_v36 = vshll.u32 %v2274_v9, %v2281_v31  ;;  %v4780_v39 = vmin.u32 %v2172_v35, %v2170_v29 }
 0x6e4   :  { %v2284_v37 = vshrl.u32 %v2266_v33, %v2282_v34  ;;  %v2287_v38 = vadd.s32 127, %v2286_v15  ;;  %v2174_v61 = vclz %v4780_v39  ;;  %v2407_v34 = vand.u32 3, %v2195_v57  ;;  %v1666_v57 = vld [vmem:[%s6310_s15 + $0x158] sm:$0xff] }
 0x6e5   :  { %v2200_v15 = vand.u32 3, %v2199_v14 }
 0x6e6   :  { %v2285_v41 = vor.u32 %v2284_v37, %v2283_v36  ;;  %v2288_v43 = vshll.u32 %v2287_v38, 23  ;;  %v4781_v45 = vadd.s32 4294967294, %v2174_v61  ;;  %vm2409_vm6 = vcmp.eq.s32.totalorder %v2407_v34, 0 }
 0x6e8   :  { %v2289_v44 = vor.u32 4788187, %v2288_v43  ;;  %v2292_v40 = vcvt.s32.f32 %v2285_v41  ;;  %vm4782_vm8 = vcmp.lt.s32.totalorder %v4781_v45, 0 }
 0x6e9   :  { %v2177_v47 = vsel %vm4782_vm8, 0, %v4781_v45  ;;  %vm2205_vm8 = vcmp.eq.s32.totalorder %v2200_v15, 2 }
 0x6ea   :  { %v2290_v46 = vand.u32 2147483647, %v2289_v44  ;;  %v2178_v24 = vsub.s32 32, %v2177_v47  ;;  %v2182_v26 = vsub.s32 4294967266, %v2177_v47  ;;  %v2179_v52 = vshll.u32 %v2170_v29, %v2177_v47 }
 0x6ec   :  { %v2293_v48 = vmul.f32 %v2292_v40, %v2290_v46  ;;  %v2180_v42 = vshrl.u32 %v2162_v49, %v2178_v24  ;;  %v2183_v53 = vadd.s32 127, %v2182_v26  ;;  %v6463_v26 = vld [vmem:[%s6082_s29] sm:$0xff] }
 0x6ee   :  { %v2294_v50 = vxor.u32 2147483648, %v2293_v48  ;;  %v2181_v4 = vor.u32 %v2180_v42, %v2179_v52  ;;  %v2184_v55 = vshll.u32 %v2183_v53, 23  ;;  %v1670_v53 = vld [vmem:[%s6310_s15 + $0x178] sm:$0xff] }
 0x6f0   :  { %v2295_v56 = vsel %vm2212_vm9, %v2294_v50, %v2293_v48  ;;  %v2185_v62 = vor.u32 4788187, %v2184_v55  ;;  %v2188_v2 = vcvt.s32.f32 %v2181_v4  ;;  %vm2412_vm9 = vcmp.eq.s32.totalorder %v2407_v34, 2  ;;  %v1685_v4 = vld [vmem:[%s6310_s15 + $0x1f0] sm:$0xff] }
 0x6f1   :  { %v2298_v59 = vsel %vm2211_vm10, %v6377_v11, %v2295_v56  ;;  %vm2202_vm10 = vcmp.eq.s32.totalorder %v2200_v15, 0 }
 0x6f2   :  { %5734 = vcosq.f32 %v2298_v59  ;;  %v2186_v1 = vand.u32 2147483647, %v2185_v62 }
 0x6f3   :  { %5736 = vsinq.f32 %v2298_v59  ;;  %v1669_v59 = vld [vmem:[%s6310_s15 + $0x170] sm:$0xff] }
 0x6f4   :  { %v2189_v5 = vmul.f32 %v2188_v2, %v2186_v1 }
 0x6f6   :  { %v2190_v6 = vxor.u32 2147483648, %v2189_v5 }
 0x6f8   :  { %v2191_v22 = vsel %vm2108_vm11, %v2190_v6, %v2189_v5  ;;  %vm2201_vm11 = vcmp.lt.s32.totalorder %v2200_v15, 2  ;;  %v1668_v6 = vld [vmem:[%s6310_s15 + $0x168] sm:$0xff] }
 0x6f9   :  { %v2194_v9 = vsel %vm2107_vm12, %v6381_v27, %v2191_v22  ;;  %vm2408_vm12 = vcmp.lt.s32.totalorder %v2407_v34, 2  ;;  %v1663_v34 = vld [vmem:[%s6310_s15 + $0x140] sm:$0xff] }
 0x6fa   :  { %5738 = vcosq.f32 %v2194_v9 }
 0x6fb   :  { %5740 = vsinq.f32 %v2194_v9 }
 0x6ff   :  { %v5735_v51 = vpop.eup %5734 }
 0x700   :  { %v5737_v18 = vpop.eup %5736  ;;  %v2310_v58 = vxor.u32 2147483648, %v5735_v51 }
 0x701   :  { %v2307_v12 = vxor.u32 2147483648, %v5737_v18 }
 0x702   :  { %v2311_v63 = vsel %vm2309_vm13, %v2310_v58, %v5737_v18  ;;  %v2517_v33 = vsel %vm2515_vm4, %v2310_v58, %v5737_v18  ;;  %vm2198_vm13 = vweird.f32 %v6381_v27  ;;  %v6472_v27 = vld [vmem:[%s6082_s29 + $0x8] sm:$0xff]  ;;  %v1681_v58 = vld [vmem:[%s6310_s15 + $0x1d0] sm:$0xff] }
 0x703   :  { %v2308_v29 = vsel %vm2306_vm14, %v5735_v51, %v2307_v12  ;;  %v2514_v31 = vsel %vm2512_vm3, %v5735_v51, %v2307_v12  ;;  %v1682_v51 = vld [vmem:[%s6310_s15 + $0x1d8] sm:$0xff] }
 0x704   :  { %v2312_v30 = vsel %vm2305_vm15, %v2308_v29, %v2311_v63  ;;  %v2518_v35 = vsel %vm2511_vm5, %v2514_v31, %v2517_v33  ;;  %v1665_v63 = vld [vmem:[%s6310_s15 + $0x150] sm:$0xff]  ;;  %v1664_v31 = vld [vmem:[%s6310_s15 + $0x148] sm:$0xff]  ;;  %v1679_v33 = vld [vmem:[%s6310_s15 + $0x1c0] sm:$0xff] }
 0x705   :  { %v2313_v28 = vsel %vm2302_vm2, nan, %v2312_v30  ;;  %v2519_v43 = vsel %vm2302_vm2, nan, %v2518_v35  ;;  %v1680_v30 = vld [vmem:[%s6310_s15 + $0x1c8] sm:$0xff]  ;;  %v1678_v35 = vld [vmem:[%s6310_s15 + $0x1b8] sm:$0xff] }
 0x706   :  { %v2521_v36 = vmul.f32 2.0, %v2313_v28  ;;  %v2539_v56 = vmul.f32 %v6472_v27, %v2519_v43  ;;  %v2537_v5 = vmul.f32 %v6472_v27, %v2313_v28 }
 0x707   :  { %v5739_v37 = vpop.eup %5738 }
 0x708   :  { %v5741_v38 = vpop.eup %5740  ;;  %v2206_v39 = vxor.u32 2147483648, %v5739_v37  ;;  %v6459_v45 = vmul.f32 %v2521_v36, %v2519_v43  ;;  %v6477_v62 = vmul.f32 %v2521_v36, %v2313_v28  ;;  %v1662_v36 = vld [vmem:[%s6310_s15 + $0x138] sm:$0xff]  ;;  %v1675_v43 = vld [vmem:[%s6310_s15 + $0x1a0] sm:$0xff] }
 0x709   :  { %v2203_v41 = vxor.u32 2147483648, %v5741_v38 }
 0x70a   :  { %v2207_v61 = vsel %vm2205_vm8, %v2206_v39, %v5741_v38  ;;  %v2414_v44 = vsel %vm2412_vm9, %v2206_v39, %v5741_v38  ;;  %v2529_v42 = vmul.f32 2.0, %v6459_v45  ;;  %v2527_v13 = vsub.f32 1.0, %v6477_v62  ;;  %v1661_v38 = vld [vmem:[%s6310_s15 + $0x130] sm:$0xff]  ;;  %v1676_v39 = vld [vmem:[%s6310_s15 + $0x1a8] sm:$0xff]  ;;  %v4795_v62 = vld [vmem:[%s4657_s26] ss:$0 sm:$0xff]  ;;  %s4673_s26 = sld [smem:[%s6929_s0 + %s5813_s23]]  }
 0x70b   :  { %v2204_v46 = vsel %vm2202_vm10, %v5739_v37, %v2203_v41  ;;  %v2411_v40 = vsel %vm2409_vm6, %v5739_v37, %v2203_v41  ;;  %v1677_v37 = vld [vmem:[%s6310_s15 + $0x1b0] sm:$0xff]  ;;  %v1660_v41 = vld [vmem:[%s6310_s15 + $0x128] sm:$0xff] }
 0x70c   :  { %v2208_v47 = vsel %vm2201_vm11, %v2204_v46, %v2207_v61  ;;  %v2415_v48 = vsel %vm2408_vm12, %v2411_v40, %v2414_v44  ;;  %v2533_v3 = vmul.f32 %v2529_v42, %v6459_v45  ;;  %v2531_v29 = vmul.f32 %v2529_v42, %v2527_v13  ;;  %v1659_v61 = vld [vmem:[%s6310_s15 + $0x120] sm:$0xff]  ;;  %v1674_v44 = vld [vmem:[%s6310_s15 + $0x198] sm:$0xff]  ;;  %v1673_v40 = vld [vmem:[%s6310_s15 + $0x190] sm:$0xff] }
 0x70d   :  { %v2209_v11 = vsel %vm2198_vm13, nan, %v2208_v47  ;;  %v2416_v49 = vsel %vm2198_vm13, nan, %v2415_v48  ;;  %v1658_v46 = vld [vmem:[%s6310_s15 + $0x118] sm:$0xff]  ;;  %v1657_v47 = vld [vmem:[%s6310_s15 + $0x110] sm:$0xff]  ;;  %v1672_v48 = vld [vmem:[%s6310_s15 + $0x188] sm:$0xff]  ;;  %v2541_v42 = vmul.f32 %v6472_v27, %v6459_v45 }
 0x70e   :  { %v2520_v24 = vmul.f32 2.0, %v2209_v11  ;;  %v2536_v50 = vmul.f32 %v6463_v26, %v2209_v11  ;;  %v2538_v52 = vmul.f32 %v6463_v26, %v2416_v49  ;;  %v2535_v20 = vsub.f32 1.0, %v2533_v3 }
 0x70f   :  { %v2545_v15 = vmul.f32 %v6472_v27, %v2531_v29  ;;  %v1723_v29 = vld [vmem:[%s4661_s2] sm:$0xff] }
 0x710   :  { %v6469_v54 = vmul.f32 %v2520_v24, %v2416_v49  ;;  %2618 = vmatprep.mubr.f32.mxu0 %v2538_v52  ;;  %v2524_v55 = vmul.f32 %v2520_v24, %v2209_v11  ;;  %v2547_v28 = vmul.f32 %v6472_v27, %v2535_v20  ;;  %v1656_v11 = vld [vmem:[%s6310_s15 + $0x108] sm:$0xff]  ;;  %v1671_v49 = vld [vmem:[%s6310_s15 + $0x180] sm:$0xff]  ;;  %v2543_v52 = vmul.f32 %v6472_v27, %v2527_v13 }
 0x711   :  { %2619 = vmatmul.mubr.f32.vlgmr.msra.gmra.mxu0 %v2536_v50  ;;  %v1655_v24 = vld [vmem:[%s6310_s15 + $0x100] sm:$0xff]  ;;  %s5810_s15 = smov 33  }
 0x712   :  { %5116 = vmatpush3.msra.mxu0 %v1670_v53  ;;  %2623 = vmatprep.mubr.f32.mxu0 %v2539_v56  ;;  %v2526_v1 = vsub.f32 1.0, %v2524_v55  ;;  %v2528_v2 = vmul.f32 2.0, %v6469_v54  ;;  %v2540_v50 = vmul.f32 %v6463_v26, %v6469_v54  ;;  %v1720_v53 = vld [vmem:[%s4658_s22] sm:$0xff]  ;;  %s6666_s22 = sld [smem:[%s6929_s0 + %s5804_s19]]  }
 0x713   :  { %5117 = vmatprep.subr.mxu0 %v1685_v4  ;;  %s4672_s9 = sld [smem:[%s6929_s0 + %s5810_s15]]  }
 0x714   :  { %5118 = vmatpush3.msra.mxu0 %v1669_v59  ;;  %v2542_v8 = vmul.f32 %v6463_v26, %v2526_v1  ;;  %v2532_v22 = vmul.f32 %v2528_v2, %v6469_v54  ;;  %v2530_v9 = vmul.f32 %v2528_v2, %v2526_v1 }
 0x715   :  { %5119 = vmatprep.subr.mxu0 %v1684_v0  ;;  %2624 = vmatmul.mubr.f32.gmra.mxu0 %v2537_v5 }
 0x716   :  { %5120 = vmatpush3.msra.mxu0 %v1668_v6  ;;  %2693 = vmatprep.mubr.f32.mxu0 %v2542_v8  ;;  %v2534_v18 = vsub.f32 1.0, %v2532_v22  ;;  %v2544_v14 = vmul.f32 %v6463_v26, %v2530_v9 }
 0x717   :  { %5121 = vmatprep.subr.mxu0 %v1683_v7 }
 0x718   :  { %5122 = vmatpush3.msra.mxu0 %v1667_v10  ;;  %v2546_v12 = vmul.f32 %v6463_v26, %v2534_v18  ;;  %v1721_v26 = vld [vmem:[%s4659_s18] sm:$0xff] }
 0x719   :  { %5123 = vmatprep.subr.mxu0 %v1682_v51 }
 0x71a   :  { %5124 = vmatpush3.msra.mxu0 %v1666_v57  ;;  %2768 = vmatprep.mubr.f32.mxu1 %v2546_v12  ;;  %v1726_v12 = vld [vmem:[%s4661_s2 + $0x18] sm:$0xff] }
 0x71b   :  { %5125 = vmatprep.subr.mxu0 %v1681_v58  ;;  %2769 = vmatmul.mubr.f32.vlgmr.msra.gmra.mxu1 %v2544_v14  ;;  %v1724_v14 = vld [vmem:[%s4661_s2 + $0x8] sm:$0xff] }
 0x71c   :  { %5126 = vmatpush3.msra.mxu0 %v1665_v63  ;;  %2773 = vmatprep.mubr.f32.mxu1 %v2547_v28  ;;  %v1725_v63 = vld [vmem:[%s4661_s2 + $0x10] sm:$0xff]  ;;  %s4675_s2 = sld [smem:[%s6929_s0 + %s5814_s28]]  }
 0x71d   :  { %5127 = vmatprep.subr.mxu0 %v1680_v30 }
 0x71e   :  { %5128 = vmatpush3.msra.mxu0 %v1664_v31 }
 0x71f   :  { %5129 = vmatprep.subr.mxu0 %v1679_v33  ;;  %2774 = vmatmul.mubr.f32.gmra.mxu1 %v2545_v15  ;;  %v4800_v33 = vld [vmem:[%s4660_s6] ss:$0 sm:$0xff]  ;;  %s4676_s6 = sld [smem:[%s6929_s0 + %s5815_s3]]  }
 0x720   :  { %5130 = vmatpush3.msra.mxu0 %v1663_v34 }
 0x721   :  { %5131 = vmatprep.subr.mxu0 %v1678_v35 }
 0x722   :  { %5132 = vmatpush3.msra.mxu0 %v1662_v36 }
 0x723   :  { %5133 = vmatprep.subr.mxu0 %v1677_v37 }
 0x724   :  { %5134 = vmatpush3.msra.mxu0 %v1661_v38 }
 0x725   :  { %5135 = vmatprep.subr.mxu0 %v1676_v39 }
 0x726   :  { %5136 = vmatpush3.msra.mxu0 %v1660_v41  ;;  %v3036_v41 = vld [vmem:[%s4663_s12] sm:$0xff] }
 0x727   :  { %5137 = vmatprep.subr.mxu0 %v1675_v43  ;;  %v5754_v43 = vld [vmem:[%s6188_s27] sm:$0xff]  ;;  %s5803_s27 = smov 25  }
 0x728   :  { %5138 = vmatpush3.msra.mxu0 %v1659_v61  ;;  %v4801_v61 = vld [vmem:[%s4662_s16] ss:$0 sm:$0xff]  ;;  %s4664_s18 = sld [smem:[%s6929_s0 + %s5803_s27]]  }
 0x729   :  { %5139 = vmatprep.subr.mxu0 %v1674_v44 }
 0x72a   :  { %5140 = vmatpush3.msra.mxu0 %v1658_v46 }
 0x72b   :  { %5141 = vmatprep.subr.mxu0 %v1673_v40 }
 0x72c   :  { %5142 = vmatpush3.msra.mxu0 %v1657_v47 }
 0x72d   :  { %5143 = vmatprep.subr.mxu0 %v1672_v48 }
 0x72e   :  { %5144 = vmatpush3.msra.mxu0 %v1656_v11 }
 0x72f   :  { %5145 = vmatprep.subr.mxu0 %v1671_v49 }
 0x730   :  { %5146 = vmatpush3.msra.mxu0 %v1655_v24 }
 0x731   :  { %2694 = vmatmul.mubr.f32.vlgmr.msra.gmra.mxu0 %v2540_v50  ;;  %5535 = vmatprep.subr.mxu0 %v1721_v26 }
 0x732   :  { %2698 = vmatprep.mubr.f32.mxu0 %v2543_v52  ;;  %5536 = vmatpush3.msra.mxu0 %v1721_v26 }
 0x733   :  { %5540 = vmatprep.subr.mxu0 %v1720_v53 }
 0x735   :  { %2699 = vmatmul.mubr.f32.gmra.mxu0 %v2541_v42 }
 0x7d1   :  { %v5109_v54 = vpop.f32.mrf.mxu0 }
 0x7d3   :  { %v5110_v56 = vpop.f32.mrf.mxu0 }
 0x7d4   :  { %v5111_v59 = vadd.f32 %v5110_v56, %v5109_v54 }
 0x7d5   :  { %v5112_v45 = vpop.f32.mrf.mxu0 }
 0x7d6   :  { %v2621_v3 = vadd.f32 %v5111_v59, %v4795_v62 }
 0x7d7   :  { %v5113_v4 = vpop.f32.mrf.mxu0 }
 0x7d8   :  { %v5114_v5 = vadd.f32 %v5113_v4, %v5112_v45 }
 0x7da   :  { %v2626_v13 = vadd.f32 %v5114_v5, %v4795_v62 }
 0x7db   :  { %v5185_v27 = vpop.f32.mrf.mxu1 }
 0x7dd   :  { %v5186_v55 = vpop.f32.mrf.mxu1 }
 0x7de   :  { %v5187_v8 = vadd.f32 %v5186_v55, %v5185_v27 }
 0x7df   :  { %v5188_v1 = vpop.f32.mrf.mxu1 }
 0x7e1   :  { %v5189_v9 = vpop.f32.mrf.mxu1 }
 0x7e2   :  { %v5190_v20 = vadd.f32 %v5189_v9, %v5188_v1 }
 0x7f1   :  { %v5147_v0 = vpop.f32.mrf.mxu0 }
 0x7f3   :  { %v5148_v2 = vpop.f32.mrf.mxu0 }
 0x7f4   :  { %v5149_v6 = vadd.f32 %v5148_v2, %v5147_v0 }
 0x7f5   :  { %v5150_v7 = vpop.f32.mrf.mxu0 }
 0x7f6   :  { %v2696_v22 = vadd.f32 %v5149_v6, %v2621_v3  ;;  %v5755_v6 = vld [vmem:[%s6251_s11 + $0x78] sm:$0xff] }
 0x7f7   :  { %v5151_v10 = vpop.f32.mrf.mxu0 }
 0x7f8   :  { %v2771_v51 = vadd.f32 %v5187_v8, %v2696_v22  ;;  %v5152_v18 = vadd.f32 %v5151_v10, %v5150_v7  ;;  %v5756_v22 = vld [vmem:[%s6251_s11 + $0x70] sm:$0xff]  ;;  %v5757_v10 = vld [vmem:[%s6251_s11 + $0x68] sm:$0xff] }
 0x7fa   :  { %v2701_v57 = vadd.f32 %v5152_v18, %v2626_v13  ;;  %5537 = vmatprep.mubr.msk.f32.mxu0 %vm1361_vm7, %v2771_v51  ;;  %v5758_v51 = vld [vmem:[%s6251_s11 + $0x60] sm:$0xff] }
 0x7fc   :  { %v2776_v58 = vadd.f32 %v5190_v20, %v2701_v57  ;;  %v5759_v20 = vld [vmem:[%s6251_s11 + $0x58] sm:$0xff] }
 0x7fe   :  { %5538 = vmatmul.mubr.msk.f32.vlgmr.msra.gmra.mxu0 %vm1361_vm7, %v2776_v58  ;;  %v5760_v58 = vld [vmem:[%s6251_s11 + $0x50] sm:$0xff] }
 0x7ff   :  { %5541 = vmatpush3.msra.mxu0 %v1720_v53  ;;  %5542 = vmatprep.mubr.msk.f32.mxu0 %vm1361_vm7, %v6194_v17 }
 0x800   :  { %5545 = vmatprep.subr.mxu0 %v1726_v12 }
 0x802   :  { %5543 = vmatmul.mubr.msk.f32.vlgmr.msra.gmra.mxu0 %vm1361_vm7, %v6196_v60 }
 0x803   :  { %5546 = vmatpush3.msra.mxu0 %v1726_v12 }
 0x804   :  { %5547 = vmatprep.subr.mxu0 %v1725_v63 }
 0x805   :  { %5548 = vmatpush3.msra.mxu0 %v1725_v63  ;;  %v5761_v63 = vld [vmem:[%s6251_s11 + $0x48] sm:$0xff] }
 0x806   :  { %5549 = vmatprep.subr.mxu0 %v1724_v14 }
 0x807   :  { %5550 = vmatpush3.msra.mxu0 %v1724_v14 }
 0x808   :  { %5551 = vmatprep.subr.mxu0 %v1723_v29 }
 0x809   :  { %5552 = vmatpush3.msra.mxu0 %v1723_v29  ;;  %v5762_v29 = vld [vmem:[%s6251_s11 + $0x40] sm:$0xff] }
 0x80a   :  { %5556 = vmatprep.subr.mxu0 %v3036_v41 }
 0x8be   :  { %v5539_v30 = vpop.f32.mrf.mxu0 }
 0x8c0   :  { %v2851_v28 = vpop.f32.mrf.mxu0 }
 0x8c2   :  { %v5544_v31 = vpop.f32.mrf.mxu0 }
 0x8c3   :  { %v2932_v34 = vadd.f32 %v5544_v31, %v5539_v30 }
 0x8c4   :  { %v2926_v15 = vpop.f32.mrf.mxu0 }
 0x8c5   :  { %v2927_v35 = vadd.f32 %v2926_v15, %v2851_v28  ;;  %v2942_v36 = vadd.f32 %v4800_v33, %v2932_v34  ;;  %v5763_v28 = vld [vmem:[%s6251_s11 + $0x38] sm:$0xff]  ;;  %v5765_v15 = vld [vmem:[%s6251_s11 + $0x28] sm:$0xff] }
 0x8c7   :  { %v2941_v37 = vadd.f32 %v4800_v33, %v2927_v35  ;;  %v2944_v39 = vmax.f32 %v2942_v36, 0.0  ;;  %v5764_v33 = vld [vmem:[%s6251_s11 + $0x30] sm:$0xff]  ;;  %v5766_v36 = vld [vmem:[%s6251_s11 + $0x20] sm:$0xff] }
 0x8c9   :  { %v2943_v38 = vmax.f32 %v2941_v37, 0.0 }
 0x8cb   :  { %5553 = vmatprep.mubr.msk.f32.mxu0 %vm1537_vm0, %v2943_v38  ;;  %v5767_v38 = vld [vmem:[%s6251_s11 + $0x18] sm:$0xff] }
 0x8cc   :  { %5554 = vmatmul.mubr.msk.f32.vlgmr.msra.gmra.mxu0 %vm1537_vm0, %v2944_v39 }
 0x8cd   :  { %5557 = vmatpush3.msra.mxu0 %v3036_v41  ;;  %v5768_v41 = vld [vmem:[%s6251_s11 + $0x10] sm:$0xff] }
 0x8ce   :  { %5561 = vmatprep.subr.mxu0 %v5754_v43 }
 0x98c   :  { %v5555_v44 = vpop.f32.mrf.mxu0 }
 0x98d   :  { %v3029_v46 = vadd.f32 %v5555_v44, %v4801_v61 }
 0x98e   :  { %v3023_v40 = vpop.f32.mrf.mxu0 }
 0x98f   :  { %v3024_v47 = vadd.f32 %v4801_v61, %v3023_v40  ;;  %v3033_v48 = vmax.f32 %v3029_v46, 0.0  ;;  %v5769_v61 = vld [vmem:[%s6251_s11 + $0x8] sm:$0xff]  ;;  %v5770_v46 = vld [vmem:[%s6251_s11] sm:$0xff]  ;;  %s4674_s11 = sld [smem:[%s6929_s0 + %s5812_s21]]  }
 0x991   :  { %v3032_v11 = vmax.f32 %v3024_v47, 0.0  ;;  %v6560_v24 = vadd.f32 %v3033_v48, %v6196_v60  ;;  %v3069_v47 = vld [vmem:[%s6666_s22 + $0xf8] sm:$0xff] }
 0x992   :  { %5241 = vmatprep.subr.mxu1 %v3069_v47  ;;  %v3053_v48 = vld [vmem:[%s6666_s22 + $0x78] sm:$0xff]  ;;  %v3106_v47 = vld [vmem:[%s6666_s22 + $0x220] sm:$0xff] }
 0x993   :  { %v6557_v49 = vadd.f32 %v3032_v11, %v6194_v17  ;;  %v4804_v17 = vld [vmem:[%s4664_s18] ss:$0 sm:$0xff]  ;;  %5242 = vmatpush3.msra.mxu1 %v3053_v48  ;;  %v3068_v11 = vld [vmem:[%s6666_s22 + $0xf0] sm:$0xff]  ;;  %v3121_v48 = vld [vmem:[%s6666_s22 + $0x298] sm:$0xff] }
 0x994   :  { %5243 = vmatprep.subr.mxu1 %v3068_v11  ;;  %v3105_v11 = vld [vmem:[%s6666_s22 + $0x218] sm:$0xff] }
 0x995   :  { %5558 = vmatprep.mubr.msk.f32.mxu0 %vm1361_vm7, %v6557_v49 }
 0x996   :  { %5559 = vmatmul.mubr.msk.f32.vlgmr.msra.gmra.mxu0 %vm1361_vm7, %v6560_v24 }
 0x997   :  { %5562 = vmatpush3.msra.mxu0 %v5754_v43  ;;  %5563 = vmatprep.mubr.msk.f32.mxu0 %vm1361_vm7, %v6557_v49 }
 0x99a   :  { %5564 = vmatmul.mubr.msk.f32.vlgmr.msra.gmra.mxu0 %vm1361_vm7, %v6560_v24 }
 0x99b   :  { %5566 = vmatprep.mubr.msk.f32.mxu0 %vm1361_vm7, %v6557_v49 }
 0x99e   :  { %5567 = vmatmul.mubr.msk.f32.gmra.mxu0 %vm1361_vm7, %v6560_v24 }
 0x99f   :  { %5569 = vmatprep.mubr.msk.f32.mxu0 %vm1361_vm7, %v6557_v49 }
 0x9a2   :  { %5570 = vmatmul.mubr.msk.f32.gmra.mxu0 %vm1361_vm7, %v6560_v24 }
 0x9a3   :  { %5572 = vmatprep.mubr.msk.f32.mxu0 %vm1361_vm7, %v6557_v49 }
 0x9a6   :  { %5573 = vmatmul.mubr.msk.f32.gmra.mxu0 %vm1361_vm7, %v6560_v24 }
 0x9a7   :  { %5575 = vmatprep.mubr.msk.f32.mxu0 %vm1361_vm7, %v6557_v49 }
 0x9aa   :  { %5576 = vmatmul.mubr.msk.f32.gmra.mxu0 %vm1361_vm7, %v6560_v24 }
 0x9ab   :  { %5578 = vmatprep.mubr.msk.f32.mxu0 %vm1361_vm7, %v6557_v49 }
 0x9ae   :  { %5579 = vmatmul.mubr.msk.f32.gmra.mxu0 %vm1361_vm7, %v6560_v24 }
 0x9af   :  { %5581 = vmatprep.mubr.msk.f32.mxu0 %vm1361_vm7, %v6557_v49 }
 0x9b2   :  { %5582 = vmatmul.mubr.msk.f32.gmra.mxu0 %vm1361_vm7, %v6560_v24 }
 0x9b3   :  { %5584 = vmatprep.mubr.msk.f32.mxu0 %vm1361_vm7, %v6557_v49 }
 0x9b6   :  { %5585 = vmatmul.mubr.msk.f32.gmra.mxu0 %vm1361_vm7, %v6560_v24 }
 0xa56   :  { %v5560_v60 = vpop.f32.mrf.mxu0 }
 0xa57   :  { %v6601_v50 = vadd.f32 %v5560_v60, %v4804_v17  ;;  %v3067_v60 = vld [vmem:[%s6666_s22 + $0xe8] sm:$0xff] }
 0xa58   :  { %v3221_v52 = vpop.f32.mrf.mxu0 }
 0xa59   :  { %v3222_v42 = vadd.f32 %v4804_v17, %v3221_v52  ;;  %v3052_v17 = vld [vmem:[%s6666_s22 + $0x70] sm:$0xff]  ;;  %v3066_v52 = vld [vmem:[%s6666_s22 + $0xe0] sm:$0xff] }
 0xa5a   :  { %v6603_v26 = vpop.f32.mrf.mxu0  ;;  %5244 = vmatpush3.msra.mxu1 %v3052_v17  ;;  %v3120_v17 = vld [vmem:[%s6666_s22 + $0x290] sm:$0xff] }
 0xa5b   :  { %5619 = vmatprep.mubr.msk.f32.mxu0 %vm1976_vm1, %v3222_v42  ;;  %v3376_v44 = vmul.f32 %v5769_v61, %v6603_v26  ;;  %5245 = vmatprep.subr.mxu1 %v3067_v60  ;;  %v3050_v42 = vld [vmem:[%s6666_s22 + $0x60] sm:$0xff]  ;;  %v3065_v26 = vld [vmem:[%s6666_s22 + $0xd8] sm:$0xff]  ;;  %v3104_v60 = vld [vmem:[%s6666_s22 + $0x210] sm:$0xff] }
 0xa5c   :  { %v6606_v53 = vpop.f32.mrf.mxu0  ;;  %v3038_v61 = vld [vmem:[%s6666_s22] sm:$0xff] }
 0xa5d   :  { %v3375_v40 = vmul.f32 %v5770_v46, %v6606_v53  ;;  %v3049_v53 = vld [vmem:[%s6666_s22 + $0x58] sm:$0xff]  ;;  %v3107_v46 = vld [vmem:[%s6666_s22 + $0x228] sm:$0xff] }
 0xa5e   :  { %v5568_v54 = vpop.f32.mrf.mxu0 }
 0xa5f   :  { %v3378_v39 = vmul.f32 %v5767_v38, %v5568_v54  ;;  %v3064_v54 = vld [vmem:[%s6666_s22 + $0xd0] sm:$0xff] }
 0xa60   :  { %v6608_v56 = vpop.f32.mrf.mxu0  ;;  %v3108_v38 = vld [vmem:[%s6666_s22 + $0x230] sm:$0xff] }
 0xa61   :  { %v3377_v43 = vmul.f32 %v5768_v41, %v6608_v56  ;;  %v3048_v56 = vld [vmem:[%s6666_s22 + $0x50] sm:$0xff]  ;;  %v3123_v41 = vld [vmem:[%s6666_s22 + $0x2a8] sm:$0xff] }
 0xa62   :  { %v5571_v45 = vpop.f32.mrf.mxu0 }
 0xa63   :  { %v3380_v35 = vmul.f32 %v5765_v15, %v5571_v45  ;;  %v3133_v45 = vld [vmem:[%s6666_s22 + $0x2f8] sm:$0xff] }
 0xa64   :  { %v3316_v27 = vpop.f32.mrf.mxu0  ;;  %v3109_v15 = vld [vmem:[%s6666_s22 + $0x238] sm:$0xff] }
 0xa65   :  { %v3379_v37 = vmul.f32 %v5766_v36, %v3316_v27  ;;  %v3063_v27 = vld [vmem:[%s6666_s22 + $0xc8] sm:$0xff]  ;;  %v3124_v36 = vld [vmem:[%s6666_s22 + $0x2b0] sm:$0xff] }
 0xa66   :  { %v5574_v4 = vpop.f32.mrf.mxu0 }
 0xa67   :  { %v3382_v31 = vmul.f32 %v5763_v28, %v5574_v4  ;;  %v3117_v4 = vld [vmem:[%s6666_s22 + $0x278] sm:$0xff]  ;;  %v3110_v28 = vld [vmem:[%s6666_s22 + $0x240] sm:$0xff] }
 0xa68   :  { %v3326_v55 = vpop.f32.mrf.mxu0 }
 0xa69   :  { %v3381_v34 = vmul.f32 %v5764_v33, %v3326_v55  ;;  %v3132_v55 = vld [vmem:[%s6666_s22 + $0x2f0] sm:$0xff]  ;;  %v3125_v33 = vld [vmem:[%s6666_s22 + $0x2b8] sm:$0xff] }
 0xa6a   :  { %v5577_v59 = vpop.f32.mrf.mxu0 }
 0xa6b   :  { %v3384_v14 = vmul.f32 %v5761_v63, %v5577_v59  ;;  %v3047_v59 = vld [vmem:[%s6666_s22 + $0x48] sm:$0xff] }
 0xa6c   :  { %v3336_v62 = vpop.f32.mrf.mxu0  ;;  %v3111_v63 = vld [vmem:[%s6666_s22 + $0x248] sm:$0xff] }
 0xa6d   :  { %v3383_v30 = vmul.f32 %v5762_v29, %v3336_v62  ;;  %v3116_v62 = vld [vmem:[%s6666_s22 + $0x270] sm:$0xff]  ;;  %v3126_v29 = vld [vmem:[%s6666_s22 + $0x2c0] sm:$0xff] }
 0xa6e   :  { %v5580_v0 = vpop.f32.mrf.mxu0 }
 0xa6f   :  { %v3386_v57 = vmul.f32 %v5759_v20, %v5580_v0  ;;  %v3062_v0 = vld [vmem:[%s6666_s22 + $0xc0] sm:$0xff]  ;;  %v3112_v20 = vld [vmem:[%s6666_s22 + $0x250] sm:$0xff] }
 0xa70   :  { %v3346_v1 = vpop.f32.mrf.mxu0 }
 0xa71   :  { %v3385_v12 = vmul.f32 %v5760_v58, %v3346_v1  ;;  %v3131_v1 = vld [vmem:[%s6666_s22 + $0x2e8] sm:$0xff] }
 0xa72   :  { %v5583_v2 = vpop.f32.mrf.mxu0  ;;  %v3127_v58 = vld [vmem:[%s6666_s22 + $0x2c8] sm:$0xff] }
 0xa73   :  { %v3388_v13 = vmul.f32 %v5757_v10, %v5583_v2  ;;  %v3115_v2 = vld [vmem:[%s6666_s22 + $0x268] sm:$0xff]  ;;  %v3113_v10 = vld [vmem:[%s6666_s22 + $0x258] sm:$0xff] }
 0xa74   :  { %v3356_v3 = vpop.f32.mrf.mxu0 }
 0xa75   :  { %v3387_v18 = vmul.f32 %v5758_v51, %v3356_v3  ;;  %v3046_v3 = vld [vmem:[%s6666_s22 + $0x40] sm:$0xff]  ;;  %v3128_v51 = vld [vmem:[%s6666_s22 + $0x2d0] sm:$0xff] }
 0xa76   :  { %v5586_v5 = vpop.f32.mrf.mxu0 }
 0xa77   :  { %v3390_v7 = vmul.f32 %v5755_v6, %v5586_v5  ;;  %v3130_v5 = vld [vmem:[%s6666_s22 + $0x2e0] sm:$0xff]  ;;  %v3061_v6 = vld [vmem:[%s6666_s22 + $0xb8] sm:$0xff] }
 0xa78   :  { %v3366_v8 = vpop.f32.mrf.mxu0 }
 0xa79   :  { %v3389_v9 = vmul.f32 %v5756_v22, %v3366_v8  ;;  %5587 = vmatprep.subr.msk.mxu0 %vm1976_vm1, %v3390_v7  ;;  %v3045_v8 = vld [vmem:[%s6666_s22 + $0x38] sm:$0xff] }
 0xa7a   :  { %5588 = vmatpush3.xpose.msk.msra.mxu0 %vm1976_vm1, %v3390_v7  ;;  %v3114_v7 = vld [vmem:[%s6666_s22 + $0x260] sm:$0xff]  ;;  %v3129_v22 = vld [vmem:[%s6666_s22 + $0x2d8] sm:$0xff] }
 0xa7b   :  { %5589 = vmatprep.subr.msk.mxu0 %vm1976_vm1, %v3389_v9 }
 0xa7e   :  { %5590 = vmatpush3.xpose.msk.msra.mxu0 %vm1976_vm1, %v3389_v9  ;;  %v3060_v9 = vld [vmem:[%s6666_s22 + $0xb0] sm:$0xff] }
 0xa7f   :  { %5591 = vmatprep.subr.msk.mxu0 %vm1976_vm1, %v3388_v13 }
 0xa82   :  { %5592 = vmatpush3.xpose.msk.msra.mxu0 %vm1976_vm1, %v3388_v13  ;;  %v3044_v13 = vld [vmem:[%s6666_s22 + $0x30] sm:$0xff] }
 0xa83   :  { %5593 = vmatprep.subr.msk.mxu0 %vm1976_vm1, %v3387_v18 }
 0xa86   :  { %5594 = vmatpush3.xpose.msk.msra.mxu0 %vm1976_vm1, %v3387_v18  ;;  %v3059_v18 = vld [vmem:[%s6666_s22 + $0xa8] sm:$0xff] }
 0xa87   :  { %5595 = vmatprep.subr.msk.mxu0 %vm1976_vm1, %v3386_v57 }
 0xa8a   :  { %5596 = vmatpush3.xpose.msk.msra.mxu0 %vm1976_vm1, %v3386_v57  ;;  %v3043_v57 = vld [vmem:[%s6666_s22 + $0x28] sm:$0xff] }
 0xa8b   :  { %5597 = vmatprep.subr.msk.mxu0 %vm1976_vm1, %v3385_v12 }
 0xa8e   :  { %5598 = vmatpush3.xpose.msk.msra.mxu0 %vm1976_vm1, %v3385_v12  ;;  %v3058_v12 = vld [vmem:[%s6666_s22 + $0xa0] sm:$0xff] }
 0xa8f   :  { %5599 = vmatprep.subr.msk.mxu0 %vm1976_vm1, %v3384_v14 }
 0xa92   :  { %5600 = vmatpush3.xpose.msk.msra.mxu0 %vm1976_vm1, %v3384_v14  ;;  %v3042_v14 = vld [vmem:[%s6666_s22 + $0x20] sm:$0xff] }
 0xa93   :  { %5601 = vmatprep.subr.msk.mxu0 %vm1976_vm1, %v3383_v30 }
 0xa96   :  { %5602 = vmatpush3.xpose.msk.msra.mxu0 %vm1976_vm1, %v3383_v30  ;;  %v3057_v30 = vld [vmem:[%s6666_s22 + $0x98] sm:$0xff] }
 0xa97   :  { %5603 = vmatprep.subr.msk.mxu0 %vm1976_vm1, %v3382_v31 }
 0xa9a   :  { %5604 = vmatpush3.xpose.msk.msra.mxu0 %vm1976_vm1, %v3382_v31  ;;  %v3041_v31 = vld [vmem:[%s6666_s22 + $0x18] sm:$0xff] }
 0xa9b   :  { %5605 = vmatprep.subr.msk.mxu0 %vm1976_vm1, %v3381_v34 }
 0xa9e   :  { %5606 = vmatpush3.xpose.msk.msra.mxu0 %vm1976_vm1, %v3381_v34  ;;  %v3056_v34 = vld [vmem:[%s6666_s22 + $0x90] sm:$0xff] }
 0xa9f   :  { %5607 = vmatprep.subr.msk.mxu0 %vm1976_vm1, %v3380_v35 }
 0xaa2   :  { %5608 = vmatpush3.xpose.msk.msra.mxu0 %vm1976_vm1, %v3380_v35  ;;  %v3040_v35 = vld [vmem:[%s6666_s22 + $0x10] sm:$0xff] }
 0xaa3   :  { %5609 = vmatprep.subr.msk.mxu0 %vm1976_vm1, %v3379_v37 }
 0xaa6   :  { %5610 = vmatpush3.xpose.msk.msra.mxu0 %vm1976_vm1, %v3379_v37  ;;  %v3055_v37 = vld [vmem:[%s6666_s22 + $0x88] sm:$0xff] }
 0xaa7   :  { %5611 = vmatprep.subr.msk.mxu0 %vm1976_vm1, %v3378_v39 }
 0xaaa   :  { %5612 = vmatpush3.xpose.msk.msra.mxu0 %vm1976_vm1, %v3378_v39  ;;  %v3039_v39 = vld [vmem:[%s6666_s22 + $0x8] sm:$0xff] }
 0xaab   :  { %5613 = vmatprep.subr.msk.mxu0 %vm1976_vm1, %v3377_v43 }
 0xaae   :  { %5614 = vmatpush3.xpose.msk.msra.mxu0 %vm1976_vm1, %v3377_v43  ;;  %v3054_v43 = vld [vmem:[%s6666_s22 + $0x80] sm:$0xff] }
 0xaaf   :  { %5615 = vmatprep.subr.msk.mxu0 %vm1976_vm1, %v3376_v44 }
 0xab2   :  { %5616 = vmatpush3.xpose.msk.msra.mxu0 %vm1976_vm1, %v3376_v44  ;;  %v3101_v44 = vld [vmem:[%s6666_s22 + $0x1f8] sm:$0xff] }
 0xab3   :  { %5617 = vmatprep.subr.msk.mxu0 %vm1976_vm1, %v3375_v40 }
 0xab6   :  { %5618 = vmatpush3.xpose.msk.msra.mxu0 %vm1976_vm1, %v3375_v40  ;;  %v3122_v40 = vld [vmem:[%s6666_s22 + $0x2a0] sm:$0xff] }
 0xab7   :  { %5317 = vmatprep.subr.mxu0 %v3133_v45 }
 0xab9   :  { %5620 = vmatmul.mubr.msk.f32.vlgmr.msra.gmra.mxu0 %vm1976_vm1, %v6601_v50  ;;  %v3051_v50 = vld [vmem:[%s6666_s22 + $0x68] sm:$0xff] }
 0xaba   :  { %5246 = vmatpush3.msra.mxu1 %v3051_v50  ;;  %5318 = vmatpush3.msra.mxu0 %v3117_v4  ;;  %v3119_v50 = vld [vmem:[%s6666_s22 + $0x288] sm:$0xff] }
 0xabb   :  { %5247 = vmatprep.subr.mxu1 %v3066_v52  ;;  %5319 = vmatprep.subr.mxu0 %v3132_v55  ;;  %v3103_v52 = vld [vmem:[%s6666_s22 + $0x208] sm:$0xff] }
 0xabc   :  { %5248 = vmatpush3.msra.mxu1 %v3050_v42  ;;  %5320 = vmatpush3.msra.mxu0 %v3116_v62  ;;  %v3118_v42 = vld [vmem:[%s6666_s22 + $0x280] sm:$0xff] }
 0xabd   :  { %5249 = vmatprep.subr.mxu1 %v3065_v26  ;;  %5321 = vmatprep.subr.mxu0 %v3131_v1  ;;  %v3102_v26 = vld [vmem:[%s6666_s22 + $0x200] sm:$0xff] }
 0xabe   :  { %5250 = vmatpush3.msra.mxu1 %v3049_v53  ;;  %5322 = vmatpush3.msra.mxu0 %v3115_v2 }
 0xabf   :  { %5251 = vmatprep.subr.mxu1 %v3064_v54  ;;  %5323 = vmatprep.subr.mxu0 %v3130_v5 }
 0xac0   :  { %5252 = vmatpush3.msra.mxu1 %v3048_v56  ;;  %5324 = vmatpush3.msra.mxu0 %v3114_v7 }
 0xac1   :  { %5253 = vmatprep.subr.mxu1 %v3063_v27  ;;  %5325 = vmatprep.subr.mxu0 %v3129_v22 }
 0xac2   :  { %5254 = vmatpush3.msra.mxu1 %v3047_v59  ;;  %5326 = vmatpush3.msra.mxu0 %v3113_v10 }
 0xac3   :  { %5255 = vmatprep.subr.mxu1 %v3062_v0  ;;  %5327 = vmatprep.subr.mxu0 %v3128_v51 }
 0xac4   :  { %5256 = vmatpush3.msra.mxu1 %v3046_v3  ;;  %5328 = vmatpush3.msra.mxu0 %v3112_v20 }
 0xac5   :  { %5257 = vmatprep.subr.mxu1 %v3061_v6  ;;  %5329 = vmatprep.subr.mxu0 %v3127_v58 }
 0xac6   :  { %5258 = vmatpush3.msra.mxu1 %v3045_v8  ;;  %5330 = vmatpush3.msra.mxu0 %v3111_v63 }
 0xac7   :  { %5259 = vmatprep.subr.mxu1 %v3060_v9  ;;  %5331 = vmatprep.subr.mxu0 %v3126_v29 }
 0xac8   :  { %5260 = vmatpush3.msra.mxu1 %v3044_v13  ;;  %5332 = vmatpush3.msra.mxu0 %v3110_v28 }
 0xac9   :  { %5261 = vmatprep.subr.mxu1 %v3059_v18  ;;  %5333 = vmatprep.subr.mxu0 %v3125_v33 }
 0xaca   :  { %5262 = vmatpush3.msra.mxu1 %v3043_v57  ;;  %5334 = vmatpush3.msra.mxu0 %v3109_v15 }
 0xacb   :  { %5263 = vmatprep.subr.mxu1 %v3058_v12  ;;  %5335 = vmatprep.subr.mxu0 %v3124_v36 }
 0xacc   :  { %5264 = vmatpush3.msra.mxu1 %v3042_v14  ;;  %5336 = vmatpush3.msra.mxu0 %v3108_v38 }
 0xacd   :  { %5265 = vmatprep.subr.mxu1 %v3057_v30  ;;  %5337 = vmatprep.subr.mxu0 %v3123_v41 }
 0xace   :  { %5266 = vmatpush3.msra.mxu1 %v3041_v31  ;;  %5338 = vmatpush3.msra.mxu0 %v3107_v46 }
 0xacf   :  { %5267 = vmatprep.subr.mxu1 %v3056_v34  ;;  %5339 = vmatprep.subr.mxu0 %v3122_v40 }
 0xad0   :  { %5268 = vmatpush3.msra.mxu1 %v3040_v35  ;;  %5340 = vmatpush3.msra.mxu0 %v3106_v47 }
 0xad1   :  { %5269 = vmatprep.subr.mxu1 %v3055_v37  ;;  %5341 = vmatprep.subr.mxu0 %v3121_v48 }
 0xad2   :  { %5270 = vmatpush3.msra.mxu1 %v3039_v39  ;;  %5342 = vmatpush3.msra.mxu0 %v3105_v11 }
 0xad3   :  { %5271 = vmatprep.subr.mxu1 %v3054_v43  ;;  %5343 = vmatprep.subr.mxu0 %v3120_v17 }
 0xad4   :  { %5272 = vmatpush3.msra.mxu1 %v3038_v61  ;;  %5344 = vmatpush3.msra.mxu0 %v3104_v60 }
 0xad5   :  { %5279 = vmatprep.subr.mxu1 %v3101_v44  ;;  %5345 = vmatprep.subr.mxu0 %v3119_v50 }
 0xad6   :  { %5346 = vmatpush3.msra.mxu0 %v3103_v52 }
 0xad7   :  { %5347 = vmatprep.subr.mxu0 %v3118_v42 }
 0xad8   :  { %5348 = vmatpush3.msra.mxu0 %v3102_v26 }
 0xb79   :  { %v6733_v53 = vpop.f32.mrf.mxu0 }
 0xb7a   :  { %v3624_v54 = vand.u32 2147483647, %v6733_v53  ;;  %v3627_v56 = vand.u32 2139095040, %v6733_v53 }
 0xb7b   :  { %v6737_v45 = vpop.f32.mrf.mxu0 }
 0xb7c   :  { %v3628_v27 = vshrl.u32 %v3627_v56, 23  ;;  %v3631_v4 = vand.u32 8388607, %v3624_v54  ;;  %v3523_v55 = vand.u32 2139095040, %v6737_v45  ;;  %v3520_v62 = vand.u32 2147483647, %v6737_v45 }
 0xb7e   :  { %v4845_v59 = vadd.s32 4294967169, %v3628_v27  ;;  %v3524_v0 = vshrl.u32 %v3523_v55, 23  ;;  %v3632_v2 = vor.u32 8388608, %v3631_v4  ;;  %v3527_v5 = vand.u32 8388607, %v3520_v62 }
 0xb80   :  { %v3634_v1 = vadd.s32 1, %v4845_v59  ;;  %v4841_v3 = vadd.s32 4294967169, %v3524_v0  ;;  %v6745_v9 = vshll.u32 %v3632_v2, 8  ;;  %v3528_v51 = vor.u32 8388608, %v3527_v5 }
 0xb82   :  { %vm3635_vm1 = vcmp.gt.s32.totalorder %v3634_v1, 0  ;;  %v3530_v7 = vadd.s32 1, %v4841_v3  ;;  %v3568_v11 = vshll.u32 %v3528_v51, 8 }
 0xb83   :  { %v3636_v6 = vsel %vm3635_vm1, %v3634_v1, 0  ;;  %vm3626_vm1 = vcmp.lt.s32.totalorder %v6733_v53, 0 }
 0xb84   :  { %v3637_v8 = vshrl.u32 %v3636_v6, 5  ;;  %v3638_v22 = vand.u32 31, %v3636_v6  ;;  %vm3531_vm14 = vcmp.gt.s32.totalorder %v3530_v7, 0 }
 0xb85   :  { %v3532_v15 = vsel %vm3531_vm14, %v3530_v7, 0  ;;  %vm3625_vm14 = vcmp.le.f32.partialorder %v3624_v54, 0.7853982 }
 0xb86   :  { %v3639_v10 = vsub.s32 32, %v3638_v22  ;;  %v3641_v13 = vshll.u32 %v5778_v16, %v3638_v22  ;;  %v3644_v18 = vshll.u32 %v5779_v19, %v3638_v22  ;;  %v3647_v20 = vshll.u32 %v5780_v21, %v3638_v22 }
 0xb87   :  { %v3650_v57 = vshll.u32 %v5781_v23, %v3638_v22  ;;  %v3653_v58 = vshll.u32 %v5782_v25, %v3638_v22  ;;  %vm3656_vm15 = vcmp.lt.s32.totalorder %v3637_v8, 1  ;;  %vm3658_vm2 = vcmp.lt.s32.totalorder %v3637_v8, 3 }
 0xb88   :  { %v3642_v12 = vshrl.u32 %v5779_v19, %v3639_v10  ;;  %v3645_v63 = vshrl.u32 %v5780_v21, %v3639_v10  ;;  %v3648_v14 = vshrl.u32 %v5781_v23, %v3639_v10  ;;  %v3640_v29 = vshrl.u32 %v5778_v16, %v3639_v10 }
 0xb89   :  { %v3651_v30 = vshrl.u32 %v5782_v25, %v3639_v10  ;;  %v3654_v28 = vshrl.u32 %v5783_v32, %v3639_v10  ;;  %vm3659_vm3 = vcmp.lt.s32.totalorder %v3637_v8, 4  ;;  %v3534_v37 = vand.u32 31, %v3532_v15 }
 0xb8a   :  { %v3643_v31 = vor.u32 %v3642_v12, %v3641_v13  ;;  %v3646_v33 = vor.u32 %v3645_v63, %v3644_v18  ;;  %v3649_v34 = vor.u32 %v3648_v14, %v3647_v20  ;;  %vm3657_vm4 = vcmp.lt.s32.totalorder %v3637_v8, 2 }
 0xb8b   :  { %v3652_v35 = vor.u32 %v3651_v30, %v3650_v57  ;;  %v3655_v36 = vor.u32 %v3654_v28, %v3653_v58  ;;  %v3535_v40 = vsub.s32 32, %v3534_v37  ;;  %v3533_v52 = vshrl.u32 %v3532_v15, 5 }
 0xb8c   :  { %v3660_v38 = vsel %vm3656_vm15, %v3640_v29, %v3643_v31  ;;  %v3661_v39 = vsel %vm3659_vm3, %v3649_v34, 2102212464  ;;  %v3664_v41 = vsel %vm3656_vm15, %v3643_v31, %v3646_v33  ;;  %v3668_v43 = vsel %vm3656_vm15, %v3646_v33, %v3649_v34 }
 0xb8d   :  { %v3662_v61 = vsel %vm3658_vm2, %v3646_v33, %v3661_v39  ;;  %v3665_v44 = vsel %vm3659_vm3, %v3652_v35, 920167782  ;;  %v3669_v46 = vsel %vm3659_vm3, %v3655_v36, 1326507024  ;;  %v3537_v4 = vshll.u32 %v5778_v16, %v3534_v37 }
 0xb8e   :  { %v3666_v47 = vsel %vm3658_vm2, %v3649_v34, %v3665_v44  ;;  %v3670_v48 = vsel %vm3658_vm2, %v3652_v35, %v3669_v46  ;;  %v3663_v17 = vsel %vm3657_vm4, %v3660_v38, %v3662_v61  ;;  %v3538_v55 = vshrl.u32 %v5779_v19, %v3535_v40 }
 0xb8f   :  { %v3667_v60 = vsel %vm3657_vm4, %v3664_v41, %v3666_v47  ;;  %v3671_v50 = vsel %vm3657_vm4, %v3668_v43, %v3670_v48  ;;  %v3540_v59 = vshll.u32 %v5779_v19, %v3534_v37  ;;  %v3541_v0 = vshrl.u32 %v5780_v21, %v3535_v40 }
 0xb90   :  { %v6766_v42 = vmul.u32.u64.low %v6745_v9, %v3671_v50  ;;  %v6767_v26 = vmul.u32.u64.high %v6745_v9, %v3671_v50, %v6766_v42  ;;  %v6770_v56 = vmul.u32.u64.low %v6745_v9, %v3667_v60  ;;  %v6771_v27 = vmul.u32.u64.high %v6745_v9, %v3667_v60, %v6770_v56 }
 0xb91   :  { %v3543_v1 = vshll.u32 %v5780_v21, %v3534_v37  ;;  %v3544_v2 = vshrl.u32 %v5781_v23, %v3535_v40  ;;  %v3546_v3 = vshll.u32 %v5781_v23, %v3534_v37  ;;  %v3547_v5 = vshrl.u32 %v5782_v25, %v3535_v40 }
 0xb92   :  { %v3539_v6 = vor.u32 %v3538_v55, %v3537_v4  ;;  %v3542_v7 = vor.u32 %v3541_v0, %v3540_v59  ;;  %v3549_v8 = vshll.u32 %v5782_v25, %v3534_v37  ;;  %v3550_v22 = vshrl.u32 %v5783_v32, %v3535_v40 }
 0xb93   :  { %v3679_v10 = vmul.u32 %v6745_v9, %v3663_v17  ;;  %vm3681_vm5 = vc.u32 %v6767_v26, %v6770_v56  ;;  %v3682_v19 = vadd.s32 1, %v6771_v27  ;;  %v3545_v21 = vor.u32 %v3544_v2, %v3543_v1 }
 0xb94   :  { %v3536_v13 = vshrl.u32 %v5778_v16, %v3535_v40  ;;  %v3548_v51 = vor.u32 %v3547_v5, %v3546_v3  ;;  %v3551_v23 = vor.u32 %v3550_v22, %v3549_v8  ;;  %vm3552_vm6 = vcmp.lt.s32.totalorder %v3533_v52, 1 }
 0xb95   :  { %v3683_v18 = vsel %vm3681_vm5, %v3682_v19, %v6771_v27  ;;  %vm3554_vm8 = vcmp.lt.s32.totalorder %v3533_v52, 3  ;;  %vm3555_vm9 = vcmp.lt.s32.totalorder %v3533_v52, 4  ;;  %v3560_v25 = vsel %vm3552_vm6, %v3539_v6, %v3542_v7 }
 0xb96   :  { %v3684_v20 = vadd.s32 %v3683_v18, %v3679_v10  ;;  %v3557_v32 = vsel %vm3555_vm9, %v3545_v21, 2102212464  ;;  %v3561_v57 = vsel %vm3555_vm9, %v3548_v51, 920167782  ;;  %v3564_v9 = vsel %vm3552_vm6, %v3542_v7, %v3545_v21 }
 0xb97   :  { %vm3553_vm10 = vcmp.lt.s32.totalorder %v3533_v52, 2  ;;  %v3556_v58 = vsel %vm3552_vm6, %v3536_v13, %v3539_v6  ;;  %v3562_v12 = vsel %vm3554_vm8, %v3545_v21, %v3561_v57  ;;  %v3565_v63 = vsel %vm3555_vm9, %v3551_v23, 1326507024 }
 0xb98   :  { %v3685_v14 = vadd.s32 536870912, %v3684_v20  ;;  %v3558_v29 = vsel %vm3554_vm8, %v3542_v7, %v3557_v32  ;;  %v3563_v30 = vsel %vm3553_vm10, %v3560_v25, %v3562_v12  ;;  %v3566_v16 = vsel %vm3554_vm8, %v3548_v51, %v3565_v63 }
 0xb99   :  { %v3567_v28 = vsel %vm3553_vm10, %v3564_v9, %v3566_v16  ;;  %v6790_v31 = vmul.u32.u64.low %v3568_v11, %v3563_v30  ;;  %v6791_v33 = vmul.u32.u64.high %v3568_v11, %v3563_v30, %v6790_v31  ;;  %v3559_v36 = vsel %vm3553_vm10, %v3556_v58, %v3558_v29 }
 0xb9a   :  { %v3686_v34 = vshrl.u32 %v3685_v14, 30  ;;  %v6793_v15 = vmul.u32.u64.low %v3568_v11, %v3567_v28  ;;  %v6794_v35 = vmul.u32.u64.high %v3568_v11, %v3567_v28, %v6793_v15  ;;  %v3575_v41 = vmul.u32 %v3568_v11, %v3559_v36 }
 0xb9b   :  { %v3578_v38 = vadd.s32 1, %v6791_v33  ;;  %v3680_v42 = vadd.s32 %v6770_v56, %v6767_v26  ;;  %vm3522_vm15 = vcmp.lt.s32.totalorder %v6737_v45, 0  ;;  %vm3521_vm2 = vcmp.le.f32.partialorder %v3520_v62, 0.7853982 }
 0xb9c   :  { %v3687_v37 = vshll.u32 %v3686_v34, 30  ;;  %vm3577_vm11 = vc.u32 %v6794_v35, %v6790_v31  ;;  %v3576_v21 = vadd.s32 %v6790_v31, %v6794_v35  ;;  %v3710_v25 = vsub.s32 4, %v3686_v34 }
 0xb9d   :  { %v3579_v43 = vsel %vm3577_vm11, %v3578_v38, %v6791_v33  ;;  %vm3716_vm6 = vweird.f32 %v6733_v53 }
 0xb9e   :  { %v3688_v39 = vsub.s32 %v3684_v20, %v3687_v37  ;;  %v3580_v44 = vadd.s32 %v3579_v43, %v3575_v41  ;;  %v3711_v12 = vsel %vm3626_vm1, %v3710_v25, %v3686_v34  ;;  %v3099_v25 = vld [vmem:[%s6666_s22 + $0x1e8] sm:$0xff] }
 0xb9f   :  { %v3713_v29 = vsel %vm3625_vm14, 0, %v3711_v12  ;;  %v3098_v12 = vld [vmem:[%s6666_s22 + $0x1e0] sm:$0xff] }
 0xba0   :  { %v3690_v61 = vsub.s32 0, %v3688_v39  ;;  %v3581_v40 = vadd.s32 536870912, %v3580_v44  ;;  %v3717_v28 = vadd.s32 3, %v3713_v29  ;;  %v3924_v37 = vand.u32 3, %v3713_v29 }
 0xba2   :  { %v4846_v46 = vmin.u32 %v3690_v61, %v3688_v39  ;;  %v3582_v48 = vshrl.u32 %v3581_v40, 30  ;;  %v3718_v15 = vand.u32 3, %v3717_v28  ;;  %vm3926_vm8 = vcmp.eq.s32.totalorder %v3924_v37, 0  ;;  %v3097_v28 = vld [vmem:[%s6666_s22 + $0x1d8] sm:$0xff] }
 0xba3   :  { %vm3929_vm9 = vcmp.eq.s32.totalorder %v3924_v37, 2  ;;  %vm3925_vm10 = vcmp.lt.s32.totalorder %v3924_v37, 2 }
 0xba4   :  { %v3692_v47 = vclz %v4846_v46  ;;  %v3583_v60 = vshll.u32 %v3582_v48, 30  ;;  %v3606_v31 = vsub.s32 4, %v3582_v48  ;;  %vm3723_vm3 = vcmp.eq.s32.totalorder %v3718_v15, 2 }
 0xba5   :  { %vm3720_vm4 = vcmp.eq.s32.totalorder %v3718_v15, 0  ;;  %vm3719_vm5 = vcmp.lt.s32.totalorder %v3718_v15, 2  ;;  %v3096_v15 = vld [vmem:[%s6666_s22 + $0x1d0] sm:$0xff] }
 0xba6   :  { %v4847_v17 = vadd.s32 4294967294, %v3692_v47  ;;  %v3584_v50 = vsub.s32 %v3580_v44, %v3583_v60  ;;  %v3607_v35 = vsel %vm3522_vm15, %v3606_v31, %v3582_v48 }
 0xba7   :  { %v3609_v38 = vsel %vm3521_vm2, 0, %v3607_v35 }
 0xba8   :  { %vm4848_vm12 = vcmp.lt.s32.totalorder %v4847_v17, 0  ;;  %v3586_v4 = vsub.s32 0, %v3584_v50  ;;  %v3613_v61 = vadd.s32 3, %v3609_v38  ;;  %v3821_v48 = vand.u32 3, %v3609_v38  ;;  %v3095_v38 = vld [vmem:[%s6666_s22 + $0x1c8] sm:$0xff] }
 0xba9   :  { %v3695_v52 = vsel %vm4848_vm12, 0, %v4847_v17 }
 0xbaa   :  { %v3696_v27 = vsub.s32 32, %v3695_v52  ;;  %v3700_v11 = vsub.s32 4294967266, %v3695_v52  ;;  %v3697_v55 = vshll.u32 %v3688_v39, %v3695_v52  ;;  %v4842_v1 = vmin.u32 %v3586_v4, %v3584_v50 }
 0xbab   :  { %v3614_v17 = vand.u32 3, %v3613_v61  ;;  %vm3823_vm11 = vcmp.eq.s32.totalorder %v3821_v48, 0  ;;  %v3078_v61 = vld [vmem:[%s6666_s22 + $0x140] sm:$0xff] }
 0xbac   :  { %v3698_v59 = vshrl.u32 %v3680_v42, %v3696_v27  ;;  %v3701_v0 = vadd.s32 127, %v3700_v11  ;;  %v3588_v5 = vclz %v4842_v1 }
 0xbad   :  { %vm3619_vm12 = vcmp.eq.s32.totalorder %v3614_v17, 2 }
 0xbae   :  { %v3699_v2 = vor.u32 %v3698_v59, %v3697_v55  ;;  %v3702_v3 = vshll.u32 %v3701_v0, 23  ;;  %v4843_v7 = vadd.s32 4294967294, %v3588_v5 }
 0xbb0   :  { %v3703_v6 = vor.u32 4788187, %v3702_v3  ;;  %v3706_v22 = vcvt.s32.f32 %v3699_v2  ;;  %vm4844_vm13 = vcmp.lt.s32.totalorder %v4843_v7, 0 }
 0xbb1   :  { %v3591_v10 = vsel %vm4844_vm13, 0, %v4843_v7  ;;  %vm3826_vm13 = vcmp.eq.s32.totalorder %v3821_v48, 2 }
 0xbb2   :  { %v3704_v8 = vand.u32 2147483647, %v3703_v6  ;;  %v3592_v26 = vsub.s32 32, %v3591_v10  ;;  %v3596_v56 = vsub.s32 4294967266, %v3591_v10  ;;  %v3593_v51 = vshll.u32 %v3584_v50, %v3591_v10 }
 0xbb4   :  { %v3707_v19 = vmul.f32 %v3706_v22, %v3704_v8  ;;  %v3594_v23 = vshrl.u32 %v3576_v21, %v3592_v26  ;;  %v3597_v18 = vadd.s32 127, %v3596_v56  ;;  %v6819_v8 = vld [vmem:[%s6082_s29] sm:$0xff]  ;;  %v3085_v21 = vld [vmem:[%s6666_s22 + $0x178] sm:$0xff] }
 0xbb6   :  { %v3708_v13 = vxor.u32 2147483648, %v3707_v19  ;;  %v3595_v32 = vor.u32 %v3594_v23, %v3593_v51  ;;  %v3598_v57 = vshll.u32 %v3597_v18, 23  ;;  %v3084_v23 = vld [vmem:[%s6666_s22 + $0x170] sm:$0xff] }
 0xbb8   :  { %v3709_v20 = vsel %vm3626_vm1, %v3708_v13, %v3707_v19  ;;  %v3599_v58 = vor.u32 4788187, %v3598_v57  ;;  %v3602_v14 = vcvt.s32.f32 %v3595_v32  ;;  %vm3616_vm1 = vcmp.eq.s32.totalorder %v3614_v17, 0  ;;  %v3100_v13 = vld [vmem:[%s6666_s22 + $0x1f0] sm:$0xff] }
 0xbb9   :  { %v3712_v9 = vsel %vm3625_vm14, %v6733_v53, %v3709_v20  ;;  %vm3615_vm14 = vcmp.lt.s32.totalorder %v3614_v17, 2  ;;  %v3075_v17 = vld [vmem:[%s6666_s22 + $0x128] sm:$0xff] }
 0xbba   :  { %5742 = vcosq.f32 %v3712_v9  ;;  %v3600_v63 = vand.u32 2147483647, %v3599_v58  ;;  %v3083_v58 = vld [vmem:[%s6666_s22 + $0x168] sm:$0xff] }
 0xbbb   :  { %5744 = vsinq.f32 %v3712_v9 }
 0xbbc   :  { %v3603_v30 = vmul.f32 %v3602_v14, %v3600_v63 }
 0xbbe   :  { %v3604_v16 = vxor.u32 2147483648, %v3603_v30 }
 0xbc0   :  { %v3605_v54 = vsel %vm3522_vm15, %v3604_v16, %v3603_v30  ;;  %vm3822_vm15 = vcmp.lt.s32.totalorder %v3821_v48, 2  ;;  %v3082_v30 = vld [vmem:[%s6666_s22 + $0x160] sm:$0xff]  ;;  %v3091_v48 = vld [vmem:[%s6666_s22 + $0x1a8] sm:$0xff] }
 0xbc1   :  { %v3608_v33 = vsel %vm3521_vm2, %v6737_v45, %v3605_v54  ;;  %vm3612_vm2 = vweird.f32 %v6737_v45  ;;  %v6828_v45 = vld [vmem:[%s6082_s29 + $0x8] sm:$0xff]  ;;  %s5805_s29 = smov 29  }
 0xbc2   :  { %5746 = vcosq.f32 %v3608_v33  ;;  %s4668_s24 = sld [smem:[%s6929_s0 + %s5805_s29]]  }
 0xbc3   :  { %5748 = vsinq.f32 %v3608_v33  ;;  %v3081_v33 = vld [vmem:[%s6666_s22 + $0x158] sm:$0xff] }
 0xbc7   :  { %v5743_v34 = vpop.eup %5742 }
 0xbc8   :  { %v5745_v36 = vpop.eup %5744  ;;  %v3724_v39 = vxor.u32 2147483648, %v5743_v34 }
 0xbc9   :  { %v3721_v41 = vxor.u32 2147483648, %v5745_v36 }
 0xbca   :  { %v3725_v43 = vsel %vm3723_vm3, %v3724_v39, %v5745_v36  ;;  %v3931_v47 = vsel %vm3929_vm9, %v3724_v39, %v5745_v36 }
 0xbcb   :  { %v3722_v44 = vsel %vm3720_vm4, %v5743_v34, %v3721_v41  ;;  %v3928_v40 = vsel %vm3926_vm8, %v5743_v34, %v3721_v41  ;;  %v3080_v34 = vld [vmem:[%s6666_s22 + $0x150] sm:$0xff]  ;;  %v3079_v41 = vld [vmem:[%s6666_s22 + $0x148] sm:$0xff] }
 0xbcc   :  { %v3726_v62 = vsel %vm3719_vm5, %v3722_v44, %v3725_v43  ;;  %v3932_v60 = vsel %vm3925_vm10, %v3928_v40, %v3931_v47  ;;  %v3094_v43 = vld [vmem:[%s6666_s22 + $0x1c0] sm:$0xff]  ;;  %v3092_v40 = vld [vmem:[%s6666_s22 + $0x1b0] sm:$0xff] }
 0xbcd   :  { %v3727_v46 = vsel %vm3716_vm6, nan, %v3726_v62  ;;  %v3933_v4 = vsel %vm3716_vm6, nan, %v3932_v60  ;;  %v3093_v62 = vld [vmem:[%s6666_s22 + $0x1b8] sm:$0xff]  ;;  %v3076_v47 = vld [vmem:[%s6666_s22 + $0x130] sm:$0xff]  ;;  %v3090_v60 = vld [vmem:[%s6666_s22 + $0x1a0] sm:$0xff] }
 0xbce   :  { %v3935_v50 = vmul.f32 2.0, %v3727_v46  ;;  %v3953_v56 = vmul.f32 %v6828_v45, %v3933_v4  ;;  %v3951_v9 = vmul.f32 %v6828_v45, %v3727_v46 }
 0xbcf   :  { %v5747_v52 = vpop.eup %5746 }
 0xbd0   :  { %v5749_v42 = vpop.eup %5748  ;;  %v3620_v27 = vxor.u32 2147483648, %v5747_v52  ;;  %v6815_v0 = vmul.f32 %v3935_v50, %v3933_v4  ;;  %v6833_v18 = vmul.f32 %v3935_v50, %v3727_v46  ;;  %v3077_v46 = vld [vmem:[%s6666_s22 + $0x138] sm:$0xff]  ;;  %v3074_v50 = vld [vmem:[%s6666_s22 + $0x120] sm:$0xff]  ;;  %v3087_v4 = vld [vmem:[%s6666_s22 + $0x188] sm:$0xff] }
 0xbd1   :  { %v3617_v11 = vxor.u32 2147483648, %v5749_v42 }
 0xbd2   :  { %v3621_v55 = vsel %vm3619_vm12, %v3620_v27, %v5749_v42  ;;  %v3828_v59 = vsel %vm3826_vm13, %v3620_v27, %v5749_v42  ;;  %v3943_v19 = vmul.f32 2.0, %v6815_v0  ;;  %v3941_v16 = vsub.f32 1.0, %v6833_v18  ;;  %v3073_v42 = vld [vmem:[%s6666_s22 + $0x118] sm:$0xff]  ;;  %v3088_v27 = vld [vmem:[%s6666_s22 + $0x190] sm:$0xff] }
 0xbd3   :  { %v3618_v1 = vsel %vm3616_vm1, %v5747_v52, %v3617_v11  ;;  %v3825_v2 = vsel %vm3823_vm11, %v5747_v52, %v3617_v11  ;;  %v3089_v52 = vld [vmem:[%s6666_s22 + $0x198] sm:$0xff]  ;;  %v3072_v11 = vld [vmem:[%s6666_s22 + $0x110] sm:$0xff] }
 0xbd4   :  { %v3622_v3 = vsel %vm3615_vm14, %v3618_v1, %v3621_v55  ;;  %v3829_v5 = vsel %vm3822_vm15, %v3825_v2, %v3828_v59  ;;  %v3947_v57 = vmul.f32 %v3943_v19, %v6815_v0  ;;  %v3945_v37 = vmul.f32 %v3943_v19, %v3941_v16  ;;  %v3071_v55 = vld [vmem:[%s6666_s22 + $0x108] sm:$0xff]  ;;  %v3086_v59 = vld [vmem:[%s6666_s22 + $0x180] sm:$0xff] }
 0xbd5   :  { %v3623_v53 = vsel %vm3612_vm2, nan, %v3622_v3  ;;  %v3830_v6 = vsel %vm3612_vm2, nan, %v3829_v5  ;;  %v3070_v1 = vld [vmem:[%s6666_s22 + $0x100] sm:$0xff]  ;;  %v3957_v3 = vmul.f32 %v6828_v45, %v3941_v16  ;;  %v3955_v5 = vmul.f32 %v6828_v45, %v6815_v0  ;;  %v3141_v16 = vld [vmem:[%s4670_s8 + $0x18] sm:$0xff] }
 0xbd6   :  { %v3934_v7 = vmul.f32 2.0, %v3623_v53  ;;  %v3950_v22 = vmul.f32 %v6819_v8, %v3623_v53  ;;  %v3952_v10 = vmul.f32 %v6819_v8, %v3830_v6  ;;  %v3949_v54 = vsub.f32 1.0, %v3947_v57 }
 0xbd7   :  { %v3959_v44 = vmul.f32 %v6828_v45, %v3945_v37 }
 0xbd8   :  { %v6825_v26 = vmul.f32 %v3934_v7, %v3830_v6  ;;  %4032 = vmatprep.mubr.f32.mxu1 %v3952_v10  ;;  %v3938_v51 = vmul.f32 %v3934_v7, %v3623_v53  ;;  %v3961_v39 = vmul.f32 %v6828_v45, %v3949_v54  ;;  %v3136_v53 = vld [vmem:[%s4668_s24] sm:$0xff] }
 0xbd9   :  { %4033 = vmatmul.mubr.f32.vlgmr.msra.gmra.mxu1 %v3950_v22  ;;  %v3135_v6 = vld [vmem:[%s4667_s30] sm:$0xff] }
 0xbda   :  { %5280 = vmatpush3.msra.mxu1 %v3085_v21  ;;  %4037 = vmatprep.mubr.f32.mxu1 %v3953_v56  ;;  %v3940_v20 = vsub.f32 1.0, %v3938_v51  ;;  %v3942_v32 = vmul.f32 2.0, %v6825_v26  ;;  %v3954_v2 = vmul.f32 %v6819_v8, %v6825_v26  ;;  %v3138_v54 = vld [vmem:[%s4670_s8] sm:$0xff] }
 0xbdb   :  { %5281 = vmatprep.subr.mxu1 %v3100_v13 }
 0xbdc   :  { %5282 = vmatpush3.msra.mxu1 %v3084_v23  ;;  %v3956_v63 = vmul.f32 %v6819_v8, %v3940_v20  ;;  %v3946_v14 = vmul.f32 %v3942_v32, %v6825_v26  ;;  %v3944_v29 = vmul.f32 %v3942_v32, %v3940_v20  ;;  %v4857_v26 = vld [vmem:[%s4666_s4] ss:$0 sm:$0xff] }
 0xbdd   :  { %5283 = vmatprep.subr.mxu1 %v3099_v25  ;;  %4038 = vmatmul.mubr.f32.gmra.mxu1 %v3951_v9 }
 0xbde   :  { %5284 = vmatpush3.msra.mxu1 %v3083_v58  ;;  %4107 = vmatprep.mubr.f32.mxu1 %v3956_v63  ;;  %v3948_v31 = vsub.f32 1.0, %v3946_v14  ;;  %v3958_v36 = vmul.f32 %v6819_v8, %v3944_v29 }
 0xbdf   :  { %5285 = vmatprep.subr.mxu1 %v3098_v12 }
 0xbe0   :  { %5286 = vmatpush3.msra.mxu1 %v3082_v30  ;;  %v3960_v35 = vmul.f32 %v6819_v8, %v3948_v31  ;;  %v3139_v31 = vld [vmem:[%s4670_s8 + $0x8] sm:$0xff] }
 0xbe1   :  { %5287 = vmatprep.subr.mxu1 %v3097_v28  ;;  %v3140_v28 = vld [vmem:[%s4670_s8 + $0x10] sm:$0xff] }
 0xbe2   :  { %5288 = vmatpush3.msra.mxu1 %v3081_v33  ;;  %4182 = vmatprep.mubr.f32.mxu0 %v3960_v35 }
 0xbe3   :  { %5289 = vmatprep.subr.mxu1 %v3096_v15  ;;  %4183 = vmatmul.mubr.f32.vlgmr.msra.gmra.mxu0 %v3958_v36 }
 0xbe4   :  { %5290 = vmatpush3.msra.mxu1 %v3080_v34  ;;  %4187 = vmatprep.mubr.f32.mxu0 %v3961_v39  ;;  %v4862_v34 = vld [vmem:[%s4669_s14] ss:$0 sm:$0xff] }
 0xbe5   :  { %5291 = vmatprep.subr.mxu1 %v3095_v38 }
 0xbe6   :  { %5292 = vmatpush3.msra.mxu1 %v3079_v41 }
 0xbe7   :  { %5293 = vmatprep.subr.mxu1 %v3094_v43  ;;  %4188 = vmatmul.mubr.f32.gmra.mxu0 %v3959_v44  ;;  %v4450_v44 = vld [vmem:[%s4672_s9] sm:$0xff] }
 0xbe8   :  { %5294 = vmatpush3.msra.mxu1 %v3078_v61 }
 0xbe9   :  { %5295 = vmatprep.subr.mxu1 %v3093_v62  ;;  %v4863_v62 = vld [vmem:[%s4671_s20] ss:$0 sm:$0xff] }
 0xbea   :  { %5296 = vmatpush3.msra.mxu1 %v3077_v46 }
 0xbeb   :  { %5297 = vmatprep.subr.mxu1 %v3092_v40 }
 0xbec   :  { %5298 = vmatpush3.msra.mxu1 %v3076_v47 }
 0xbed   :  { %5299 = vmatprep.subr.mxu1 %v3091_v48 }
 0xbee   :  { %5300 = vmatpush3.msra.mxu1 %v3075_v17 }
 0xbef   :  { %5301 = vmatprep.subr.mxu1 %v3090_v60 }
 0xbf0   :  { %5302 = vmatpush3.msra.mxu1 %v3074_v50 }
 0xbf1   :  { %5303 = vmatprep.subr.mxu1 %v3089_v52 }
 0xbf2   :  { %5304 = vmatpush3.msra.mxu1 %v3073_v42  ;;  %v4455_v42 = vld [vmem:[%s4674_s11 + $0x18] sm:$0xff] }
 0xbf3   :  { %5305 = vmatprep.subr.mxu1 %v3088_v27  ;;  %v4454_v27 = vld [vmem:[%s4674_s11 + $0x10] sm:$0xff] }
 0xbf4   :  { %5306 = vmatpush3.msra.mxu1 %v3072_v11  ;;  %v4453_v11 = vld [vmem:[%s4674_s11 + $0x8] sm:$0xff] }
 0xbf5   :  { %5307 = vmatprep.subr.mxu1 %v3087_v4  ;;  %v4452_v4 = vld [vmem:[%s4674_s11] sm:$0xff] }
 0xbf6   :  { %5308 = vmatpush3.msra.mxu1 %v3071_v55 }
 0xbf7   :  { %5309 = vmatprep.subr.mxu1 %v3086_v59 }
 0xbf8   :  { %5310 = vmatpush3.msra.mxu1 %v3070_v1 }
 0xbf9   :  { %4108 = vmatmul.mubr.f32.vlgmr.msra.gmra.mxu1 %v3954_v2  ;;  %5622 = vmatprep.subr.mxu1 %v3136_v53 }
 0xbfa   :  { %4112 = vmatprep.mubr.f32.mxu1 %v3957_v3  ;;  %5623 = vmatpush3.msra.mxu1 %v3136_v53 }
 0xbfb   :  { %5627 = vmatprep.subr.mxu1 %v3135_v6 }
 0xbfd   :  { %4113 = vmatmul.mubr.f32.gmra.mxu1 %v3955_v5  ;;  %v4869_v5 = vld [vmem:[%s4675_s2] ss:$0 sm:$0xff] }
 0xc99   :  { %v5273_v7 = vpop.f32.mrf.mxu1 }
 0xc9b   :  { %v5274_v8 = vpop.f32.mrf.mxu1 }
 0xc9c   :  { %v5275_v21 = vadd.f32 %v5274_v8, %v5273_v7 }
 0xc9d   :  { %v5276_v0 = vpop.f32.mrf.mxu1 }
 0xc9e   :  { %v4035_v51 = vadd.f32 %v5275_v21, %v4857_v26 }
 0xc9f   :  { %v5277_v10 = vpop.f32.mrf.mxu1 }
 0xca0   :  { %v5278_v23 = vadd.f32 %v5277_v10, %v5276_v0 }
 0xca2   :  { %v4040_v58 = vadd.f32 %v5278_v23, %v4857_v26 }
 0xca3   :  { %v5349_v22 = vpop.f32.mrf.mxu0 }
 0xca5   :  { %v5350_v19 = vpop.f32.mrf.mxu0 }
 0xca6   :  { %v5351_v20 = vadd.f32 %v5350_v19, %v5349_v22 }
 0xca7   :  { %v5352_v56 = vpop.f32.mrf.mxu0 }
 0xca9   :  { %v5353_v57 = vpop.f32.mrf.mxu0 }
 0xcaa   :  { %v5354_v14 = vadd.f32 %v5353_v57, %v5352_v56 }
 0xcb9   :  { %v5311_v45 = vpop.f32.mrf.mxu1 }
 0xcbb   :  { %v5312_v13 = vpop.f32.mrf.mxu1 }
 0xcbc   :  { %v5313_v18 = vadd.f32 %v5312_v13, %v5311_v45 }
 0xcbd   :  { %v5314_v25 = vpop.f32.mrf.mxu1 }
 0xcbe   :  { %v4110_v32 = vadd.f32 %v5313_v18, %v4035_v51 }
 0xcbf   :  { %v5315_v9 = vpop.f32.mrf.mxu1 }
 0xcc0   :  { %v4185_v12 = vadd.f32 %v5351_v20, %v4110_v32  ;;  %v5316_v63 = vadd.f32 %v5315_v9, %v5314_v25 }
 0xcc2   :  { %v4115_v29 = vadd.f32 %v5316_v63, %v4040_v58  ;;  %5624 = vmatprep.mubr.msk.f32.mxu1 %vm1361_vm7, %v4185_v12 }
 0xcc4   :  { %v4190_v30 = vadd.f32 %v5354_v14, %v4115_v29 }
 0xcc6   :  { %5625 = vmatmul.mubr.msk.f32.vlgmr.msra.gmra.mxu1 %vm1361_vm7, %v4190_v30 }
 0xcc7   :  { %5628 = vmatpush3.msra.mxu1 %v3135_v6  ;;  %5629 = vmatprep.mubr.msk.f32.mxu1 %vm1361_vm7, %v6557_v49 }
 0xcc8   :  { %5632 = vmatprep.subr.mxu1 %v3141_v16 }
 0xcca   :  { %5630 = vmatmul.mubr.msk.f32.vlgmr.msra.gmra.mxu1 %vm1361_vm7, %v6560_v24 }
 0xccb   :  { %5633 = vmatpush3.msra.mxu1 %v3141_v16 }
 0xccc   :  { %5634 = vmatprep.subr.mxu1 %v3140_v28 }
 0xccd   :  { %5635 = vmatpush3.msra.mxu1 %v3140_v28 }
 0xcce   :  { %5636 = vmatprep.subr.mxu1 %v3139_v31 }
 0xccf   :  { %5637 = vmatpush3.msra.mxu1 %v3139_v31 }
 0xcd0   :  { %5638 = vmatprep.subr.mxu1 %v3138_v54 }
 0xcd1   :  { %5639 = vmatpush3.msra.mxu1 %v3138_v54 }
 0xcd2   :  { %5643 = vmatprep.subr.mxu1 %v4450_v44 }
 0xd86   :  { %v5626_v33 = vpop.f32.mrf.mxu1 }
 0xd88   :  { %v4265_v15 = vpop.f32.mrf.mxu1 }
 0xd8a   :  { %v5631_v35 = vpop.f32.mrf.mxu1 }
 0xd8b   :  { %v4346_v36 = vadd.f32 %v5631_v35, %v5626_v33 }
 0xd8c   :  { %v4340_v37 = vpop.f32.mrf.mxu1 }
 0xd8d   :  { %v4341_v38 = vadd.f32 %v4340_v37, %v4265_v15  ;;  %v4356_v39 = vadd.f32 %v4862_v34, %v4346_v36 }
 0xd8f   :  { %v4355_v41 = vadd.f32 %v4862_v34, %v4341_v38  ;;  %v4358_v61 = vmax.f32 %v4356_v39, 0.0 }
 0xd91   :  { %v4357_v43 = vmax.f32 %v4355_v41, 0.0 }
 0xd93   :  { %5640 = vmatprep.mubr.msk.f32.mxu1 %vm1537_vm0, %v4357_v43 }
 0xd94   :  { %5641 = vmatmul.mubr.msk.f32.vlgmr.msra.gmra.mxu1 %vm1537_vm0, %v4358_v61 }
 0xd95   :  { %5644 = vmatpush3.msra.mxu1 %v4450_v44 }
 0xd96   :  { %5648 = vmatprep.subr.mxu1 %v4455_v42 }
 0xe54   :  { %v5642_v46 = vpop.f32.mrf.mxu1 }
 0xe55   :  { %v4443_v40 = vadd.f32 %v5642_v46, %v4863_v62 }
 0xe56   :  { %v4437_v47 = vpop.f32.mrf.mxu1 }
 0xe57   :  { %v4438_v48 = vadd.f32 %v4863_v62, %v4437_v47  ;;  %v4447_v17 = vmax.f32 %v4443_v40, 0.0 }
 0xe59   :  { %v4446_v60 = vmax.f32 %v4438_v48, 0.0  ;;  %v4449_v52 = vadd.f32 %v4447_v17, %v6560_v24 }
 0xe5b   :  { %v4448_v50 = vadd.f32 %v4446_v60, %v6557_v49  ;;  %v4866_v49 = vld [vmem:[%s4673_s26] ss:$0 sm:$0xff] }
 0xe5d   :  { %5645 = vmatprep.mubr.msk.f32.mxu1 %vm1361_vm7, %v4448_v50 }
 0xe5e   :  { %5646 = vmatmul.mubr.msk.f32.vlgmr.msra.gmra.mxu1 %vm1361_vm7, %v4449_v52  ;;  %vm4633_vm7 = vcmask 31744  }
 0xe5f   :  { %5649 = vmatpush3.msra.mxu1 %v4455_v42 }
 0xe60   :  { %5650 = vmatprep.subr.mxu1 %v4454_v27 }
 0xe61   :  { %5651 = vmatpush3.msra.mxu1 %v4454_v27 }
 0xe62   :  { %5652 = vmatprep.subr.mxu1 %v4453_v11 }
 0xe63   :  { %5653 = vmatpush3.msra.mxu1 %v4453_v11 }
 0xe64   :  { %5654 = vmatprep.subr.mxu1 %v4452_v4 }
 0xe65   :  { %5655 = vmatpush3.msra.mxu1 %v4452_v4 }
 0xf1e   :  { %v5647_v24 = vpop.f32.mrf.mxu1 }
 0xf1f   :  { %v4541_v55 = vadd.f32 %v5647_v24, %v4866_v49 }
 0xf20   :  { %v4535_v59 = vpop.f32.mrf.mxu1 }
 0xf21   :  { %v4536_v1 = vadd.f32 %v4866_v49, %v4535_v59  ;;  %v4545_v3 = vmax.f32 %v4541_v55, 0.0 }
 0xf23   :  { %v4544_v2 = vmax.f32 %v4536_v1, 0.0 }
 0xf25   :  { %5656 = vmatprep.mubr.msk.f32.mxu1 %vm1537_vm0, %v4544_v2 }
 0xf26   :  { %5657 = vmatmul.mubr.msk.f32.vlgmr.msra.gmra.mxu1 %vm1537_vm0, %v4545_v3 }
 0xfe6   :  { %v5658_v53 = vpop.f32.mrf.mxu1 }
 0xfe7   :  { %v4630_v6 = vadd.f32 %v5658_v53, %v4869_v5 }
 0xfe8   :  { %v4624_v7 = vpop.f32.mrf.mxu1 }
 0xfe9   :  { %4635 = vst.msk [vmem:[%s4676_s6 + $0x8] sm:$0xff] %vm4633_vm7, %v4630_v6  ;;  %v4625_v8 = vadd.f32 %v4869_v5, %v4624_v7 }
 0xfeb   :  { %4634 = vst.msk [vmem:[%s4676_s6] sm:$0xff] %vm4633_vm7, %v4625_v8 }

</bundles_post_ra>
